<compile_context>
chip_gen: v7x
topology: tpu7x:2x2x1
jax: 0.10.0
libtpu: 0.0.40
codegen_flags: <defaults>
</compile_context>

<pallas_src>
import jax
import jax.numpy as jnp
from jax import lax
from jax.experimental import pallas as pl
from jax.experimental.pallas import tpu as pltpu


def _round_up(v, m):
    return (v + m - 1) // m * m


def bottleneck_kernel(x_ref, w1_ref, s1_ref, b1_ref,
                      w2_ref, s2_ref, b2_ref,
                      w3_ref, s3_ref, b3_ref,
                      out_ref, pad_ref):
    # x_ref:   (1, H*W, Cp)        bf16
    # w1_ref:  (Cp, Pp)            bf16
    # w2_ref:  (9, Pp, Pp)         bf16, tap-major (tap = 3*dy + dx)
    # w3_ref:  (Pp, Coutp)         bf16
    # s*/b*:   (1, C)              f32
    # out_ref: (1, H*W, Coutp)     bf16
    # pad_ref: (H+2, Wa, Pp)       bf16 scratch; interior starts at column LP=8
    Hp2, Wa, Pp = pad_ref.shape
    H = Hp2 - 2
    HW = x_ref.shape[1]
    W = HW // H
    LP = 8  # sublane-aligned start of the interior along the W axis

    # ---- conv1 (1x1) + bn1 + relu (bf16 MXU, f32 epilogue) -------------
    o1 = jnp.dot(x_ref[0], w1_ref[...], preferred_element_type=jnp.float32)
    o1 = jnp.maximum(o1 * s1_ref[...] + b1_ref[...], 0.0)

    # ---- stage padded conv2 input (bf16); re-zero only the read halo ----
    zrow = jnp.zeros((1, Wa, Pp), jnp.bfloat16)
    zcol = jnp.zeros((H, 1, Pp), jnp.bfloat16)
    pad_ref[0:1, :, :] = zrow                            # top halo row
    pad_ref[H + 1:H + 2, :, :] = zrow                    # bottom halo row
    pad_ref[1:H + 1, LP - 1:LP, :] = zcol                # left halo column
    pad_ref[1:H + 1, LP + W:LP + W + 1, :] = zcol        # right halo column
    pad_ref[1:H + 1, LP:LP + W, :] = (
        o1.astype(jnp.bfloat16).reshape(H, W, Pp))       # interior (aligned)

    # ---- conv2 (3x3, stride 1, pad 1) as 9 accumulated MXU dots ---------
    acc = None
    for dy in range(3):
        for dx in range(3):
            sh = pad_ref[dy:dy + H, LP - 1 + dx:LP - 1 + dx + W, :]
            part = jnp.dot(sh.reshape(HW, Pp), w2_ref[3 * dy + dx],
                           preferred_element_type=jnp.float32)
            acc = part if acc is None else acc + part
    o2 = jnp.maximum(acc * s2_ref[...] + b2_ref[...], 0.0)

    # ---- conv3 (1x1) + bn3 + residual + relu ----------------------------
    o3 = jnp.dot(o2.astype(jnp.bfloat16), w3_ref[...],
                 preferred_element_type=jnp.float32)
    o3 = o3 * s3_ref[...] + b3_ref[...]
    # residual re-read from the resident input block (downsample=None)
    o3 = jnp.maximum(o3 + x_ref[0].astype(jnp.float32), 0.0)
    out_ref[0] = o3.astype(out_ref.dtype)


def prepare_kernel_params(p, lane=128):
    """Zero-pad channel dims to multiples of 128, cast weights to bf16, and
    reshape the 3x3 weight to (9, Pp, Pp) tap-major for the accumulated-dot conv2."""
    Cin, P = p["w1"].shape
    Cout = p["w3"].shape[1]
    Cp, Pp, Coutp = (_round_up(c, lane) for c in (Cin, P, Cout))

    def padw(w, shape):
        z = jnp.zeros(shape, jnp.float32)
        return z.at[tuple(slice(0, s) for s in w.shape)].set(w)

    def padv(v, n):
        return jnp.zeros((1, n), jnp.float32).at[0, :v.shape[0]].set(v)

    w1 = padw(p["w1"], (Cp, Pp)).astype(jnp.bfloat16)
    w2 = padw(p["w2"], (3, 3, Pp, Pp)).reshape(9, Pp, Pp).astype(jnp.bfloat16)
    w3 = padw(p["w3"], (Pp, Coutp)).astype(jnp.bfloat16)
    return dict(
        w1=w1, s1=padv(p["s1"], Pp), b1=padv(p["b1"], Pp),
        w2=w2, s2=padv(p["s2"], Pp), b2=padv(p["b2"], Pp),
        w3=w3, s3=padv(p["s3"], Coutp), b3=padv(p["b3"], Coutp),
        dims=(int(Cin), int(P), int(Cout), int(Cp), int(Pp), int(Coutp)))


def _pick_vmem_limit():
    cap = 64 * 1024 * 1024
    try:
        cap = int(pltpu.get_tpu_info().vmem_capacity_bytes)
    except Exception:
        pass
    # v7x (64 MiB physical) -> 32 MiB; v5e/v6e (128 MiB physical) -> 64 MiB.
    return max(32 * 1024 * 1024, min(cap // 2, 64 * 1024 * 1024))


def bottleneck_forward_nhwc(x, kp):
    """x: (N, H, W, Cin) NHWC (any float dtype; activations carried as bf16).
    Returns (N, H, W, Cout) bf16."""
    N, H, W, Cin = x.shape
    Cin0, P, Cout, Cp, Pp, Coutp = kp["dims"]
    assert Cin == Cin0 and Cin == Cout, \
        "downsample=None requires stride=1 and inplanes == planes * 4"

    x = x.astype(jnp.bfloat16)
    if Cp != Cin:
        x = jnp.pad(x, ((0, 0), (0, 0), (0, 0), (0, Cp - Cin)))
    x2d = x.reshape(N, H * W, Cp)                     # free metadata reshape

    args = (x2d, kp["w1"], kp["s1"], kp["b1"],
            kp["w2"], kp["s2"], kp["b2"],
            kp["w3"], kp["s3"], kp["b3"])

    def resident(a):                  # same block every step -> stays in VMEM
        nd = a.ndim
        return pl.BlockSpec(a.shape, lambda n, nd=nd: (0,) * nd)

    in_specs = [pl.BlockSpec((1, H * W, Cp), lambda n: (n, 0, 0))]
    in_specs += [resident(a) for a in args[1:]]

    LP = 8
    Wa = _round_up(LP + W + 1, 8)     # sublane-aligned pad-scratch width

    flops = 2 * N * H * W * (Cin * P + 9 * P * P + P * Cout)   # unpadded
    bytes_accessed = int(sum(int(a.size) * a.dtype.itemsize for a in args)
                         + N * H * W * Coutp * 2)

    out = pl.pallas_call(
        bottleneck_kernel,
        out_shape=jax.ShapeDtypeStruct((N, H * W, Coutp), jnp.bfloat16),
        grid=(N,),
        in_specs=in_specs,
        out_specs=pl.BlockSpec((1, H * W, Coutp), lambda n: (n, 0, 0)),
        scratch_shapes=[pltpu.VMEM((H + 2, Wa, Pp), jnp.bfloat16)],
        compiler_params=pltpu.CompilerParams(
            dimension_semantics=("parallel",),
            vmem_limit_bytes=_pick_vmem_limit()),
        cost_estimate=pl.CostEstimate(
            flops=flops, transcendentals=0, bytes_accessed=bytes_accessed),
    )(*args)

    out = out.reshape(N, H, W, Coutp)
    return out[..., :Cout] if Coutp != Cout else out


def bottleneck_forward(x_nchw, kp):
    """PyTorch-layout convenience wrapper (NCHW in / NCHW out)."""
    x = jnp.transpose(x_nchw, (0, 2, 3, 1))
    return jnp.transpose(bottleneck_forward_nhwc(x, kp), (0, 3, 1, 2))


def init_params(key, inplanes, planes):
    """Deterministic synthetic Bottleneck parameters; BatchNorm folded to
    per-channel scale/bias (eval-mode semantics, matching the PyTorch module)."""
    ks = jax.random.split(key, 9)
    eps = 1e-5
    cout = planes * 4

    def bn_fold(kg, kb, c):
        gamma = 1.0 + 0.1 * jax.random.normal(kg, (c,), jnp.float32)
        beta = 0.1 * jax.random.normal(kb, (c,), jnp.float32)
        rmean = 0.05 * jax.random.normal(jax.random.fold_in(kg, 7), (c,), jnp.float32)
        rvar = jax.random.uniform(jax.random.fold_in(kb, 7), (c,), jnp.float32,
                                  0.5, 1.5)
        scale = gamma / jnp.sqrt(rvar + eps)
        return scale, beta - rmean * scale

    w1 = 0.1 * jax.random.normal(ks[0], (inplanes, planes), jnp.float32)
    w2 = 0.1 * jax.random.normal(ks[1], (3, 3, planes, planes), jnp.float32)
    w3 = 0.1 * jax.random.normal(ks[2], (planes, cout), jnp.float32)
    s1, b1 = bn_fold(ks[3], ks[4], planes)
    s2, b2 = bn_fold(ks[5], ks[6], planes)
    s3, b3 = bn_fold(ks[7], ks[8], cout)
    return dict(w1=w1, s1=s1, b1=b1, w2=w2, s2=s2, b2=b2, w3=w3, s3=s3, b3=b3)


def reference_forward_nhwc(x, p):
    """Plain-JAX NHWC reference mirroring the kernel numerics
    (bf16 conv operands, f32 accumulation and epilogue)."""
    dn = ("NHWC", "HWIO", "NHWC")
    bf = jnp.bfloat16
    Cin, P = p["w1"].shape
    Cout = p["w3"].shape[1]

    def conv(inp, w, padding):
        return lax.conv_general_dilated(
            inp.astype(bf), w.astype(bf), (1, 1), padding,
            dimension_numbers=dn, preferred_element_type=jnp.float32)

    o = conv(x, p["w1"].reshape(1, 1, Cin, P), "VALID")
    o = jnp.maximum(o * p["s1"] + p["b1"], 0.0)
    o = conv(o, p["w2"], ((1, 1), (1, 1)))
    o = jnp.maximum(o * p["s2"] + p["b2"], 0.0)
    o = conv(o, p["w3"].reshape(1, 1, P, Cout), "VALID")
    o = jnp.maximum(o * p["s3"] + p["b3"] + x, 0.0)
    return o


if __name__ == "__main__":
    planes = 4
    inplanes = planes * 4        # 16 (required so the residual adds without downsample)
    N, H, W = 2, 16, 16

    key = jax.random.PRNGKey(0)
    kx, kp = jax.random.split(key)
    x = jax.random.normal(kx, (N, H, W, inplanes), jnp.float32)   # NHWC input
    # Activations are carried in bf16; pre-round so the f32 reference sees the
    # same input values as the kernel.
    x = x.astype(jnp.bfloat16).astype(jnp.float32)

    raw_params = init_params(kp, inplanes, planes)
    kparams = prepare_kernel_params(raw_params)

    out = jax.block_until_ready(bottleneck_forward_nhwc(x, kparams))
    ref = jax.block_until_ready(reference_forward_nhwc(x, raw_params))

    assert out.shape == (N, H, W, inplanes) and out.dtype == jnp.bfloat16
    out_f32 = out.astype(jnp.float32)
    max_err = jnp.max(jnp.abs(out_f32 - ref))
    assert jnp.allclose(out_f32, ref, atol=2e-2, rtol=2e-2), f"mismatch vs reference: {max_err}"

    print("KERNEL_OK")
</pallas_src>

<mosaic_0001>
module attributes {stable_mosaic.version = 11 : i64} {
  func.func @bottleneck_kernel(%arg0: i32, %arg1: memref<1x256x128xbf16, #tpu.memory_space<vmem>>, %arg2: memref<128x128xbf16, #tpu.memory_space<vmem>>, %arg3: memref<1x128xf32, #tpu.memory_space<vmem>>, %arg4: memref<1x128xf32, #tpu.memory_space<vmem>>, %arg5: memref<9x128x128xbf16, #tpu.memory_space<vmem>>, %arg6: memref<1x128xf32, #tpu.memory_space<vmem>>, %arg7: memref<1x128xf32, #tpu.memory_space<vmem>>, %arg8: memref<128x128xbf16, #tpu.memory_space<vmem>>, %arg9: memref<1x128xf32, #tpu.memory_space<vmem>>, %arg10: memref<1x128xf32, #tpu.memory_space<vmem>>, %arg11: memref<1x256x128xbf16, #tpu.memory_space<vmem>>, %arg12: memref<18x32x128xbf16, #tpu.memory_space<vmem>>) attributes {dimension_semantics = [#tpu.dimension_semantics<parallel>], iteration_bounds = array<i64: 2>, scalar_prefetch = 0 : i64, scratch_operands = 1 : i64, tpu.core_type = #tpu.core_type<tc>, window_params = [{transform_indices = @transform_0, window_bounds = array<i64: 1, 256, 128>}, {pipeline_mode = #tpu.pipeline_mode<synchronous>, transform_indices = @transform_1, window_bounds = array<i64: 128, 128>}, {pipeline_mode = #tpu.pipeline_mode<synchronous>, transform_indices = @transform_2, window_bounds = array<i64: 1, 128>}, {pipeline_mode = #tpu.pipeline_mode<synchronous>, transform_indices = @transform_3, window_bounds = array<i64: 1, 128>}, {pipeline_mode = #tpu.pipeline_mode<synchronous>, transform_indices = @transform_4, window_bounds = array<i64: 9, 128, 128>}, {pipeline_mode = #tpu.pipeline_mode<synchronous>, transform_indices = @transform_5, window_bounds = array<i64: 1, 128>}, {pipeline_mode = #tpu.pipeline_mode<synchronous>, transform_indices = @transform_6, window_bounds = array<i64: 1, 128>}, {pipeline_mode = #tpu.pipeline_mode<synchronous>, transform_indices = @transform_7, window_bounds = array<i64: 128, 128>}, {pipeline_mode = #tpu.pipeline_mode<synchronous>, transform_indices = @transform_8, window_bounds = array<i64: 1, 128>}, {pipeline_mode = #tpu.pipeline_mode<synchronous>, transform_indices = @transform_9, window_bounds = array<i64: 1, 128>}, {transform_indices = @transform_10, window_bounds = array<i64: 1, 256, 128>}]} {
    %c0 = arith.constant 0 : index
    %c0_0 = arith.constant 0 : index
    %c0_1 = arith.constant 0 : index
    %0 = vector.load %arg1[%c0, %c0_0, %c0_1] : memref<1x256x128xbf16, #tpu.memory_space<vmem>>, vector<1x256x128xbf16>
    %1 = vector.shape_cast %0 : vector<1x256x128xbf16> to vector<256x128xbf16>
    %c0_2 = arith.constant 0 : index
    %c0_3 = arith.constant 0 : index
    %2 = vector.load %arg2[%c0_2, %c0_3] : memref<128x128xbf16, #tpu.memory_space<vmem>>, vector<128x128xbf16>
    %cst = arith.constant dense<0.000000e+00> : vector<256x128xf32>
    %3 = tpu.matmul %1, %2, %cst {dimension_numbers = #tpu.dot_dimension_numbers<[1], [0], [0], [1], [0, 0, 1, 1], [], []>} : vector<256x128xbf16>, vector<128x128xbf16>, vector<256x128xf32> -> vector<256x128xf32>
    %c0_4 = arith.constant 0 : index
    %c0_5 = arith.constant 0 : index
    %4 = vector.load %arg3[%c0_4, %c0_5] : memref<1x128xf32, #tpu.memory_space<vmem>>, vector<1x128xf32>
    %5 = vector.broadcast %4 : vector<1x128xf32> to vector<256x128xf32>
    %6 = arith.mulf %3, %5 : vector<256x128xf32>
    %c0_6 = arith.constant 0 : index
    %c0_7 = arith.constant 0 : index
    %7 = vector.load %arg4[%c0_6, %c0_7] : memref<1x128xf32, #tpu.memory_space<vmem>>, vector<1x128xf32>
    %8 = vector.broadcast %7 : vector<1x128xf32> to vector<256x128xf32>
    %9 = arith.addf %6, %8 : vector<256x128xf32>
    %cst_8 = arith.constant 0.000000e+00 : f32
    %10 = vector.broadcast %cst_8 : f32 to vector<256x128xf32>
    %11 = arith.maximumf %9, %10 : vector<256x128xf32>
    %cst_9 = arith.constant 0.000000e+00 : bf16
    %12 = vector.broadcast %cst_9 : bf16 to vector<1x32x128xbf16>
    %cst_10 = arith.constant 0.000000e+00 : bf16
    %13 = vector.broadcast %cst_10 : bf16 to vector<16x1x128xbf16>
    %c0_11 = arith.constant 0 : index
    %c0_12 = arith.constant 0 : index
    %c0_13 = arith.constant 0 : index
    %14 = vector.load %arg12[%c0_11, %c0_12, %c0_13] : memref<18x32x128xbf16, #tpu.memory_space<vmem>>, vector<1x32x128xbf16>
    tpu.vector_store %arg12[%c0_11, %c0_12, %c0_13], %12 {strides = array<i32>} : memref<18x32x128xbf16, #tpu.memory_space<vmem>>, vector<1x32x128xbf16>,
    %c17 = arith.constant 17 : index
    %c0_14 = arith.constant 0 : index
    %c0_15 = arith.constant 0 : index
    %15 = vector.load %arg12[%c17, %c0_14, %c0_15] : memref<18x32x128xbf16, #tpu.memory_space<vmem>>, vector<1x32x128xbf16>
    tpu.vector_store %arg12[%c17, %c0_14, %c0_15], %12 {strides = array<i32>} : memref<18x32x128xbf16, #tpu.memory_space<vmem>>, vector<1x32x128xbf16>,
    %c1 = arith.constant 1 : index
    %c7 = arith.constant 7 : index
    %c0_16 = arith.constant 0 : index
    %16 = vector.load %arg12[%c1, %c7, %c0_16] : memref<18x32x128xbf16, #tpu.memory_space<vmem>>, vector<16x1x128xbf16>
    tpu.vector_store %arg12[%c1, %c7, %c0_16], %13 {strides = array<i32>} : memref<18x32x128xbf16, #tpu.memory_space<vmem>>, vector<16x1x128xbf16>,
    %c1_17 = arith.constant 1 : index
    %c24 = arith.constant 24 : index
    %c0_18 = arith.constant 0 : index
    %17 = vector.load %arg12[%c1_17, %c24, %c0_18] : memref<18x32x128xbf16, #tpu.memory_space<vmem>>, vector<16x1x128xbf16>
    tpu.vector_store %arg12[%c1_17, %c24, %c0_18], %13 {strides = array<i32>} : memref<18x32x128xbf16, #tpu.memory_space<vmem>>, vector<16x1x128xbf16>,
    %18 = arith.truncf %11 : vector<256x128xf32> to vector<256x128xbf16>
    %19 = vector.shape_cast %18 : vector<256x128xbf16> to vector<16x16x128xbf16>
    %c1_19 = arith.constant 1 : index
    %c8 = arith.constant 8 : index
    %c0_20 = arith.constant 0 : index
    %20 = vector.load %arg12[%c1_19, %c8, %c0_20] : memref<18x32x128xbf16, #tpu.memory_space<vmem>>, vector<16x16x128xbf16>
    tpu.vector_store %arg12[%c1_19, %c8, %c0_20], %19 {strides = array<i32>} : memref<18x32x128xbf16, #tpu.memory_space<vmem>>, vector<16x16x128xbf16>,
    %c0_21 = arith.constant 0 : index
    %c7_22 = arith.constant 7 : index
    %c0_23 = arith.constant 0 : index
    %21 = vector.load %arg12[%c0_21, %c7_22, %c0_23] : memref<18x32x128xbf16, #tpu.memory_space<vmem>>, vector<16x16x128xbf16>
    %22 = vector.shape_cast %21 : vector<16x16x128xbf16> to vector<256x128xbf16>
    %c0_24 = arith.constant 0 : index
    %c0_25 = arith.constant 0 : index
    %c0_26 = arith.constant 0 : index
    %23 = vector.load %arg5[%c0_24, %c0_25, %c0_26] : memref<9x128x128xbf16, #tpu.memory_space<vmem>>, vector<1x128x128xbf16>
    %24 = vector.shape_cast %23 : vector<1x128x128xbf16> to vector<128x128xbf16>
    %cst_27 = arith.constant dense<0.000000e+00> : vector<256x128xf32>
    %25 = tpu.matmul %22, %24, %cst_27 {dimension_numbers = #tpu.dot_dimension_numbers<[1], [0], [0], [1], [0, 0, 1, 1], [], []>} : vector<256x128xbf16>, vector<128x128xbf16>, vector<256x128xf32> -> vector<256x128xf32>
    %c0_28 = arith.constant 0 : index
    %c8_29 = arith.constant 8 : index
    %c0_30 = arith.constant 0 : index
    %26 = vector.load %arg12[%c0_28, %c8_29, %c0_30] : memref<18x32x128xbf16, #tpu.memory_space<vmem>>, vector<16x16x128xbf16>
    %27 = vector.shape_cast %26 : vector<16x16x128xbf16> to vector<256x128xbf16>
    %c1_31 = arith.constant 1 : index
    %c0_32 = arith.constant 0 : index
    %c0_33 = arith.constant 0 : index
    %28 = vector.load %arg5[%c1_31, %c0_32, %c0_33] : memref<9x128x128xbf16, #tpu.memory_space<vmem>>, vector<1x128x128xbf16>
    %29 = vector.shape_cast %28 : vector<1x128x128xbf16> to vector<128x128xbf16>
    %cst_34 = arith.constant dense<0.000000e+00> : vector<256x128xf32>
    %30 = tpu.matmul %27, %29, %cst_34 {dimension_numbers = #tpu.dot_dimension_numbers<[1], [0], [0], [1], [0, 0, 1, 1], [], []>} : vector<256x128xbf16>, vector<128x128xbf16>, vector<256x128xf32> -> vector<256x128xf32>
    %31 = arith.addf %25, %30 : vector<256x128xf32>
    %c0_35 = arith.constant 0 : index
    %c9 = arith.constant 9 : index
    %c0_36 = arith.constant 0 : index
    %32 = vector.load %arg12[%c0_35, %c9, %c0_36] : memref<18x32x128xbf16, #tpu.memory_space<vmem>>, vector<16x16x128xbf16>
    %33 = vector.shape_cast %32 : vector<16x16x128xbf16> to vector<256x128xbf16>
    %c2 = arith.constant 2 : index
    %c0_37 = arith.constant 0 : index
    %c0_38 = arith.constant 0 : index
    %34 = vector.load %arg5[%c2, %c0_37, %c0_38] : memref<9x128x128xbf16, #tpu.memory_space<vmem>>, vector<1x128x128xbf16>
    %35 = vector.shape_cast %34 : vector<1x128x128xbf16> to vector<128x128xbf16>
    %cst_39 = arith.constant dense<0.000000e+00> : vector<256x128xf32>
    %36 = tpu.matmul %33, %35, %cst_39 {dimension_numbers = #tpu.dot_dimension_numbers<[1], [0], [0], [1], [0, 0, 1, 1], [], []>} : vector<256x128xbf16>, vector<128x128xbf16>, vector<256x128xf32> -> vector<256x128xf32>
    %37 = arith.addf %31, %36 : vector<256x128xf32>
    %c1_40 = arith.constant 1 : index
    %c7_41 = arith.constant 7 : index
    %c0_42 = arith.constant 0 : index
    %38 = vector.load %arg12[%c1_40, %c7_41, %c0_42] : memref<18x32x128xbf16, #tpu.memory_space<vmem>>, vector<16x16x128xbf16>
    %39 = vector.shape_cast %38 : vector<16x16x128xbf16> to vector<256x128xbf16>
    %c3 = arith.constant 3 : index
    %c0_43 = arith.constant 0 : index
    %c0_44 = arith.constant 0 : index
    %40 = vector.load %arg5[%c3, %c0_43, %c0_44] : memref<9x128x128xbf16, #tpu.memory_space<vmem>>, vector<1x128x128xbf16>
    %41 = vector.shape_cast %40 : vector<1x128x128xbf16> to vector<128x128xbf16>
    %cst_45 = arith.constant dense<0.000000e+00> : vector<256x128xf32>
    %42 = tpu.matmul %39, %41, %cst_45 {dimension_numbers = #tpu.dot_dimension_numbers<[1], [0], [0], [1], [0, 0, 1, 1], [], []>} : vector<256x128xbf16>, vector<128x128xbf16>, vector<256x128xf32> -> vector<256x128xf32>
    %43 = arith.addf %37, %42 : vector<256x128xf32>
    %c1_46 = arith.constant 1 : index
    %c8_47 = arith.constant 8 : index
    %c0_48 = arith.constant 0 : index
    %44 = vector.load %arg12[%c1_46, %c8_47, %c0_48] : memref<18x32x128xbf16, #tpu.memory_space<vmem>>, vector<16x16x128xbf16>
    %45 = vector.shape_cast %44 : vector<16x16x128xbf16> to vector<256x128xbf16>
    %c4 = arith.constant 4 : index
    %c0_49 = arith.constant 0 : index
    %c0_50 = arith.constant 0 : index
    %46 = vector.load %arg5[%c4, %c0_49, %c0_50] : memref<9x128x128xbf16, #tpu.memory_space<vmem>>, vector<1x128x128xbf16>
    %47 = vector.shape_cast %46 : vector<1x128x128xbf16> to vector<128x128xbf16>
    %cst_51 = arith.constant dense<0.000000e+00> : vector<256x128xf32>
    %48 = tpu.matmul %45, %47, %cst_51 {dimension_numbers = #tpu.dot_dimension_numbers<[1], [0], [0], [1], [0, 0, 1, 1], [], []>} : vector<256x128xbf16>, vector<128x128xbf16>, vector<256x128xf32> -> vector<256x128xf32>
    %49 = arith.addf %43, %48 : vector<256x128xf32>
    %c1_52 = arith.constant 1 : index
    %c9_53 = arith.constant 9 : index
    %c0_54 = arith.constant 0 : index
    %50 = vector.load %arg12[%c1_52, %c9_53, %c0_54] : memref<18x32x128xbf16, #tpu.memory_space<vmem>>, vector<16x16x128xbf16>
    %51 = vector.shape_cast %50 : vector<16x16x128xbf16> to vector<256x128xbf16>
    %c5 = arith.constant 5 : index
    %c0_55 = arith.constant 0 : index
    %c0_56 = arith.constant 0 : index
    %52 = vector.load %arg5[%c5, %c0_55, %c0_56] : memref<9x128x128xbf16, #tpu.memory_space<vmem>>, vector<1x128x128xbf16>
    %53 = vector.shape_cast %52 : vector<1x128x128xbf16> to vector<128x128xbf16>
    %cst_57 = arith.constant dense<0.000000e+00> : vector<256x128xf32>
    %54 = tpu.matmul %51, %53, %cst_57 {dimension_numbers = #tpu.dot_dimension_numbers<[1], [0], [0], [1], [0, 0, 1, 1], [], []>} : vector<256x128xbf16>, vector<128x128xbf16>, vector<256x128xf32> -> vector<256x128xf32>
    %55 = arith.addf %49, %54 : vector<256x128xf32>
    %c2_58 = arith.constant 2 : index
    %c7_59 = arith.constant 7 : index
    %c0_60 = arith.constant 0 : index
    %56 = vector.load %arg12[%c2_58, %c7_59, %c0_60] : memref<18x32x128xbf16, #tpu.memory_space<vmem>>, vector<16x16x128xbf16>
    %57 = vector.shape_cast %56 : vector<16x16x128xbf16> to vector<256x128xbf16>
    %c6 = arith.constant 6 : index
    %c0_61 = arith.constant 0 : index
    %c0_62 = arith.constant 0 : index
    %58 = vector.load %arg5[%c6, %c0_61, %c0_62] : memref<9x128x128xbf16, #tpu.memory_space<vmem>>, vector<1x128x128xbf16>
    %59 = vector.shape_cast %58 : vector<1x128x128xbf16> to vector<128x128xbf16>
    %cst_63 = arith.constant dense<0.000000e+00> : vector<256x128xf32>
    %60 = tpu.matmul %57, %59, %cst_63 {dimension_numbers = #tpu.dot_dimension_numbers<[1], [0], [0], [1], [0, 0, 1, 1], [], []>} : vector<256x128xbf16>, vector<128x128xbf16>, vector<256x128xf32> -> vector<256x128xf32>
    %61 = arith.addf %55, %60 : vector<256x128xf32>
    %c2_64 = arith.constant 2 : index
    %c8_65 = arith.constant 8 : index
    %c0_66 = arith.constant 0 : index
    %62 = vector.load %arg12[%c2_64, %c8_65, %c0_66] : memref<18x32x128xbf16, #tpu.memory_space<vmem>>, vector<16x16x128xbf16>
    %63 = vector.shape_cast %62 : vector<16x16x128xbf16> to vector<256x128xbf16>
    %c7_67 = arith.constant 7 : index
    %c0_68 = arith.constant 0 : index
    %c0_69 = arith.constant 0 : index
    %64 = vector.load %arg5[%c7_67, %c0_68, %c0_69] : memref<9x128x128xbf16, #tpu.memory_space<vmem>>, vector<1x128x128xbf16>
    %65 = vector.shape_cast %64 : vector<1x128x128xbf16> to vector<128x128xbf16>
    %cst_70 = arith.constant dense<0.000000e+00> : vector<256x128xf32>
    %66 = tpu.matmul %63, %65, %cst_70 {dimension_numbers = #tpu.dot_dimension_numbers<[1], [0], [0], [1], [0, 0, 1, 1], [], []>} : vector<256x128xbf16>, vector<128x128xbf16>, vector<256x128xf32> -> vector<256x128xf32>
    %67 = arith.addf %61, %66 : vector<256x128xf32>
    %c2_71 = arith.constant 2 : index
    %c9_72 = arith.constant 9 : index
    %c0_73 = arith.constant 0 : index
    %68 = vector.load %arg12[%c2_71, %c9_72, %c0_73] : memref<18x32x128xbf16, #tpu.memory_space<vmem>>, vector<16x16x128xbf16>
    %69 = vector.shape_cast %68 : vector<16x16x128xbf16> to vector<256x128xbf16>
    %c8_74 = arith.constant 8 : index
    %c0_75 = arith.constant 0 : index
    %c0_76 = arith.constant 0 : index
    %70 = vector.load %arg5[%c8_74, %c0_75, %c0_76] : memref<9x128x128xbf16, #tpu.memory_space<vmem>>, vector<1x128x128xbf16>
    %71 = vector.shape_cast %70 : vector<1x128x128xbf16> to vector<128x128xbf16>
    %cst_77 = arith.constant dense<0.000000e+00> : vector<256x128xf32>
    %72 = tpu.matmul %69, %71, %cst_77 {dimension_numbers = #tpu.dot_dimension_numbers<[1], [0], [0], [1], [0, 0, 1, 1], [], []>} : vector<256x128xbf16>, vector<128x128xbf16>, vector<256x128xf32> -> vector<256x128xf32>
    %73 = arith.addf %67, %72 : vector<256x128xf32>
    %c0_78 = arith.constant 0 : index
    %c0_79 = arith.constant 0 : index
    %74 = vector.load %arg6[%c0_78, %c0_79] : memref<1x128xf32, #tpu.memory_space<vmem>>, vector<1x128xf32>
    %75 = vector.broadcast %74 : vector<1x128xf32> to vector<256x128xf32>
    %76 = arith.mulf %73, %75 : vector<256x128xf32>
    %c0_80 = arith.constant 0 : index
    %c0_81 = arith.constant 0 : index
    %77 = vector.load %arg7[%c0_80, %c0_81] : memref<1x128xf32, #tpu.memory_space<vmem>>, vector<1x128xf32>
    %78 = vector.broadcast %77 : vector<1x128xf32> to vector<256x128xf32>
    %79 = arith.addf %76, %78 : vector<256x128xf32>
    %cst_82 = arith.constant 0.000000e+00 : f32
    %80 = vector.broadcast %cst_82 : f32 to vector<256x128xf32>
    %81 = arith.maximumf %79, %80 : vector<256x128xf32>
    %82 = arith.truncf %81 : vector<256x128xf32> to vector<256x128xbf16>
    %c0_83 = arith.constant 0 : index
    %c0_84 = arith.constant 0 : index
    %83 = vector.load %arg8[%c0_83, %c0_84] : memref<128x128xbf16, #tpu.memory_space<vmem>>, vector<128x128xbf16>
    %cst_85 = arith.constant dense<0.000000e+00> : vector<256x128xf32>
    %84 = tpu.matmul %82, %83, %cst_85 {dimension_numbers = #tpu.dot_dimension_numbers<[1], [0], [0], [1], [0, 0, 1, 1], [], []>} : vector<256x128xbf16>, vector<128x128xbf16>, vector<256x128xf32> -> vector<256x128xf32>
    %c0_86 = arith.constant 0 : index
    %c0_87 = arith.constant 0 : index
    %85 = vector.load %arg9[%c0_86, %c0_87] : memref<1x128xf32, #tpu.memory_space<vmem>>, vector<1x128xf32>
    %86 = vector.broadcast %85 : vector<1x128xf32> to vector<256x128xf32>
    %87 = arith.mulf %84, %86 : vector<256x128xf32>
    %c0_88 = arith.constant 0 : index
    %c0_89 = arith.constant 0 : index
    %88 = vector.load %arg10[%c0_88, %c0_89] : memref<1x128xf32, #tpu.memory_space<vmem>>, vector<1x128xf32>
    %89 = vector.broadcast %88 : vector<1x128xf32> to vector<256x128xf32>
    %90 = arith.addf %87, %89 : vector<256x128xf32>
    %c0_90 = arith.constant 0 : index
    %c0_91 = arith.constant 0 : index
    %c0_92 = arith.constant 0 : index
    %91 = vector.load %arg1[%c0_90, %c0_91, %c0_92] : memref<1x256x128xbf16, #tpu.memory_space<vmem>>, vector<1x256x128xbf16>
    %92 = vector.shape_cast %91 : vector<1x256x128xbf16> to vector<256x128xbf16>
    %93 = arith.extf %92 : vector<256x128xbf16> to vector<256x128xf32>
    %94 = arith.addf %90, %93 : vector<256x128xf32>
    %cst_93 = arith.constant 0.000000e+00 : f32
    %95 = vector.broadcast %cst_93 : f32 to vector<256x128xf32>
    %96 = arith.maximumf %94, %95 : vector<256x128xf32>
    %97 = arith.truncf %96 : vector<256x128xf32> to vector<256x128xbf16>
    %c0_94 = arith.constant 0 : index
    %c0_95 = arith.constant 0 : index
    %c0_96 = arith.constant 0 : index
    %98 = vector.load %arg11[%c0_94, %c0_95, %c0_96] : memref<1x256x128xbf16, #tpu.memory_space<vmem>>, vector<1x256x128xbf16>
    %99 = vector.shape_cast %98 : vector<1x256x128xbf16> to vector<256x128xbf16>
    %100 = vector.shape_cast %97 : vector<256x128xbf16> to vector<1x256x128xbf16>
    tpu.vector_store %arg11[%c0_94, %c0_95, %c0_96], %100 {strides = array<i32>} : memref<1x256x128xbf16, #tpu.memory_space<vmem>>, vector<1x256x128xbf16>,
    return
  }
  func.func @transform_0(%arg0: i32) -> (i32, i32, i32) {
    %c0_i32 = arith.constant 0 : i32
    %c0_i32_0 = arith.constant 0 : i32
    %c0_i32_1 = arith.constant 0 : i32
    return %arg0, %c0_i32, %c0_i32_0 : i32, i32, i32
  }
  func.func @transform_1(%arg0: i32) -> (i32, i32) {
    %c0_i32 = arith.constant 0 : i32
    %c0_i32_0 = arith.constant 0 : i32
    %c0_i32_1 = arith.constant 0 : i32
    return %c0_i32, %c0_i32_0 : i32, i32
  }
  func.func @transform_2(%arg0: i32) -> (i32, i32) {
    %c0_i32 = arith.constant 0 : i32
    %c0_i32_0 = arith.constant 0 : i32
    %c0_i32_1 = arith.constant 0 : i32
    return %c0_i32, %c0_i32_0 : i32, i32
  }
  func.func @transform_3(%arg0: i32) -> (i32, i32) {
    %c0_i32 = arith.constant 0 : i32
    %c0_i32_0 = arith.constant 0 : i32
    %c0_i32_1 = arith.constant 0 : i32
    return %c0_i32, %c0_i32_0 : i32, i32
  }
  func.func @transform_4(%arg0: i32) -> (i32, i32, i32) {
    %c0_i32 = arith.constant 0 : i32
    %c0_i32_0 = arith.constant 0 : i32
    %c0_i32_1 = arith.constant 0 : i32
    %c0_i32_2 = arith.constant 0 : i32
    return %c0_i32, %c0_i32_0, %c0_i32_1 : i32, i32, i32
  }
  func.func @transform_5(%arg0: i32) -> (i32, i32) {
    %c0_i32 = arith.constant 0 : i32
    %c0_i32_0 = arith.constant 0 : i32
    %c0_i32_1 = arith.constant 0 : i32
    return %c0_i32, %c0_i32_0 : i32, i32
  }
  func.func @transform_6(%arg0: i32) -> (i32, i32) {
    %c0_i32 = arith.constant 0 : i32
    %c0_i32_0 = arith.constant 0 : i32
    %c0_i32_1 = arith.constant 0 : i32
    return %c0_i32, %c0_i32_0 : i32, i32
  }
  func.func @transform_7(%arg0: i32) -> (i32, i32) {
    %c0_i32 = arith.constant 0 : i32
    %c0_i32_0 = arith.constant 0 : i32
    %c0_i32_1 = arith.constant 0 : i32
    return %c0_i32, %c0_i32_0 : i32, i32
  }
  func.func @transform_8(%arg0: i32) -> (i32, i32) {
    %c0_i32 = arith.constant 0 : i32
    %c0_i32_0 = arith.constant 0 : i32
    %c0_i32_1 = arith.constant 0 : i32
    return %c0_i32, %c0_i32_0 : i32, i32
  }
  func.func @transform_9(%arg0: i32) -> (i32, i32) {
    %c0_i32 = arith.constant 0 : i32
    %c0_i32_0 = arith.constant 0 : i32
    %c0_i32_1 = arith.constant 0 : i32
    return %c0_i32, %c0_i32_0 : i32, i32
  }
  func.func @transform_10(%arg0: i32) -> (i32, i32, i32) {
    %c0_i32 = arith.constant 0 : i32
    %c0_i32_0 = arith.constant 0 : i32
    %c0_i32_1 = arith.constant 0 : i32
    return %arg0, %c0_i32, %c0_i32_0 : i32, i32, i32
  }
}

</mosaic_0001>

<bundles_post_ra>
// kernel: tpu_custom_call.1
= control target key start
LH: loop header
LB: loop body
LE: loop exit
PB: predicated region body
PF: predicated region fallthrough
CT: control target
= control target key end

     0   :  { %s9762_s0 = inlined_call_operand.hbm [shape: bf16[2,256,128], index: 0, kind: input, shape index: {}]   ;;  %s9763_s1 = inlined_call_operand.hbm [shape: bf16[128,128], index: 1, kind: input, shape index: {}]   ;;  %s9764_s2 = inlined_call_operand.vmem [shape: f32[1,128], index: 2, kind: input, shape index: {}]   ;;  %s9765_s3 = inlined_call_operand.vmem [shape: f32[1,128], index: 3, kind: input, shape index: {}]   ;;  %s9766_s4 = inlined_call_operand.hbm [shape: bf16[9,128,128], index: 4, kind: input, shape index: {}]   ;;  %s9767_s5 = inlined_call_operand.vmem [shape: f32[1,128], index: 5, kind: input, shape index: {}]   ;;  %s9768_s6 = inlined_call_operand.vmem [shape: f32[1,128], index: 6, kind: input, shape index: {}]   ;;  %s9769_s7 = inlined_call_operand.hbm [shape: bf16[128,128], index: 7, kind: input, shape index: {}]   ;;  %s9770_s8 = inlined_call_operand.vmem [shape: f32[1,128], index: 8, kind: input, shape index: {}]   ;;  %s9771_s9 = inlined_call_operand.vmem [shape: f32[1,128], index: 9, kind: input, shape index: {}]   ;;  %s9772_s10 = inlined_call_operand.hbm [shape: bf16[2,256,128], index: 10, kind: output, shape index: {}]  }
   0x1   :  { %9779 = sst [smem:[#allocation18_spill]] %s9771_s9 }
   0x2   :  { %9780 = sst [smem:[#allocation19_spill]] %s9772_s10 }
   0x3   :  { %15 = vsyncpa [#allocation4], 0 }
   0x4   :  { %17 = vsyncpa [#allocation4 + $0x1], 0 }
   0x5   :  { %18 = vsyncpa [#allocation7], 0 }
   0x6   :  { %19 = vsyncpa [#allocation10], 0 }
   0x7   :  { %20 = vsyncpa [#allocation5], 0 }
   0x8   :  { %22 = vsyncpa [#allocation5 + $0x1], 0  ;;  %s8302_s13 = smov 0   ;;  %s8304_s14 = smov 0  }
   0x9   :  { %s8306_s15 = smov 0   ;;  %s8308_s16 = smov 0  }
   0xa LB: > { %9781 = sst [smem:[#allocation16_spill]] %s8223_s13  ;;  %s8323_s17 = sadd.s32 4294967295, %s8235_s16   ;;  %s8235_s16 = sphi %s8308_s16, %s9812_s16   ;;  %s8231_s15 = sphi %s8306_s15, %s9811_s15   ;;  %s8227_s14 = sphi %s8304_s14, %s9810_s14   ;;  %s8223_s13 = sphi %s8302_s13, %s9809_s13  }
   0xb   : > { %s6391_s18 = sadd.s32 4294967294, %s8235_s16   ;;  %p48_p0 = scmp.ne.s32.totalorder %s8227_s14, %s8223_s13 }
   0xc   : > { %p9773_p1 = scmp.eq.s32.totalorder %s8323_s17, 0  ;;  %p267_p3 = scmp.eq.s32.totalorder %s6391_s18, 1 }
   0xd   : > { %p6392_p5 = scmp.ge.s32.totalorder %s8235_s16, 1  ;;  %p274_p7 = scmp.lt.s32.totalorder %s8235_s16, 3 }
   0xe   : > { %p8332_p4 = por %p9773_p1, %p48_p0  ;;  %p8337_p6 = por %p267_p3, %p48_p0 }
   0xf   : > { %p8342_p8 = pnand %p6392_p5, %p274_p7  ;;  %s8237_s22 = smov [#allocation6]  }
  0x10   : > { %s9782_s19 = scalar_select %p8332_p4, 1, 0 }
  0x11   : > { %s9783_s20 = scalar_select %p8337_p6, 1, 0 }
  0x12   : > { %s9785_s21 = scalar_select %p8342_p8, 1, 0 }
  0x13   : > { %9784 = sst [smem:[#allocation17_spill]] %s9783_s20  ;;  %s286_s23 = sshll.u32 %s8237_s22, 4  ;;  %s8346_s23 = int_to_ptr.vmem [resolvable:$true] %s286_s23 }
  0x14   : > { %p7841_p9 = pneg %p8342_p8  ;;  %s8238_s25 = smov [#allocation8]  }
  0x15   : > { %s305_s26 = sshll.u32 %s8238_s25, 4  ;;  %s8239_s27 = smov [#allocation9]   ;;  %s8357_s26 = int_to_ptr.vmem [resolvable:$true] %s305_s26 }
  0x16   : > { %p8353_p11 = pnand %p7841_p9, %p9773_p1  ;;  %s8359_s28 = sshll.u32 %s8239_s27, 4  ;;  %s325_s28 = int_to_ptr.vmem [resolvable:$true] %s8359_s28 }
  0x17   : > { %s8047_s11 = scalar_lea.hbm %s9763_s1, 1024 }
  0x18   : > { %p8048_p12 = scmp.ne.s32.totalorder %s9763_s1, %s8047_s11  ;;  %p8369_p13 = pneg %p8353_p11 }
  0x19   : > { %p8054_p5 = scmp.lt.u32.totalorder %s8047_s11, %s9763_s1 }
  0x1a   : > { %p8050_p0 = pnand %p8369_p13, %p8048_p12 }
  0x1c   : > { %p8051_p3 = pneg %p8050_p0 }
  0x1e   : > { %p8056_p7 = pnand %p8054_p5, %p8051_p3 }
  0x20   : > { %8059 = shalt.err (!%p8056_p7)
}
  0x21   : > { %s8060_s29 = scalar_lea.vmem %s8346_s23, 1024  ;;  %p8068_p2 = scmp.lt.s32.totalorder %s8346_s23, %s8346_s23 }
  0x22   : > { %p8061_p9 = scmp.ne.s32.totalorder %s8346_s23, %s8060_s29  ;;  %p8069_p6 = scmp.lt.s32.totalorder %s8060_s29, %s8060_s29 }
  0x24   : > { %p8063_p10 = pnand %p8061_p9, %p8369_p13  ;;  %p8070_p12 = por %p8069_p6, %p8068_p2 }
  0x26   : > { %p8064_p1 = pneg %p8063_p10 }
  0x28   : > { %p8071_p0 = pnand %p8070_p12, %p8064_p1 }
  0x2a   : > { %8074 = shalt.err (!%p8071_p0)
}
  0x2b   : > { %s8240_s30 = smov 64   ;;  %s8241_s11 = smov 4  }
  0x2c   : > { %7844 = dma.hbm_to_vmem [thread:$0]  (!%p8353_p11), %s9763_s1, 1024, %s8346_s23, [#allocation7], %s8240_s30, %s8240_s30, %s8241_s11  }
  0x2d   : > { %s8075_s29 = scalar_lea.hbm %s9766_s4, 9216 }
  0x2e   : > { %p8076_p1 = scmp.ne.s32.totalorder %s9766_s4, %s8075_s29  ;;  %p8082_p10 = scmp.lt.u32.totalorder %s8075_s29, %s9766_s4 }
  0x30   : > { %p8078_p2 = pnand %p8076_p1, %p8369_p13 }
  0x32   : > { %p8079_p6 = pneg %p8078_p2 }
  0x34   : > { %p8084_p3 = pnand %p8082_p10, %p8079_p6 }
  0x36   : > { %8087 = shalt.err (!%p8084_p3)
}
  0x37   : > { %s8088_s23 = scalar_lea.vmem %s8357_s26, 9216  ;;  %p8096_p12 = scmp.lt.s32.totalorder %s8357_s26, %s8357_s26 }
  0x38   : > { %p8089_p5 = scmp.ne.s32.totalorder %s8357_s26, %s8088_s23  ;;  %p8097_p0 = scmp.lt.s32.totalorder %s8088_s23, %s8088_s23 }
  0x3a   : > { %p8091_p7 = pnand %p8089_p5, %p8369_p13  ;;  %p8098_p1 = por %p8097_p0, %p8096_p12 }
  0x3c   : > { %p8092_p9 = pneg %p8091_p7 }
  0x3e   : > { %p8099_p2 = pnand %p8098_p1, %p8092_p9 }
  0x40   : > { %8102 = shalt.err (!%p8099_p2)
}
  0x41   : > { %7847 = dma.hbm_to_vmem [thread:$0]  (!%p8353_p11), %s9766_s4, 9216, %s8357_s26, [#allocation7], %s8240_s30, %s8240_s30, %s8241_s11  }
  0x42   : > { %s8103_s12 = scalar_lea.hbm %s9769_s7, 1024 }
  0x43   : > { %p8104_p6 = scmp.ne.s32.totalorder %s9769_s7, %s8103_s12  ;;  %p8110_p5 = scmp.lt.u32.totalorder %s8103_s12, %s9769_s7 }
  0x45   : > { %p8106_p10 = pnand %p8104_p6, %p8369_p13 }
  0x47   : > { %p8107_p3 = pneg %p8106_p10 }
  0x49   : > { %p8112_p7 = pnand %p8110_p5, %p8107_p3 }
  0x4b   : > { %8115 = shalt.err (!%p8112_p7)
}
  0x4c   : > { %s8116_s23 = scalar_lea.vmem %s325_s28, 1024  ;;  %p8124_p1 = scmp.lt.s32.totalorder %s325_s28, %s325_s28 }
  0x4d   : > { %p8117_p9 = scmp.ne.s32.totalorder %s325_s28, %s8116_s23  ;;  %p8125_p2 = scmp.lt.s32.totalorder %s8116_s23, %s8116_s23 }
  0x4f   : > { %p8119_p12 = pnand %p8117_p9, %p8369_p13  ;;  %p8126_p4 = por %p8125_p2, %p8124_p1 }
  0x51   : > { %p8120_p0 = pneg %p8119_p12 }
  0x53   : > { %p8127_p8 = pnand %p8126_p4, %p8120_p0 }
  0x55   : > { %8130 = shalt.err (!%p8127_p8)
}
  0x56   : > { %7850 = dma.hbm_to_vmem [thread:$0]  (!%p8353_p11), %s9769_s7, 1024, %s325_s28, [#allocation10], %s8240_s30, %s8240_s30, %s8241_s11  }
  0x57   : > { %s8442_s22 = sadd.s32 1, %s8235_s16   ;;  %s35_s10 = sadd.s32 1, %s8231_s15 }
  0x58   : > { %s32_s24 = ssub.s32 %s8235_s16, %s8442_s22  ;;  %p42_p8 = scmp.ne.s32.totalorder %s8231_s15, %s8227_s14 }
  0x59   : > { %p33_p4 = scmp.eq.s32.totalorder %s32_s24, 0  ;;  %p43_p13 = scmp.eq.s32.totalorder %s8235_s16, 0 }
  0x5a   : > { %p7862_p6 = scmp.lt.s32.totalorder %s8235_s16, 2  ;;  %p9788_p3 = scmp.eq.s32.totalorder %s8323_s17, 1 }
  0x5b   : > { %s8452_s13 = scalar_select %p33_p4, %s8231_s15, %s35_s10  }
  0x5c   : > { %p44_p10 = por %p43_p13, %p42_p8  ;;  %p8456_p5 = por %p9788_p3, %p42_p8 }
  0x5d   : > { %s344_s12 = sand.u32 1, %s8231_s15   ;;  %s6553_s18 = sshll.u32 %s8235_s16, 11 }
  0x5e   : > { %s6397_s28 = sshll.u32 %s344_s12, 7  ;;  %s8465_s29 = scalar_lea.hbm %s9762_s0, %s6553_s18 }
  0x5f   : > { %s348_s23 = scalar_lea.vmem [#allocation3], %s6397_s28  ;;  %p8467_p11 = pnand %p7862_p6, %p44_p10 }
  0x60   : > { %s355_s26 = sshll.u32 %s348_s23, 4  ;;  %s8473_s24 = scalar_lea.sflag [#allocation4], %s344_s12  ;;  %s8471_s26 = int_to_ptr.vmem [resolvable:$true] %s355_s26 }
  0x61   : > { %s8131_s10 = scalar_lea.hbm %s8465_s29, 2048  ;;  %p8133_p9 = pneg %p8467_p11 }
  0x62   : > { %p8132_p7 = scmp.ne.s32.totalorder %s8465_s29, %s8131_s10  ;;  %s8136_s25 = scalar_lea.hbm %s9762_s0, 4096 }
  0x63   : > { %p8137_p1 = scmp.lt.u32.totalorder %s8465_s29, %s9762_s0  ;;  %p8138_p2 = scmp.lt.u32.totalorder %s8136_s25, %s8131_s10 }
  0x64   : > { %p8134_p12 = pnand %p8133_p9, %p8132_p7  ;;  %p8140_p8 = scmp.lt.u32.totalorder %s8131_s10, %s8465_s29 }
  0x65   : > { %p8139_p4 = por %p8138_p2, %p8137_p1 }
  0x66   : > { %p8135_p0 = pneg %p8134_p12 }
  0x67   : > { %p8141_p13 = por %p8140_p8, %p8139_p4 }
  0x69   : > { %p8142_p6 = pnand %p8141_p13, %p8135_p0 }
  0x6b   : > { %8145 = shalt.err (!%p8142_p6)
}
  0x6c   : > { %s8146_s12 = scalar_lea.vmem %s8471_s26, 2048  ;;  %s8242_s18 = smov [#allocation3]  }
  0x6d   : > { %p8147_p10 = scmp.ne.s32.totalorder %s8471_s26, %s8146_s12  ;;  %s8151_s28 = sshll.u32 %s8242_s18, 4  ;;  %s8152_s28 = int_to_ptr.vmem [resolvable:$false] %s8151_s28 }
  0x6e   : > { %s8153_s27 = scalar_lea.vmem %s8152_s28, 4096  ;;  %p8154_p12 = scmp.lt.s32.totalorder %s8471_s26, %s8152_s28 }
  0x6f   : > { %p8149_p3 = pnand %p8147_p10, %p8133_p9  ;;  %p8155_p1 = scmp.lt.s32.totalorder %s8153_s27, %s8146_s12 }
  0x71   : > { %p8150_p7 = pneg %p8149_p3  ;;  %p8156_p2 = por %p8155_p1, %p8154_p12 }
  0x73   : > { %p8157_p4 = pnand %p8156_p2, %p8150_p7 }
  0x75   : > { %8160 = shalt.err (!%p8157_p4)
}
  0x76   : > { %7854 = dma.hbm_to_vmem [thread:$0]  (!%p8467_p11), %s8465_s29, 2048, %s8471_s26, %s8473_s24, %s8240_s30, %s8240_s30, %s8241_s11  }
  0x77   : > { %p9791_p9 = scmp.ne.s32.totalorder %s9785_s21, 0 }
  0x78   : > { %s8507_s10 = sand.u32 (!%p9791_p9), 1, %s8227_s14   ;;  %p9792_p0 = scmp.ne.s32.totalorder (!%p9791_p9), %s9782_s19, 0 }
  0x79   : > { %367 = sbr.rel (%p9791_p9) target bundleno = 1277 (0x4fd), region = 60  ;;  %s6401_s25 = sshll.u32 (!%p9791_p9), %s8507_s10, 7 }
  0x7a   : > { %s370_s23 = scalar_lea.sflag (!%p9791_p9), [#allocation4], %s8507_s10  ;;  %s8513_s9 = scalar_lea.vmem (!%p9791_p9), [#allocation3], %s6401_s25 }
  0x80   : > { %8206 = dma.done.wait (%p9792_p0), %s370_s23, 2048  }
  0x81   : > { %8208 = vsyncadd (%p9792_p0), %s370_s23, 4294965248  ;;  %p9793_p11 = scmp.eq.s32.totalorder %s8323_s17, 0 }
  0x83   : > { %8210 = dma.done.wait (%p9793_p11), [#allocation7], 10240   ;;  %p9794_p8 = pmov %p9793_p11 }
  0x85   : > { %8212 = vsyncadd (%p9794_p8), [#allocation7], 4294957056  ;;  %p9795_p13 = pmov %p9794_p8 }
  0x86   : > { %p9796_p6 = pmov %p9794_p8 }
  0x87   : > { %8214 = dma.done.wait (%p9795_p13), [#allocation10], 1024  }
  0x88   : > { %8216 = vsyncadd (%p9796_p6), [#allocation10], 4294966272  ;;  %v7907_v0 = vld [vmem:[#allocation6] sm:$0xff]   ;;  %v7908_v1 = vld [vmem:[#allocation6 + $0x8] sm:$0xff]   ;;  %v8243_v30 = vmov 0   ;;  %vm892_vm0 = vcmask 1043459  }
  0x89   : > { %7025 = vmatprep.subr.bf16.mxu0 %v7907_v0  ;;  %v7909_v2 = vld [vmem:[#allocation6 + $0x10] sm:$0xff]   ;;  %v7910_v3 = vld [vmem:[#allocation6 + $0x18] sm:$0xff]   ;;  %v7915_v4 = vld [vmem:[%s8513_s9] sm:$0xff]   ;;  %886 = vst [vmem:[#allocation2] sm:$0xff] %v8243_v30  ;;  %vm893_vm1 = vsmask.f32 7950 }
  0x8a   : > { %7026 = vmatpush3.bf16.msra.mxu0 %v7907_v0  ;;  %7041 = vmatprep.mubr.bf16.mxu0 %v7915_v4  ;;  %v7911_v5 = vld [vmem:[#allocation6 + $0x20] sm:$0xff]   ;;  %v7912_v6 = vld [vmem:[#allocation6 + $0x28] sm:$0xff]   ;;  %v7913_v7 = vld [vmem:[#allocation6 + $0x30] sm:$0xff]   ;;  %887 = vst [vmem:[#allocation2 + $0x8] sm:$0xff] %v8243_v30  ;;  %vm1474_vm3 = vcmask 1043456   ;;  %vm943_vm5 = vcmask 1044484  }
  0x8b   : > { %7027 = vmatprep.subr.bf16.mxu0 %v7908_v1  ;;  %v7914_v8 = vld [vmem:[#allocation6 + $0x38] sm:$0xff]   ;;  %v7931_v9 = vld [vmem:[#allocation8 + $0x40] sm:$0xff]   ;;  %v7916_v10 = vld [vmem:[%s8513_s9 + $0x8] sm:$0xff]   ;;  %889 = vst [vmem:[#allocation2 + $0x110] sm:$0xff] %v8243_v30  ;;  %vm944_vm4 = vsmask.f32 4352 }
  0x8c   : > { %v7917_v11 = vld [vmem:[%s8513_s9 + $0x10] sm:$0xff]   ;;  %v7932_v12 = vld [vmem:[#allocation8 + $0x48] sm:$0xff]   ;;  %v7918_v13 = vld [vmem:[%s8513_s9 + $0x18] sm:$0xff]   ;;  %890 = vst [vmem:[#allocation2 + $0x118] sm:$0xff] %v8243_v30  ;;  %vm1990_vm7 = vsmask.f32 3328 }
  0x8d   : > { %v7919_v14 = vld [vmem:[%s8513_s9 + $0x20] sm:$0xff]   ;;  %v7920_v15 = vld [vmem:[%s8513_s9 + $0x28] sm:$0xff]   ;;  %v7921_v16 = vld [vmem:[%s8513_s9 + $0x30] sm:$0xff]   ;;  %s9802_s19 = sld [smem:[#allocation18_spill]]  ;;  %s9631_s21 = scalar_lea.vmem [#allocation11], %s6401_s25 }
  0x8e   : > { %7028 = vmatpush3.bf16.msra.mxu0 %v7908_v1  ;;  %v7922_v17 = vld [vmem:[%s8513_s9 + $0x38] sm:$0xff]   ;;  %v7923_v18 = vld [vmem:[%s8513_s9 + $0x40] sm:$0xff]   ;;  %v7924_v19 = vld [vmem:[%s8513_s9 + $0x48] sm:$0xff]   ;;  %s6586_s25 = sshll.u32 %s8323_s17, 11  ;;  %s9803_s29 = sld [smem:[#allocation19_spill]] }
  0x8f   : > { %7029 = vmatprep.subr.bf16.mxu0 %v7909_v2  ;;  %v7925_v20 = vld [vmem:[%s8513_s9 + $0x50] sm:$0xff]   ;;  %v7926_v21 = vld [vmem:[%s8513_s9 + $0x58] sm:$0xff]   ;;  %v7927_v22 = vld [vmem:[%s8513_s9 + $0x60] sm:$0xff]   ;;  %s6276_s17 = scalar_lea.sflag [#allocation5], %s8507_s10  ;;  %s8244_s12 = smov [#allocation11]  }
  0x90   : > { %v7928_v23 = vld [vmem:[%s8513_s9 + $0x68] sm:$0xff]   ;;  %v7929_v24 = vld [vmem:[%s8513_s9 + $0x70] sm:$0xff]   ;;  %v7930_v25 = vld [vmem:[%s8513_s9 + $0x78] sm:$0xff]   ;;  %s8165_s18 = sshll.u32 %s8244_s12, 4  ;;  %s8166_s18 = int_to_ptr.vmem [resolvable:$false] %s8165_s18 }
  0x91   : > { %v7933_v26 = vld [vmem:[#allocation8 + $0x50] sm:$0xff]   ;;  %v7934_v27 = vld [vmem:[#allocation8 + $0x58] sm:$0xff]   ;;  %v7935_v28 = vld [vmem:[#allocation8 + $0x60] sm:$0xff]   ;;  %s8167_s28 = scalar_lea.vmem %s8166_s18, 4096 }
  0x92   : > { %7030 = vmatpush3.bf16.msra.mxu0 %v7909_v2  ;;  %v7936_v29 = vld [vmem:[#allocation8 + $0x68] sm:$0xff]   ;;  %v7937_v31 = vld [vmem:[#allocation8 + $0x70] sm:$0xff]   ;;  %v7938_v32 = vld [vmem:[#allocation8 + $0x78] sm:$0xff]  }
  0x93   : > { %7031 = vmatprep.subr.bf16.mxu0 %v7910_v3  ;;  %vm8543_vm2 = vmand %vm892_vm0, %vm893_vm1  ;;  %v8547_v34 = vld [vmem:[#allocation2 + $0x8] sm:$0xf]  ;;  %v1426_v35 = vld [vmem:[#allocation2] sm:$0xf0] }
  0x94   : > { %v1475_v36 = vrot.slane %v1426_v35, 4  ;;  %v1476_v37 = vrot.slane %v8547_v34, 4  ;;  %v898_v38 = vld [vmem:[#allocation2 + $0x20] sm:$0x8]  ;;  %v895_v39 = vld [vmem:[#allocation2 + $0x10] sm:$0x8]  ;;  %vm8576_vm6 = vmand %vm943_vm5, %vm944_vm4  ;;  %s9714_s26 = scalar_lea.hbm %s9803_s29, %s6586_s25 }
  0x95   : > { %v899_v40 = vsel %vm8543_vm2, 0, %v898_v38  ;;  %v896_v42 = vsel %vm8543_vm2, 0, %v895_v39  ;;  %v7939_v43 = vld [vmem:[#allocation8 + $0xc0] sm:$0xff]   ;;  %v7940_v44 = vld [vmem:[#allocation8 + $0xc8] sm:$0xff]   ;;  %v7941_v45 = vld [vmem:[#allocation8 + $0xd0] sm:$0xff]  }
  0x96   : > { %7032 = vmatpush3.bf16.msra.mxu0 %v7910_v3  ;;  %v1477_v41 = vsel %vm1474_vm3, %v1475_v36, %v1476_v37  ;;  %900 = vst [vmem:[#allocation2 + $0x20] sm:$0x8] %v899_v40  ;;  %897 = vst [vmem:[#allocation2 + $0x10] sm:$0x8] %v896_v42  ;;  %7553 = vmatprep.subr.bf16.mxu1 %v7939_v43  ;;  %v901_v46 = vld [vmem:[#allocation2 + $0x30] sm:$0x8] }
  0x97   : > { %7033 = vmatprep.subr.bf16.mxu0 %v7911_v5  ;;  %7561 = vmatpush3.bf16.msra.mxu1 %v7939_v43  ;;  %v902_v47 = vsel %vm8543_vm2, 0, %v901_v46  ;;  %v7942_v48 = vld [vmem:[#allocation8 + $0xd8] sm:$0xff]   ;;  %v7943_v49 = vld [vmem:[#allocation8 + $0xe0] sm:$0xff]   ;;  %v919_v50 = vld [vmem:[#allocation2 + $0x90] sm:$0x8] }
  0x98   : > { %7554 = vmatprep.subr.bf16.mxu1 %v7940_v44  ;;  %903 = vst [vmem:[#allocation2 + $0x30] sm:$0x8] %v902_v47  ;;  %v922_v51 = vld [vmem:[#allocation2 + $0xa0] sm:$0x8]  ;;  %v920_v52 = vsel %vm8543_vm2, 0, %v919_v50  ;;  %v7944_v54 = vld [vmem:[#allocation8 + $0xe8] sm:$0xff]  }
  0x99   : > { %v923_v53 = vsel %vm8543_vm2, 0, %v922_v51  ;;  %921 = vst [vmem:[#allocation2 + $0x90] sm:$0x8] %v920_v52  ;;  %v7945_v55 = vld [vmem:[#allocation8 + $0xf0] sm:$0xff]   ;;  %v8561_v56 = vld [vmem:[#allocation8] sm:$0xff]   ;;  %v7947_v57 = vld [vmem:[#allocation8 + $0xf8] sm:$0xff]  }
  0x9a   : > { %7034 = vmatpush3.bf16.msra.mxu0 %v7911_v5  ;;  %924 = vst [vmem:[#allocation2 + $0xa0] sm:$0x8] %v923_v53  ;;  %v928_v58 = vld [vmem:[#allocation2 + $0xc0] sm:$0x8]  ;;  %v925_v59 = vld [vmem:[#allocation2 + $0xb0] sm:$0x8] }
  0x9b   : > { %7035 = vmatprep.subr.bf16.mxu0 %v7912_v6  ;;  %7562 = vmatpush3.bf16.msra.mxu1 %v7940_v44  ;;  %v929_v60 = vsel %vm8543_vm2, 0, %v928_v58  ;;  %v8566_v61 = vld [vmem:[#allocation8 + $0x100] sm:$0xff]   ;;  %v926_v62 = vsel %vm8543_vm2, 0, %v925_v59  ;;  %v931_v0 = vld [vmem:[#allocation2 + $0xd0] sm:$0x8] }
  0x9c   : > { %7555 = vmatprep.subr.bf16.mxu1 %v7941_v45  ;;  %930 = vst [vmem:[#allocation2 + $0xc0] sm:$0x8] %v929_v60  ;;  %927 = vst [vmem:[#allocation2 + $0xb0] sm:$0x8] %v926_v62  ;;  %v934_v63 = vld [vmem:[#allocation2 + $0xe0] sm:$0x8] }
  0x9d   : > { %v935_v1 = vsel %vm8543_vm2, 0, %v934_v63  ;;  %v932_v2 = vsel %vm8543_vm2, 0, %v931_v0  ;;  %v946_v4 = vld [vmem:[#allocation2 + $0x18] sm:$0x10]  ;;  %v904_v5 = vld [vmem:[#allocation2 + $0x40] sm:$0x8] }
  0x9e   : > { %7036 = vmatpush3.bf16.msra.mxu0 %v7912_v6  ;;  %936 = vst [vmem:[#allocation2 + $0xe0] sm:$0x8] %v935_v1  ;;  %933 = vst [vmem:[#allocation2 + $0xd0] sm:$0x8] %v932_v2  ;;  %v947_v6 = vsel %vm8576_vm6, 0, %v946_v4 }
  0x9f   : > { %7037 = vmatprep.subr.bf16.mxu0 %v7913_v7  ;;  %7563 = vmatpush3.bf16.msra.mxu1 %v7941_v45  ;;  %948 = vst [vmem:[#allocation2 + $0x18] sm:$0x10] %v947_v6  ;;  %v952_v59 = vld [vmem:[#allocation2 + $0x38] sm:$0x10] }
  0xa0   : > { %7556 = vmatprep.subr.bf16.mxu1 %v7942_v48  ;;  %v953_v63 = vsel %vm8576_vm6, 0, %v952_v59 }
  0xa1   : > { %954 = vst [vmem:[#allocation2 + $0x38] sm:$0x10] %v953_v63 }
  0xa2   : > { %7038 = vmatpush3.bf16.msra.mxu0 %v7913_v7  ;;  %v905_v7 = vsel %vm8543_vm2, 0, %v904_v5 }
  0xa3   : > { %7039 = vmatprep.subr.bf16.mxu0 %v7914_v8  ;;  %7564 = vmatpush3.bf16.msra.mxu1 %v7942_v48  ;;  %906 = vst [vmem:[#allocation2 + $0x40] sm:$0x8] %v905_v7 }
  0xa4   : > { %7557 = vmatprep.subr.bf16.mxu1 %v7943_v49 }
  0xa6   : > { %7040 = vmatpush3.bf16.msra.mxu0 %v7914_v8  ;;  %v940_v8 = vld [vmem:[#allocation2 + $0x100] sm:$0x8] }
  0xa7   : > { %7073 = vmatprep.subr.bf16.mxu0 %v7931_v9  ;;  %7565 = vmatpush3.bf16.msra.mxu1 %v7943_v49 }
  0xa8   : > { %7558 = vmatprep.subr.bf16.mxu1 %v7944_v54 }
  0xa9   : > { %7042 = vmatmul.mubr.bf16.vlgmr.msra.gmra.mrb[0].mxu0 %v7916_v10  ;;  %v941_v10 = vsel %vm8543_vm2, 0, %v940_v8 }
  0xaa   : > { %7045 = vmatprep.mubr.bf16.mxu0 %v7917_v11  ;;  %7074 = vmatpush3.bf16.msra.mxu0 %v7931_v9  ;;  %v937_v9 = vld [vmem:[#allocation2 + $0xf0] sm:$0x8]  ;;  %942 = vst [vmem:[#allocation2 + $0x100] sm:$0x8] %v941_v10 }
  0xab   : > { %7075 = vmatprep.subr.bf16.mxu0 %v7932_v12  ;;  %7566 = vmatpush3.bf16.msra.mxu1 %v7944_v54  ;;  %v938_v11 = vsel %vm8543_vm2, 0, %v937_v9 }
  0xac   : > { %7559 = vmatprep.subr.bf16.mxu1 %v7945_v55  ;;  %939 = vst [vmem:[#allocation2 + $0xf0] sm:$0x8] %v938_v11 }
  0xae   : > { %7076 = vmatpush3.bf16.msra.mxu0 %v7932_v12  ;;  %v910_v12 = vld [vmem:[#allocation2 + $0x60] sm:$0x8] }
  0xaf   : > { %7077 = vmatprep.subr.bf16.mxu0 %v7933_v26  ;;  %7567 = vmatpush3.bf16.msra.mxu1 %v7945_v55  ;;  %v1090_v55 = vld [vmem:[#allocation2] sm:$0xf8] }
  0xb0   : > { %7560 = vmatprep.subr.bf16.mxu1 %v7947_v57  ;;  %v1123_v2 = vshrl.u32 %v1090_v55, 16  ;;  %v1126_v7 = vshll.u32 %v1090_v55, 16 }
  0xb1   : > { %7046 = vmatmul.mubr.bf16.gmra.mrb[4].mxu0 %v7918_v13  ;;  %v907_v13 = vld [vmem:[#allocation2 + $0x50] sm:$0x8] }
  0xb2   : > { %7049 = vmatprep.mubr.bf16.mxu0 %v7919_v14  ;;  %7078 = vmatpush3.bf16.msra.mxu0 %v7933_v26  ;;  %v911_v14 = vsel %vm8543_vm2, 0, %v910_v12 }
  0xb3   : > { %7079 = vmatprep.subr.bf16.mxu0 %v7934_v27  ;;  %7568 = vmatpush3.bf16.msra.mxu1 %v7947_v57  ;;  %912 = vst [vmem:[#allocation2 + $0x60] sm:$0x8] %v911_v14  ;;  %v955_v57 = vld [vmem:[#allocation2 + $0x48] sm:$0x10]  ;;  %v1131_v14 = vshrl.u32 %v8547_v34, 16 }
  0xb4   : > { %7265 = vmatprep.subr.bf16.mxu1 %v8566_v61  ;;  %v956_v60 = vsel %vm8576_vm6, 0, %v955_v57 }
  0xb5   : > { %957 = vst [vmem:[#allocation2 + $0x48] sm:$0x10] %v956_v60 }
  0xb6   : > { %7080 = vmatpush3.bf16.msra.mxu0 %v7934_v27 }
  0xb7   : > { %7081 = vmatprep.subr.bf16.mxu0 %v7935_v28 }
  0xb9   : > { %7050 = vmatmul.mubr.bf16.gmra.mrb[8].mxu0 %v7920_v15  ;;  %v908_v15 = vsel %vm8543_vm2, 0, %v907_v13 }
  0xba   : > { %7053 = vmatprep.mubr.bf16.mxu0 %v7921_v16  ;;  %7082 = vmatpush3.bf16.msra.mxu0 %v7935_v28  ;;  %909 = vst [vmem:[#allocation2 + $0x50] sm:$0x8] %v908_v15  ;;  %v916_v16 = vld [vmem:[#allocation2 + $0x80] sm:$0x8]  ;;  %v1134_v15 = vshll.u32 %v8547_v34, 16 }
  0xbb   : > { %7083 = vmatprep.subr.bf16.mxu0 %v7936_v29 }
  0xbe   : > { %7084 = vmatpush3.bf16.msra.mxu0 %v7936_v29 }
  0xbf   : > { %7085 = vmatprep.subr.bf16.mxu0 %v7937_v31 }
  0xc1   : > { %7054 = vmatmul.mubr.bf16.gmra.mrb[12].mxu0 %v7922_v17  ;;  %v913_v17 = vld [vmem:[#allocation2 + $0x70] sm:$0x8] }
  0xc2   : > { %7057 = vmatprep.mubr.bf16.mxu0 %v7923_v18  ;;  %7086 = vmatpush3.bf16.msra.mxu0 %v7937_v31  ;;  %v917_v18 = vsel %vm8543_vm2, 0, %v916_v16 }
  0xc3   : > { %7087 = vmatprep.subr.bf16.mxu0 %v7938_v32  ;;  %918 = vst [vmem:[#allocation2 + $0x80] sm:$0x8] %v917_v18 }
  0xc6   : > { %7088 = vmatpush3.bf16.msra.mxu0 %v7938_v32 }
  0xc7   : > { %7121 = vmatprep.subr.bf16.mxu0 %v8561_v56 }
  0xc9   : > { %7058 = vmatmul.mubr.bf16.gmra.mrb[16].mxu0 %v7924_v19  ;;  %v914_v19 = vsel %vm8543_vm2, 0, %v913_v17 }
  0xca   : > { %7061 = vmatprep.mubr.bf16.mxu0 %v7925_v20  ;;  %915 = vst [vmem:[#allocation2 + $0x70] sm:$0x8] %v914_v19  ;;  %v949_v20 = vld [vmem:[#allocation2 + $0x28] sm:$0x10] }
  0xd1   : > { %7062 = vmatmul.mubr.bf16.gmra.mrb[20].mxu0 %v7926_v21  ;;  %v8599_v21 = vld [vmem:[%s9764_s2] ss:$0 sm:$0xff] }
  0xd2   : > { %7065 = vmatprep.mubr.bf16.mxu0 %v7927_v22  ;;  %v950_v22 = vsel %vm8576_vm6, 0, %v949_v20  ;;  %v8634_v20 = vrot.slane %v1123_v2, 3  ;;  %v7950_v2 = vld [vmem:[#allocation8 + $0x10] sm:$0xff]  }
  0xd3   : > { %951 = vst [vmem:[#allocation2 + $0x28] sm:$0x10] %v950_v22 }
  0xd9   : > { %7066 = vmatmul.mubr.bf16.gmra.mrb[24].mxu0 %v7928_v23 }
  0xda   : > { %7069 = vmatprep.mubr.bf16.mxu0 %v7929_v24  ;;  %v8606_v24 = vld [vmem:[%s9765_s3] ss:$0 sm:$0xff] }
  0xe1   : > { %7070 = vmatmul.mubr.bf16.gmra.mrb[28].mxu0 %v7930_v25 }
  0xe2   : > { %7089 = vmatprep.mubr.bf16.mxu0 %v1477_v41 }
 0x17c   : > { %v7043_v23 = vpop.f32.mrb[0].mxu0 }
 0x17d   : > { %v785_v25 = vmul.f32 %v7043_v23, %v8599_v21  ;;  %v649_v26 = vpop.f32.mrb[1].mxu0 }
 0x17e   : > { %v783_v27 = vmul.f32 %v8599_v21, %v649_v26  ;;  %v7044_v28 = vpop.f32.mrb[2].mxu0 }
 0x17f   : > { %v824_v29 = vadd.f32 %v8606_v24, %v785_v25  ;;  %v786_v30 = vmul.f32 %v7044_v28, %v8599_v21  ;;  %v652_v31 = vpop.f32.mrb[3].mxu0  ;;  %v8640_v28 = vrot.slane %v1126_v7, 4 }
 0x180   : > { %v822_v32 = vadd.f32 %v8606_v24, %v783_v27  ;;  %v784_v33 = vmul.f32 %v8599_v21, %v652_v31 }
 0x181   : > { %v825_v35 = vadd.f32 %v8606_v24, %v786_v30  ;;  %v856_v37 = vmax.f32 %v824_v29, 0.0 }
 0x182   : > { %v823_v36 = vadd.f32 %v8606_v24, %v784_v33  ;;  %v854_v39 = vmax.f32 %v822_v32, 0.0 }
 0x183   : > { %v857_v38 = vmax.f32 %v825_v35, 0.0 }
 0x184   : > { %v855_v40 = vmax.f32 %v823_v36, 0.0  ;;  %v7047_v41 = vpop.f32.mrb[4].mxu0 }
 0x185   : > { %v995_v42 = vpack.c.bf16 %v857_v38, %v856_v37  ;;  %v789_v43 = vmul.f32 %v7047_v41, %v8599_v21  ;;  %v665_v44 = vpop.f32.mrb[5].mxu0  ;;  %v8649_v37 = vrot.slane %v1131_v14, 3  ;;  %v7948_v41 = vld [vmem:[#allocation8 + $0x8] sm:$0xff]  }
 0x186   : > { %v994_v45 = vpack.c.bf16 %v855_v40, %v854_v39  ;;  %v787_v46 = vmul.f32 %v8599_v21, %v665_v44  ;;  %v7048_v47 = vpop.f32.mrb[6].mxu0 }
 0x187   : > { %v1027_v48 = vrot.slane %v995_v42, 4  ;;  %v828_v49 = vadd.f32 %v8606_v24, %v789_v43  ;;  %v790_v50 = vmul.f32 %v7048_v47, %v8599_v21  ;;  %v668_v51 = vpop.f32.mrb[7].mxu0  ;;  %v8652_v42 = vrot.slane %v1134_v15, 4 }
 0x188   : > { %v1026_v52 = vrot.slane %v994_v45, 4  ;;  %v826_v53 = vadd.f32 %v8606_v24, %v787_v46  ;;  %v788_v54 = vmul.f32 %v8599_v21, %v668_v51  ;;  %v1129_v47 = vor.u32 %v8640_v28, %v8634_v20 }
 0x189   : > { %1060 = vst [vmem:[#allocation2 + $0x28] ss:$-4 sps:$4 sm:$0xff] %v1027_v48   ;;  %v829_v58 = vadd.f32 %v8606_v24, %v790_v50  ;;  %v860_v0 = vmax.f32 %v828_v49, 0.0  ;;  %v1137_v14 = vor.u32 %v8652_v42, %v8649_v37 }
 0x18a   : > { %1058 = vst [vmem:[#allocation2 + $0x18] ss:$-4 sps:$4 sm:$0xff] %v1026_v52   ;;  %v827_v62 = vadd.f32 %v8606_v24, %v788_v54  ;;  %v858_v4 = vmax.f32 %v826_v53, 0.0 }
 0x18b   : > { %v861_v1 = vmax.f32 %v829_v58, 0.0 }
 0x18c   : > { %v859_v5 = vmax.f32 %v827_v62, 0.0  ;;  %v7051_v6 = vpop.f32.mrb[8].mxu0 }
 0x18d   : > { %v997_v8 = vpack.c.bf16 %v861_v1, %v860_v0  ;;  %v793_v9 = vmul.f32 %v7051_v6, %v8599_v21  ;;  %v681_v10 = vpop.f32.mrb[9].mxu0 }
 0x18e   : > { %v996_v11 = vpack.c.bf16 %v859_v5, %v858_v4  ;;  %v791_v12 = vmul.f32 %v8599_v21, %v681_v10  ;;  %v7052_v13 = vpop.f32.mrb[10].mxu0 }
 0x18f   : > { %v1029_v16 = vrot.slane %v997_v8, 4  ;;  %v832_v17 = vadd.f32 %v8606_v24, %v793_v9  ;;  %v794_v18 = vmul.f32 %v7052_v13, %v8599_v21  ;;  %v684_v19 = vpop.f32.mrb[11].mxu0 }
 0x190   : > { %v1028_v22 = vrot.slane %v996_v11, 4  ;;  %v830_v23 = vadd.f32 %v8606_v24, %v791_v12  ;;  %v792_v25 = vmul.f32 %v8599_v21, %v684_v19  ;;  %v8638_v26 = vld [vmem:[#allocation2 + $0x28] sm:$0xf]  ;;  %v1428_v27 = vld [vmem:[#allocation2 + $0x20] sm:$0xf0]  ;;  %v7952_v19 = vld [vmem:[#allocation8 + $0x18] sm:$0xff]  }
 0x191   : > { %1064 = vst [vmem:[#allocation2 + $0x48] ss:$-4 sps:$4 sm:$0xff] %v1029_v16   ;;  %v833_v34 = vadd.f32 %v8606_v24, %v794_v18  ;;  %v8643_v29 = vld [vmem:[#allocation2 + $0x18] sm:$0xf]  ;;  %v1427_v30 = vld [vmem:[#allocation2 + $0x10] sm:$0xf0] }
 0x192   : > { %v1481_v31 = vrot.slane %v1428_v27, 4  ;;  %1062 = vst [vmem:[#allocation2 + $0x38] ss:$-4 sps:$4 sm:$0xff] %v1028_v22   ;;  %v831_v32 = vadd.f32 %v8606_v24, %v792_v25  ;;  %v1478_v33 = vrot.slane %v1427_v30, 4  ;;  %v1479_v35 = vrot.slane %v8643_v29, 4 }
 0x193   : > { %v8647_v36 = vld [vmem:[#allocation2 + $0x18] sm:$0xf]  ;;  %v864_v38 = vmax.f32 %v832_v17, 0.0  ;;  %v865_v39 = vmax.f32 %v833_v34, 0.0  ;;  %v1482_v40 = vrot.slane %v8638_v26, 4  ;;  %v862_v43 = vmax.f32 %v830_v23, 0.0 }
 0x194   : > { %v863_v44 = vmax.f32 %v831_v32, 0.0  ;;  %v7055_v45 = vpop.f32.mrb[12].mxu0  ;;  %v1480_v46 = vsel %vm1474_vm3, %v1478_v33, %v1479_v35  ;;  %v1092_v48 = vld [vmem:[#allocation2 + $0x10] sm:$0xf8]  ;;  %v3164_v54 = vrot.slane %v8647_v36, 4  ;;  %v1148_v60 = vshrl.u32 %v8643_v29, 16 }
 0x195   : > { %v999_v49 = vpack.c.bf16 %v865_v39, %v864_v38  ;;  %v797_v50 = vmul.f32 %v7055_v45, %v8599_v21  ;;  %v697_v51 = vpop.f32.mrb[13].mxu0  ;;  %7090 = vmatmul.mubr.bf16.vlgmr.msra.gmra.mrb[32].mxu0 %v1480_v46  ;;  %v1483_v52 = vsel %vm1474_vm3, %v1481_v31, %v1482_v40  ;;  %v8659_v53 = vld [vmem:[#allocation2 + $0x10] sm:$0xf0]  ;;  %v1140_v59 = vshrl.u32 %v1092_v48, 16  ;;  %v1094_v30 = vld [vmem:[#allocation2 + $0x20] sm:$0xf8] }
 0x196   : > { %v998_v55 = vpack.c.bf16 %v863_v44, %v862_v43  ;;  %v795_v57 = vmul.f32 %v8599_v21, %v697_v51  ;;  %v7056_v58 = vpop.f32.mrb[14].mxu0  ;;  %7093 = vmatprep.mubr.bf16.mxu0 %v1483_v52  ;;  %7122 = vmatpush3.bf16.msra.mxu0 %v8561_v56  ;;  %v1143_v4 = vshll.u32 %v1092_v48, 16  ;;  %v3163_v9 = vrot.slane %v8659_v53, 4  ;;  %v7954_v52 = vld [vmem:[#allocation8 + $0x20] sm:$0xff]  }
 0x197   : > { %v1031_v62 = vrot.slane %v999_v49, 4  ;;  %v836_v63 = vadd.f32 %v8606_v24, %v797_v50  ;;  %v798_v0 = vmul.f32 %v7056_v58, %v8599_v21  ;;  %v700_v1 = vpop.f32.mrb[15].mxu0  ;;  %7123 = vmatprep.subr.bf16.mxu0 %v7948_v41  ;;  %v1151_v15 = vshll.u32 %v8643_v29, 16  ;;  %v2539_v3 = vld [vmem:[#allocation2 + $0x20] sm:$0xf8] }
 0x198   : > { %v1030_v5 = vrot.slane %v998_v55, 4  ;;  %v834_v6 = vadd.f32 %v8606_v24, %v795_v57  ;;  %v796_v7 = vmul.f32 %v8599_v21, %v700_v1  ;;  %v8669_v8 = vld [vmem:[#allocation2 + $0x48] sm:$0xf]  ;;  %v1430_v56 = vld [vmem:[#allocation2 + $0x40] sm:$0xf0]  ;;  %v8680_v22 = vrot.slane %v1140_v59, 3 }
 0x199   : > { %1068 = vst [vmem:[#allocation2 + $0x68] ss:$-4 sps:$4 sm:$0xff] %v1031_v62   ;;  %v837_v10 = vadd.f32 %v8606_v24, %v798_v0  ;;  %v8673_v11 = vld [vmem:[#allocation2 + $0x38] sm:$0xf]  ;;  %v1429_v12 = vld [vmem:[#allocation2 + $0x30] sm:$0xf0]  ;;  %v8697_v45 = vsel %vm944_vm4, %v1129_v47, %v1137_v14  ;;  %v8708_v28 = vsel %vm1474_vm3, %v3163_v9, %v3164_v54 }
 0x19a   : > { %v1487_v13 = vrot.slane %v1430_v56, 4  ;;  %1066 = vst [vmem:[#allocation2 + $0x58] ss:$-4 sps:$4 sm:$0xff] %v1030_v5   ;;  %v835_v16 = vadd.f32 %v8606_v24, %v796_v7  ;;  %v1484_v17 = vrot.slane %v1429_v12, 4  ;;  %v1485_v18 = vrot.slane %v8673_v11, 4  ;;  %7124 = vmatpush3.bf16.msra.mxu0 %v7948_v41 }
 0x19b   : > { %v868_v23 = vmax.f32 %v836_v63, 0.0  ;;  %v869_v25 = vmax.f32 %v837_v10, 0.0  ;;  %v1488_v27 = vrot.slane %v8669_v8, 4  ;;  %7125 = vmatprep.subr.bf16.mxu0 %v7950_v2  ;;  %v8683_v34 = vrot.slane %v1143_v4, 4  ;;  %v7956_v4 = vld [vmem:[#allocation8 + $0x28] sm:$0xff]  }
 0x19c   : > { %v866_v31 = vmax.f32 %v834_v6, 0.0  ;;  %v867_v29 = vmax.f32 %v835_v16, 0.0  ;;  %v7059_v32 = vpop.f32.mrb[16].mxu0  ;;  %v1486_v33 = vsel %vm1474_vm3, %v1484_v17, %v1485_v18  ;;  %v8686_v35 = vrot.slane %v1148_v60, 3  ;;  %v2540_v6 = vld [vmem:[#allocation2 + $0x28] sm:$0xf] }
 0x19d   : > { %v1001_v37 = vpack.c.bf16 %v869_v25, %v868_v23  ;;  %v801_v38 = vmul.f32 %v7059_v32, %v8599_v21  ;;  %v713_v39 = vpop.f32.mrb[17].mxu0  ;;  %7094 = vmatmul.mubr.bf16.gmra.mrb[36].mxu0 %v1486_v33  ;;  %v1489_v40 = vsel %vm1474_vm3, %v1487_v13, %v1488_v27  ;;  %v8690_v41 = vrot.slane %v1151_v15, 4  ;;  %v3116_v12 = vld [vmem:[#allocation2 + $0x20] sm:$0xf0] }
 0x19e   : > { %v1000_v42 = vpack.c.bf16 %v867_v29, %v866_v31  ;;  %v799_v43 = vmul.f32 %v8599_v21, %v713_v39  ;;  %v7060_v44 = vpop.f32.mrb[18].mxu0  ;;  %7097 = vmatprep.mubr.bf16.mxu0 %v1489_v40  ;;  %7126 = vmatpush3.bf16.msra.mxu0 %v7950_v2  ;;  %v1157_v46 = vshrl.u32 %v1094_v30, 16  ;;  %v1160_v53 = vshll.u32 %v1094_v30, 16 }
 0x19f   : > { %v1033_v48 = vrot.slane %v1001_v37, 4  ;;  %v840_v49 = vadd.f32 %v8606_v24, %v801_v38  ;;  %v802_v50 = vmul.f32 %v7060_v44, %v8599_v21  ;;  %v716_v51 = vpop.f32.mrb[19].mxu0  ;;  %7127 = vmatprep.subr.bf16.mxu0 %v7952_v19  ;;  %v1146_v0 = vor.u32 %v8683_v34, %v8680_v22  ;;  %v7958_v38 = vld [vmem:[#allocation8 + $0x30] sm:$0xff]  }
 0x1a0   : > { %v1032_v55 = vrot.slane %v1000_v42, 4  ;;  %v838_v57 = vadd.f32 %v8606_v24, %v799_v43  ;;  %v800_v58 = vmul.f32 %v8599_v21, %v716_v51  ;;  %v8703_v59 = vld [vmem:[#allocation2 + $0x68] sm:$0xf]  ;;  %v1432_v20 = vld [vmem:[#allocation2 + $0x60] sm:$0xf0]  ;;  %v1154_v1 = vor.u32 %v8690_v41, %v8686_v35 }
 0x1a1   : > { %1072 = vst [vmem:[#allocation2 + $0x88] ss:$-4 sps:$4 sm:$0xff] %v1033_v48   ;;  %v841_v47 = vadd.f32 %v8606_v24, %v802_v50  ;;  %v8711_v60 = vld [vmem:[#allocation2 + $0x58] sm:$0xf]  ;;  %v1431_v62 = vld [vmem:[#allocation2 + $0x50] sm:$0xf0] }
 0x1a2   : > { %v1493_v63 = vrot.slane %v1432_v20, 4  ;;  %1070 = vst [vmem:[#allocation2 + $0x78] ss:$-4 sps:$4 sm:$0xff] %v1032_v55   ;;  %v839_v2 = vadd.f32 %v8606_v24, %v800_v58  ;;  %v1490_v36 = vrot.slane %v1431_v62, 4  ;;  %v1491_v54 = vrot.slane %v8711_v60, 4  ;;  %7128 = vmatpush3.bf16.msra.mxu0 %v7952_v19  ;;  %v7960_v20 = vld [vmem:[#allocation8 + $0x38] sm:$0xff]  }
 0x1a3   : > { %v8719_v5 = vrot.slane %v1157_v46, 3  ;;  %v872_v7 = vmax.f32 %v840_v49, 0.0  ;;  %v873_v56 = vmax.f32 %v841_v47, 0.0  ;;  %v1494_v9 = vrot.slane %v8703_v59, 4  ;;  %7129 = vmatprep.subr.bf16.mxu0 %v7954_v52  ;;  %v8753_v62 = vld [vmem:[#allocation2 + $0x30] sm:$0xf0] }
 0x1a4   : > { %v8722_v10 = vrot.slane %v1160_v53, 4  ;;  %v870_v13 = vmax.f32 %v838_v57, 0.0  ;;  %v871_v14 = vmax.f32 %v839_v2, 0.0  ;;  %v7063_v15 = vpop.f32.mrb[20].mxu0  ;;  %v1492_v16 = vsel %vm1474_vm3, %v1490_v36, %v1491_v54  ;;  %v8756_v36 = vld [vmem:[#allocation2 + $0x38] sm:$0xf] }
 0x1a5   : > { %v1165_v17 = vshrl.u32 %v8638_v26, 16  ;;  %v1003_v18 = vpack.c.bf16 %v873_v56, %v872_v7  ;;  %v805_v19 = vmul.f32 %v7063_v15, %v8599_v21  ;;  %v729_v22 = vpop.f32.mrb[21].mxu0  ;;  %7098 = vmatmul.mubr.bf16.gmra.mrb[40].mxu0 %v1492_v16  ;;  %v1495_v23 = vsel %vm1474_vm3, %v1493_v63, %v1494_v9 }
 0x1a6   : > { %v1168_v25 = vshll.u32 %v8638_v26, 16  ;;  %v1002_v27 = vpack.c.bf16 %v871_v14, %v870_v13  ;;  %v803_v34 = vmul.f32 %v8599_v21, %v729_v22  ;;  %v7064_v30 = vpop.f32.mrb[22].mxu0  ;;  %7101 = vmatprep.mubr.bf16.mxu0 %v1495_v23  ;;  %7130 = vmatpush3.bf16.msra.mxu0 %v7954_v52  ;;  %v3166_v31 = vrot.slane %v3116_v12, 4  ;;  %v1096_v26 = vld [vmem:[#allocation2 + $0x30] sm:$0xf8] }
 0x1a7   : > { %v3167_v29 = vrot.slane %v2540_v6, 4  ;;  %v1035_v32 = vrot.slane %v1003_v18, 4  ;;  %v844_v33 = vadd.f32 %v8606_v24, %v805_v19  ;;  %v806_v35 = vmul.f32 %v7064_v30, %v8599_v21  ;;  %v732_v37 = vpop.f32.mrb[23].mxu0  ;;  %7131 = vmatprep.subr.bf16.mxu0 %v7956_v4 }
 0x1a8   : > { %v8733_v39 = vsel %vm944_vm4, %v1146_v0, %v1154_v1  ;;  %v1034_v40 = vrot.slane %v1002_v27, 4  ;;  %v842_v41 = vadd.f32 %v8606_v24, %v803_v34  ;;  %v804_v42 = vmul.f32 %v8599_v21, %v732_v37  ;;  %v8737_v43 = vld [vmem:[#allocation2 + $0x88] sm:$0xf]  ;;  %v1434_v44 = vld [vmem:[#allocation2 + $0x80] sm:$0xf0] }
 0x1a9   : > { %v8739_v46 = vrot.slane %v1165_v17, 3  ;;  %1076 = vst [vmem:[#allocation2 + $0xa8] ss:$-4 sps:$4 sm:$0xff] %v1035_v32   ;;  %v845_v48 = vadd.f32 %v8606_v24, %v806_v35  ;;  %v8742_v49 = vld [vmem:[#allocation2 + $0x78] sm:$0xf]  ;;  %v1499_v51 = vrot.slane %v1434_v44, 4  ;;  %v1163_v52 = vor.u32 %v8722_v10, %v8719_v5 }
 0x1aa   : > { %v1433_v50 = vld [vmem:[#allocation2 + $0x70] sm:$0xf0]  ;;  %v8746_v53 = vrot.slane %v1168_v25, 4  ;;  %1074 = vst [vmem:[#allocation2 + $0x98] ss:$-4 sps:$4 sm:$0xff] %v1034_v40   ;;  %v843_v55 = vadd.f32 %v8606_v24, %v804_v42  ;;  %v1497_v58 = vrot.slane %v8742_v49, 4  ;;  %7132 = vmatpush3.bf16.msra.mxu0 %v7956_v4  ;;  %v8751_v47 = vsel %vm1474_vm3, %v3166_v31, %v3167_v29 }
 0x1ab   : > { %v1496_v57 = vrot.slane %v1433_v50, 4  ;;  %v876_v63 = vmax.f32 %v844_v33, 0.0  ;;  %v874_v0 = vmax.f32 %v842_v41, 0.0  ;;  %v877_v1 = vmax.f32 %v845_v48, 0.0  ;;  %7133 = vmatprep.subr.bf16.mxu0 %v7958_v38  ;;  %v8770_v31 = vld [vmem:[#allocation8 + $0x80] sm:$0xff]  }
 0x1ac   : > { %v1500_v2 = vrot.slane %v8737_v43, 4  ;;  %v875_v54 = vmax.f32 %v843_v55, 0.0  ;;  %v7067_v6 = vpop.f32.mrb[24].mxu0  ;;  %v1174_v56 = vshrl.u32 %v1096_v26, 16  ;;  %v1177_v4 = vshll.u32 %v1096_v26, 16 }
 0x1ad   : > { %v1498_v7 = vsel %vm1474_vm3, %v1496_v57, %v1497_v58  ;;  %v1005_v9 = vpack.c.bf16 %v877_v1, %v876_v63  ;;  %v809_v12 = vmul.f32 %v7067_v6, %v8599_v21  ;;  %v745_v13 = vpop.f32.mrb[25].mxu0  ;;  %v3169_v15 = vrot.slane %v8753_v62, 4 }
 0x1ae   : > { %7102 = vmatmul.mubr.bf16.gmra.mrb[44].mxu0 %v1498_v7  ;;  %v1501_v14 = vsel %vm1474_vm3, %v1499_v51, %v1500_v2  ;;  %v1004_v16 = vpack.c.bf16 %v875_v54, %v874_v0  ;;  %v807_v17 = vmul.f32 %v8599_v21, %v745_v13  ;;  %v7068_v18 = vpop.f32.mrb[26].mxu0  ;;  %v3170_v19 = vrot.slane %v8756_v36, 4 }
 0x1af   : > { %7105 = vmatprep.mubr.bf16.mxu0 %v1501_v14  ;;  %7134 = vmatpush3.bf16.msra.mxu0 %v7958_v38  ;;  %v8764_v22 = vrot.slane %v1174_v56, 3  ;;  %v1037_v23 = vrot.slane %v1005_v9, 4  ;;  %v848_v25 = vadd.f32 %v8606_v24, %v809_v12  ;;  %v810_v27 = vmul.f32 %v7068_v18, %v8599_v21  ;;  %v748_v34 = vpop.f32.mrb[27].mxu0 }
 0x1b0   : > { %7135 = vmatprep.subr.bf16.mxu0 %v7960_v20  ;;  %v8768_v30 = vrot.slane %v1177_v4, 4  ;;  %v1036_v29 = vrot.slane %v1004_v16, 4  ;;  %v846_v32 = vadd.f32 %v8606_v24, %v807_v17  ;;  %v808_v33 = vmul.f32 %v8599_v21, %v748_v34  ;;  %v8774_v35 = vld [vmem:[#allocation2 + $0xa8] sm:$0xf]  ;;  %v1436_v37 = vld [vmem:[#allocation2 + $0xa0] sm:$0xf0] }
 0x1b1   : > { %v1182_v38 = vshrl.u32 %v8673_v11, 16  ;;  %1080 = vst [vmem:[#allocation2 + $0xc8] ss:$-4 sps:$4 sm:$0xff] %v1037_v23   ;;  %v880_v26 = vmax.f32 %v848_v25, 0.0  ;;  %v849_v40 = vadd.f32 %v8606_v24, %v810_v27  ;;  %v8778_v41 = vld [vmem:[#allocation2 + $0x98] sm:$0xf]  ;;  %v1171_v48 = vor.u32 %v8746_v53, %v8739_v46 }
 0x1b2   : > { %v1435_v42 = vld [vmem:[#allocation2 + $0x90] sm:$0xf0]  ;;  %v1505_v44 = vrot.slane %v1436_v37, 4  ;;  %1078 = vst [vmem:[#allocation2 + $0xb8] ss:$-4 sps:$4 sm:$0xff] %v1036_v29   ;;  %v878_v50 = vmax.f32 %v846_v32, 0.0  ;;  %v847_v51 = vadd.f32 %v8606_v24, %v808_v33  ;;  %v9801_v10 = vor.u32 %v8768_v30, %v8764_v22 }
 0x1b3   : > { %v1502_v55 = vrot.slane %v1435_v42, 4  ;;  %v1503_v57 = vrot.slane %v8778_v41, 4  ;;  %v2553_v58 = vld [vmem:[#allocation2 + $0x90] sm:$0xf8]  ;;  %7136 = vmatpush3.bf16.msra.mxu0 %v7960_v20  ;;  %v881_v63 = vmax.f32 %v849_v40, 0.0  ;;  %v1506_v0 = vrot.slane %v8774_v35, 4 }
 0x1b4   : > { %v8785_v1 = vld [vmem:[#allocation2 + $0x98] sm:$0xf]  ;;  %v2706_v2 = vshrl.u32 %v2553_v58, 16  ;;  %v2709_v54 = vshll.u32 %v2553_v58, 16  ;;  %7169 = vmatprep.subr.bf16.mxu0 %v8770_v31  ;;  %v879_v6 = vmax.f32 %v847_v51, 0.0  ;;  %v7071_v7 = vpop.f32.mrb[28].mxu0 }
 0x1b5   : > { %v1504_v56 = vsel %vm1474_vm3, %v1502_v55, %v1503_v57  ;;  %v2714_v4 = vshrl.u32 %v8785_v1, 16  ;;  %v2717_v9 = vshll.u32 %v8785_v1, 16  ;;  %v1007_v12 = vpack.c.bf16 %v881_v63, %v880_v26  ;;  %v761_v13 = vpop.f32.mrb[29].mxu0  ;;  %v2555_v34 = vld [vmem:[#allocation2 + $0xa0] sm:$0xf8] }
 0x1b6   : > { %v813_v20 = vmul.f32 %v7071_v7, %v8599_v21  ;;  %7106 = vmatmul.mubr.bf16.gmra.mrb[48].mxu0 %v1504_v56  ;;  %v1507_v14 = vsel %vm1474_vm3, %v1505_v44, %v1506_v0  ;;  %v2708_v16 = vrot.slane %v2706_v2, 3  ;;  %v1006_v17 = vpack.c.bf16 %v879_v6, %v878_v50  ;;  %v7072_v23 = vpop.f32.mrb[30].mxu0  ;;  %v8796_v40 = vld [vmem:[#allocation2 + $0xa8] sm:$0xf]  ;;  %v1102_v53 = vld [vmem:[#allocation2 + $0x60] sm:$0xf8] }
 0x1b7   : > { %v811_v18 = vmul.f32 %v8599_v21, %v761_v13  ;;  %7109 = vmatprep.mubr.bf16.mxu0 %v1507_v14  ;;  %v2711_v25 = vrot.slane %v2709_v54, 4  ;;  %v2716_v27 = vrot.slane %v2714_v4, 3  ;;  %v1039_v29 = vrot.slane %v1007_v12, 4  ;;  %v764_v37 = vpop.f32.mrb[31].mxu0 }
 0x1b8   : > { %v852_v32 = vadd.f32 %v8606_v24, %v813_v20  ;;  %v814_v33 = vmul.f32 %v7072_v23, %v8599_v21  ;;  %v2719_v26 = vrot.slane %v2717_v9, 4  ;;  %v1038_v42 = vrot.slane %v1006_v17, 4  ;;  %v8801_v2 = vld [vmem:[#allocation2 + $0xc8] sm:$0xf]  ;;  %v1438_v54 = vld [vmem:[#allocation2 + $0xc0] sm:$0xf0] }
 0x1b9   : > { %v850_v44 = vadd.f32 %v8606_v24, %v811_v18  ;;  %v812_v50 = vmul.f32 %v8599_v21, %v764_v37  ;;  %v2712_v51 = vor.u32 %v2711_v25, %v2708_v16  ;;  %1084 = vst [vmem:[#allocation2 + $0xe8] ss:$-4 sps:$4 sm:$0xff] %v1039_v29   ;;  %v2723_v63 = vshrl.u32 %v2555_v34, 16  ;;  %v1437_v0 = vld [vmem:[#allocation2 + $0xb0] sm:$0xf0] }
 0x1ba   : > { %v884_v55 = vmax.f32 %v852_v32, 0.0  ;;  %v853_v57 = vadd.f32 %v8606_v24, %v814_v33  ;;  %v2720_v58 = vor.u32 %v2719_v26, %v2716_v27  ;;  %1082 = vst [vmem:[#allocation2 + $0xd8] ss:$-4 sps:$4 sm:$0xff] %v1038_v42   ;;  %v2726_v56 = vshll.u32 %v2555_v34, 16  ;;  %v8805_v9 = vld [vmem:[#allocation2 + $0xb8] sm:$0xf] }
 0x1bb   : > { %v882_v6 = vmax.f32 %v850_v44, 0.0  ;;  %v851_v7 = vadd.f32 %v8606_v24, %v812_v50  ;;  %v2731_v4 = vshrl.u32 %v8796_v40, 16  ;;  %v2725_v20 = vrot.slane %v2723_v63, 3  ;;  %v2557_v14 = vld [vmem:[#allocation2 + $0xb0] sm:$0xf8]  ;;  %v7951_v63 = vld [vmem:[#allocation8 + $0x108] sm:$0xff]  }
 0x1bc   : > { %v885_v21 = vmax.f32 %v853_v57, 0.0  ;;  %v2721_v12 = vsel %vm944_vm4, %v2712_v51, %v2720_v58  ;;  %v2734_v13 = vshll.u32 %v8796_v40, 16  ;;  %v2728_v17 = vrot.slane %v2726_v56, 4  ;;  %v8810_v29 = vld [vmem:[#allocation2 + $0xb8] sm:$0xf] }
 0x1bd   : > { %v883_v16 = vmax.f32 %v851_v7, 0.0  ;;  %7249 = vmatprep.mubr.bf16.mxu1 %v2721_v12  ;;  %v2733_v18 = vrot.slane %v2731_v4, 3  ;;  %v1508_v23 = vrot.slane %v1437_v0, 4  ;;  %v1509_v24 = vrot.slane %v8805_v9, 4  ;;  %v2559_v42 = vld [vmem:[#allocation2 + $0xc0] sm:$0xf8] }
 0x1be   : > { %v1009_v25 = vpack.c.bf16 %v885_v21, %v884_v55  ;;  %v2736_v27 = vrot.slane %v2734_v13, 4  ;;  %v1511_v34 = vrot.slane %v1438_v54, 4  ;;  %v2729_v33 = vor.u32 %v2728_v17, %v2725_v20  ;;  %v8814_v58 = vld [vmem:[#allocation2 + $0xc8] sm:$0xf] }
 0x1bf   : > { %v1008_v32 = vpack.c.bf16 %v883_v16, %v882_v6  ;;  %v1512_v37 = vrot.slane %v8801_v2, 4  ;;  %v2740_v26 = vshrl.u32 %v2557_v14, 16  ;;  %v1510_v51 = vsel %vm1474_vm3, %v1508_v23, %v1509_v24 }
 0x1c0   : > { %v1041_v44 = vrot.slane %v1009_v25, 4  ;;  %v2737_v50 = vor.u32 %v2736_v27, %v2733_v18  ;;  %v2743_v57 = vshll.u32 %v2557_v14, 16  ;;  %7110 = vmatmul.mubr.bf16.gmra.mrb[52].mxu0 %v1510_v51  ;;  %v2748_v6 = vshrl.u32 %v8810_v29, 16  ;;  %v8818_v7 = vld [vmem:[#allocation2 + $0xe8] sm:$0xf]  ;;  %v7953_v27 = vld [vmem:[#allocation8 + $0x110] sm:$0xff]  }
 0x1c1   : > { %v1040_v55 = vrot.slane %v1008_v32, 4  ;;  %v1513_v0 = vsel %vm1474_vm3, %v1511_v34, %v1512_v37  ;;  %v2742_v54 = vrot.slane %v2740_v26, 3  ;;  %v2751_v21 = vshll.u32 %v8810_v29, 16  ;;  %v8822_v20 = vld [vmem:[#allocation2 + $0xd8] sm:$0xf] }
 0x1c2   : > { %1088 = vst [vmem:[#allocation2 + $0x108] ss:$-4 sps:$4 sm:$0xff] %v1041_v44   ;;  %v2738_v56 = vsel %vm944_vm4, %v2729_v33, %v2737_v50  ;;  %7113 = vmatprep.mubr.bf16.mxu0 %v1513_v0  ;;  %v2745_v4 = vrot.slane %v2743_v57, 4  ;;  %v2757_v12 = vshrl.u32 %v2559_v42, 16  ;;  %v2750_v13 = vrot.slane %v2748_v6, 3 }
 0x1c3   : > { %1086 = vst [vmem:[#allocation2 + $0xf8] ss:$-4 sps:$4 sm:$0xff] %v1040_v55   ;;  %7250 = vmatmul.mubr.bf16.vlgmr.msra.gmra.mrb[0].mxu1 %v2738_v56  ;;  %v2760_v14 = vshll.u32 %v2559_v42, 16  ;;  %v2765_v16 = vshrl.u32 %v8814_v58, 16  ;;  %v2768_v17 = vshll.u32 %v8814_v58, 16  ;;  %v2753_v25 = vrot.slane %v2751_v21, 4 }
 0x1c4   : > { %v1439_v18 = vld [vmem:[#allocation2 + $0xd0] sm:$0xf0]  ;;  %7266 = vmatpush3.bf16.msra.mxu1 %v8566_v61  ;;  %v2746_v23 = vor.u32 %v2745_v4, %v2742_v54  ;;  %v2759_v24 = vrot.slane %v2757_v12, 3  ;;  %v1440_v32 = vld [vmem:[#allocation2 + $0xe0] sm:$0xf0]  ;;  %v1515_v44 = vrot.slane %v8822_v20, 4 }
 0x1c5   : > { %v1514_v34 = vrot.slane %v1439_v18, 4  ;;  %7267 = vmatprep.subr.bf16.mxu1 %v7951_v63  ;;  %v2762_v33 = vrot.slane %v2760_v14, 4  ;;  %v2767_v37 = vrot.slane %v2765_v16, 3  ;;  %v2770_v26 = vrot.slane %v2768_v17, 4  ;;  %v2561_v42 = vld [vmem:[#allocation2 + $0xd0] sm:$0xf8] }
 0x1c6   : > { %v2754_v50 = vor.u32 %v2753_v25, %v2750_v13  ;;  %v1517_v51 = vrot.slane %v1440_v32, 4  ;;  %v1518_v57 = vrot.slane %v8818_v7, 4  ;;  %v8829_v55 = vld [vmem:[#allocation2 + $0xd8] sm:$0xf]  ;;  %v2774_v61 = vshrl.u32 %v2561_v42, 16 }
 0x1c7   : > { %v2763_v0 = vor.u32 %v2762_v33, %v2759_v24  ;;  %v2771_v54 = vor.u32 %v2770_v26, %v2767_v37  ;;  %v1516_v6 = vsel %vm1474_vm3, %v1514_v34, %v1515_v44  ;;  %v2777_v56 = vshll.u32 %v2561_v42, 16  ;;  %v2563_v4 = vld [vmem:[#allocation2 + $0xe0] sm:$0xf8]  ;;  %v8832_v21 = vld [vmem:[#allocation2 + $0xe8] sm:$0xf]  ;;  %v7955_v18 = vld [vmem:[#allocation8 + $0x118] sm:$0xff]  }
 0x1c8   : > { %7268 = vmatpush3.bf16.msra.mxu1 %v7951_v63  ;;  %v2755_v12 = vsel %vm944_vm4, %v2746_v23, %v2754_v50  ;;  %v1519_v14 = vsel %vm1474_vm3, %v1517_v51, %v1518_v57  ;;  %v2776_v13 = vrot.slane %v2774_v61, 3  ;;  %v2782_v16 = vshrl.u32 %v8829_v55, 16  ;;  %7114 = vmatmul.mubr.bf16.gmra.mrb[56].mxu0 %v1516_v6  ;;  %v7957_v42 = vld [vmem:[#allocation8 + $0x120] sm:$0xff]  }
 0x1c9   : > { %7253 = vmatprep.mubr.bf16.mxu1 %v2755_v12  ;;  %7269 = vmatprep.subr.bf16.mxu1 %v7953_v27  ;;  %v2772_v17 = vsel %vm944_vm4, %v2763_v0, %v2771_v54  ;;  %v2779_v25 = vrot.slane %v2777_v56, 4  ;;  %v2785_v24 = vshll.u32 %v8829_v55, 16  ;;  %v2791_v34 = vshrl.u32 %v2563_v4, 16 }
 0x1ca   : > { %v2784_v32 = vrot.slane %v2782_v16, 3  ;;  %v2794_v33 = vshll.u32 %v2563_v4, 16  ;;  %v2799_v63 = vshrl.u32 %v8832_v21, 16  ;;  %v2802_v23 = vshll.u32 %v8832_v21, 16  ;;  %v8841_v37 = vld [vmem:[#allocation2 + $0xf8] sm:$0xf]  ;;  %7117 = vmatprep.mubr.bf16.mxu0 %v1519_v14 }
 0x1cb   : > { %7254 = vmatmul.mubr.bf16.gmra.mrb[4].mxu1 %v2772_v17  ;;  %v2780_v26 = vor.u32 %v2779_v25, %v2776_v13  ;;  %v2787_v44 = vrot.slane %v2785_v24, 4  ;;  %v2793_v50 = vrot.slane %v2791_v34, 3  ;;  %v1441_v51 = vld [vmem:[#allocation2 + $0xf0] sm:$0xf0]  ;;  %v1521_v57 = vrot.slane %v8841_v37, 4 }
 0x1cc   : > { %7270 = vmatpush3.bf16.msra.mxu1 %v7953_v27  ;;  %v2796_v61 = vrot.slane %v2794_v33, 4  ;;  %v2801_v0 = vrot.slane %v2799_v63, 3  ;;  %v2804_v54 = vrot.slane %v2802_v23, 4  ;;  %v1520_v6 = vrot.slane %v1441_v51, 4  ;;  %v2565_v56 = vld [vmem:[#allocation2 + $0xf0] sm:$0xf8] }
 0x1cd   : > { %7271 = vmatprep.subr.bf16.mxu1 %v7955_v18  ;;  %v2788_v4 = vor.u32 %v2787_v44, %v2784_v32  ;;  %v8844_v12 = vld [vmem:[#allocation2 + $0xf8] sm:$0xf]  ;;  %v2808_v16 = vshrl.u32 %v2565_v56, 16  ;;  %v2811_v17 = vshll.u32 %v2565_v56, 16  ;;  %v2567_v14 = vld [vmem:[#allocation2 + $0x100] sm:$0xf8] }
 0x1ce   : > { %v2797_v25 = vor.u32 %v2796_v61, %v2793_v50  ;;  %v2805_v24 = vor.u32 %v2804_v54, %v2801_v0  ;;  %v1522_v34 = vsel %vm1474_vm3, %v1520_v6, %v1521_v57  ;;  %v2816_v27 = vshrl.u32 %v8844_v12, 16  ;;  %v8850_v33 = vld [vmem:[#allocation2 + $0x108] sm:$0xf]  ;;  %v1098_v61 = vld [vmem:[#allocation2 + $0x40] sm:$0xf8] }
 0x1cf   : > { %v2789_v63 = vsel %vm944_vm4, %v2780_v26, %v2788_v4  ;;  %v2810_v23 = vrot.slane %v2808_v16, 3  ;;  %v2813_v32 = vrot.slane %v2811_v17, 4  ;;  %v2819_v44 = vshll.u32 %v8844_v12, 16  ;;  %v7959_v57 = vld [vmem:[#allocation8 + $0x128] sm:$0xff]  }
 0x1d0   : > { %7272 = vmatpush3.bf16.msra.mxu1 %v7955_v18  ;;  %7257 = vmatprep.mubr.bf16.mxu1 %v2789_v63  ;;  %v2806_v51 = vsel %vm944_vm4, %v2797_v25, %v2805_v24  ;;  %v2818_v56 = vrot.slane %v2816_v27, 3  ;;  %v2825_v13 = vshrl.u32 %v2567_v14, 16  ;;  %v2828_v50 = vshll.u32 %v2567_v14, 16  ;;  %v2544_v63 = vld [vmem:[#allocation2 + $0x48] sm:$0xf] }
 0x1d1   : > { %7273 = vmatprep.subr.bf16.mxu1 %v7957_v42  ;;  %v2814_v0 = vor.u32 %v2813_v32, %v2810_v23  ;;  %v2821_v54 = vrot.slane %v2819_v44, 4  ;;  %v2833_v6 = vshrl.u32 %v8850_v33, 16  ;;  %v2836_v26 = vshll.u32 %v8850_v33, 16  ;;  %7118 = vmatmul.mubr.bf16.gmra.mrb[60].mxu0 %v1522_v34  ;;  %v7961_v23 = vld [vmem:[#allocation8 + $0x130] sm:$0xff]  }
 0x1d2   : > { %v2827_v4 = vrot.slane %v2825_v13, 3  ;;  %v2830_v16 = vrot.slane %v2828_v50, 4  ;;  %v1184_v18 = vrot.slane %v1182_v38, 3  ;;  %v1185_v17 = vshll.u32 %v8673_v11, 16  ;;  %7137 = vmatprep.mubr.bf16.mxu0 %v8697_v45  ;;  %v8862_v50 = vld [vmem:[#allocation2 + $0x40] sm:$0xf0] }
 0x1d3   : > { %7258 = vmatmul.mubr.bf16.gmra.mrb[8].mxu1 %v2806_v51  ;;  %v2822_v25 = vor.u32 %v2821_v54, %v2818_v56  ;;  %v2835_v14 = vrot.slane %v2833_v6, 3  ;;  %v2838_v24 = vrot.slane %v2836_v26, 4  ;;  %v1191_v27 = vshrl.u32 %v1098_v61, 16  ;;  %v8868_v45 = vld [vmem:[#allocation2 + $0x50] sm:$0xf0] }
 0x1d4   : > { %7274 = vmatpush3.bf16.msra.mxu1 %v7957_v42  ;;  %v2831_v32 = vor.u32 %v2830_v16, %v2827_v4  ;;  %v1187_v44 = vrot.slane %v1185_v17, 4  ;;  %v1194_v34 = vshll.u32 %v1098_v61, 16  ;;  %v1199_v13 = vshrl.u32 %v8669_v8, 16  ;;  %v1100_v54 = vld [vmem:[#allocation2 + $0x50] sm:$0xf8] }
 0x1d5   : > { %7275 = vmatprep.subr.bf16.mxu1 %v7959_v57  ;;  %v2823_v11 = vsel %vm944_vm4, %v2814_v0, %v2822_v25  ;;  %v2839_v38 = vor.u32 %v2838_v24, %v2835_v14  ;;  %v8865_v51 = vrot.slane %v1191_v27, 3  ;;  %v1202_v56 = vshll.u32 %v8669_v8, 16  ;;  %v2546_v26 = vld [vmem:[#allocation2 + $0x58] sm:$0xf]  ;;  %v8897_v24 = vld [vmem:[#allocation2 + $0x60] sm:$0xf0] }
 0x1d6   : > { %7261 = vmatprep.mubr.bf16.mxu1 %v2823_v11  ;;  %v1172_v42 = vsel %vm944_vm4, %v1163_v52, %v1171_v48  ;;  %v1188_v61 = vor.u32 %v1187_v44, %v1184_v18  ;;  %v1196_v6 = vrot.slane %v1194_v34, 4  ;;  %v1201_v0 = vrot.slane %v1199_v13, 3  ;;  %v7968_v27 = vld [vmem:[#allocation8 + $0x88] sm:$0xff]   ;;  %v8902_v13 = vld [vmem:[#allocation2 + $0x70] sm:$0xf0] }
 0x1d7   : > { %v8882_v8 = vsel %vm1474_vm3, %v3169_v15, %v3170_v19  ;;  %v1204_v4 = vrot.slane %v1202_v56, 4  ;;  %v3172_v16 = vrot.slane %v8862_v50, 4  ;;  %v3173_v46 = vrot.slane %v2544_v63, 4  ;;  %v7962_v15 = vld [vmem:[#allocation8 + $0x138] sm:$0xff]   ;;  %v7963_v56 = vld [vmem:[#allocation8 + $0x140] sm:$0xff]  }
 0x1d8   : > { %7276 = vmatpush3.bf16.msra.mxu1 %v7959_v57  ;;  %v2840_v5 = vsel %vm944_vm4, %v2831_v32, %v2839_v38  ;;  %v8890_v52 = vsel %vm944_vm4, %v9801_v10, %v1188_v61  ;;  %v3175_v36 = vrot.slane %v8868_v45, 4  ;;  %v1208_v62 = vshrl.u32 %v1100_v54, 16  ;;  %v2548_v57 = vld [vmem:[#allocation2 + $0x68] sm:$0xf] }
 0x1d9   : > { %7277 = vmatprep.subr.bf16.mxu1 %v7961_v23  ;;  %v1197_v19 = vor.u32 %v1196_v6, %v8865_v51  ;;  %v3176_v48 = vrot.slane %v2546_v26, 4  ;;  %v1211_v18 = vshll.u32 %v1100_v54, 16  ;;  %v1216_v17 = vshrl.u32 %v8711_v60, 16  ;;  %7138 = vmatmul.mubr.bf16.vlgmr.msra.gmra.mrb[32].mxu0 %v8733_v39  ;;  %v1104_v51 = vld [vmem:[#allocation2 + $0x70] sm:$0xf8] }
 0x1da   : > { %v1205_v25 = vor.u32 %v1204_v4, %v1201_v0  ;;  %v1210_v14 = vrot.slane %v1208_v62, 3  ;;  %v1219_v22 = vshll.u32 %v8711_v60, 16  ;;  %v1225_v30 = vshrl.u32 %v1102_v53, 16  ;;  %7141 = vmatprep.mubr.bf16.mxu0 %v1172_v42  ;;  %v2550_v0 = vld [vmem:[#allocation2 + $0x78] sm:$0xf]  ;;  %7170 = vmatpush3.bf16.msra.mxu0 %v8770_v31 }
 0x1db   : > { %7262 = vmatmul.mubr.bf16.gmra.mrb[12].mxu1 %v2840_v5  ;;  %v8900_v63 = vsel %vm1474_vm3, %v3172_v16, %v3173_v46  ;;  %v1213_v32 = vrot.slane %v1211_v18, 4  ;;  %v1218_v44 = vrot.slane %v1216_v17, 3  ;;  %v1228_v34 = vshll.u32 %v1102_v53, 16  ;;  %v1106_v16 = vld [vmem:[#allocation2 + $0x80] sm:$0xf8]  ;;  %7171 = vmatprep.subr.bf16.mxu0 %v7968_v27  ;;  %v7964_v17 = vld [vmem:[#allocation8 + $0x148] sm:$0xff]  }
 0x1dc   : > { %7278 = vmatpush3.bf16.msra.mxu1 %v7961_v23  ;;  %7281 = vmatprep.mubr.bf16.mxu1 %v8708_v28  ;;  %v1221_v39 = vrot.slane %v1219_v22, 4  ;;  %v8905_v11 = vrot.slane %v1225_v30, 3  ;;  %v1233_v60 = vshrl.u32 %v8703_v59, 16  ;;  %v1236_v38 = vshll.u32 %v8703_v59, 16  ;;  %v7970_v59 = vld [vmem:[#allocation8 + $0x90] sm:$0xff]  }
 0x1dd   : > { %7279 = vmatprep.subr.bf16.mxu1 %v7962_v15  ;;  %v1214_v54 = vor.u32 %v1213_v32, %v1210_v14  ;;  %v1230_v42 = vrot.slane %v1228_v34, 4  ;;  %v3178_v61 = vrot.slane %v8897_v24, 4  ;;  %v3179_v6 = vrot.slane %v2548_v57, 4  ;;  %v2552_v18 = vld [vmem:[#allocation2 + $0x88] sm:$0xf] }
 0x1de   : > { %v8912_v28 = vsel %vm1474_vm3, %v3175_v36, %v3176_v48  ;;  %v1222_v23 = vor.u32 %v1221_v39, %v1218_v44  ;;  %v1235_v26 = vrot.slane %v1233_v60, 3  ;;  %v1238_v4 = vrot.slane %v1236_v38, 4  ;;  %v8923_v22 = vld [vmem:[#allocation2 + $0x80] sm:$0xf0]  ;;  %7172 = vmatpush3.bf16.msra.mxu0 %v7968_v27  ;;  %v8926_v34 = vld [vmem:[#allocation2 + $0x90] sm:$0xf0] }
 0x1df   : > { %v1206_v46 = vsel %vm944_vm4, %v1197_v19, %v1205_v25  ;;  %v1231_v53 = vor.u32 %v1230_v42, %v8905_v11  ;;  %v3181_v5 = vrot.slane %v8902_v13, 4  ;;  %v1242_v10 = vshrl.u32 %v1104_v51, 16  ;;  %7173 = vmatprep.subr.bf16.mxu0 %v7970_v59  ;;  %v7971_v39 = vld [vmem:[#allocation8 + $0x98] sm:$0xff]   ;;  %v1108_v38 = vld [vmem:[#allocation2 + $0x90] sm:$0xf8] }
 0x1e0   : > { %7280 = vmatpush3.bf16.msra.mxu1 %v7962_v15  ;;  %v8918_v62 = vsel %vm1474_vm3, %v3178_v61, %v3179_v6  ;;  %v3182_v31 = vrot.slane %v2550_v0, 4  ;;  %v1245_v36 = vshll.u32 %v1104_v51, 16  ;;  %v1250_v48 = vshrl.u32 %v8742_v49, 16  ;;  %v7965_v61 = vld [vmem:[#allocation8 + $0x150] sm:$0xff]  }
 0x1e1   : > { %7313 = vmatprep.subr.bf16.mxu1 %v7963_v56  ;;  %v1223_v57 = vsel %vm944_vm4, %v1214_v54, %v1222_v23  ;;  %v1244_v14 = vrot.slane %v1242_v10, 3  ;;  %v1253_v19 = vshll.u32 %v8742_v49, 16  ;;  %v1259_v25 = vshrl.u32 %v1106_v16, 16  ;;  %7142 = vmatmul.mubr.bf16.gmra.mrb[36].mxu0 %v8890_v52 }
 0x1e2   : > { %v1239_v15 = vor.u32 %v1238_v4, %v1235_v26  ;;  %v1247_v30 = vrot.slane %v1245_v36, 4  ;;  %v1252_v32 = vrot.slane %v1250_v48, 3  ;;  %v1262_v44 = vshll.u32 %v1106_v16, 16  ;;  %7145 = vmatprep.mubr.bf16.mxu0 %v1206_v46  ;;  %v1110_v26 = vld [vmem:[#allocation2 + $0xa0] sm:$0xf8]  ;;  %7174 = vmatpush3.bf16.msra.mxu0 %v7970_v59 }
 0x1e3   : > { %7282 = vmatmul.mubr.bf16.vlgmr.msra.gmra.mrb[16].mxu1 %v8751_v47  ;;  %v1255_v11 = vrot.slane %v1253_v19, 4  ;;  %v8929_v60 = vrot.slane %v1259_v25, 3  ;;  %v1267_v49 = vshrl.u32 %v8737_v43, 16  ;;  %v1270_v27 = vshll.u32 %v8737_v43, 16  ;;  %7175 = vmatprep.subr.bf16.mxu0 %v7971_v39  ;;  %v7973_v16 = vld [vmem:[#allocation8 + $0xa0] sm:$0xff]  }
 0x1e4   : > { %7314 = vmatpush3.bf16.msra.mxu1 %v7963_v56  ;;  %7285 = vmatprep.mubr.bf16.mxu1 %v8882_v8  ;;  %v1248_v52 = vor.u32 %v1247_v30, %v1244_v14  ;;  %v1264_v51 = vrot.slane %v1262_v44, 4  ;;  %v3184_v54 = vrot.slane %v8923_v22, 4  ;;  %v3185_v42 = vrot.slane %v2552_v18, 4  ;;  %v8950_v14 = vld [vmem:[#allocation2 + $0xa0] sm:$0xf0] }
 0x1e5   : > { %7315 = vmatprep.subr.bf16.mxu1 %v7964_v17  ;;  %v8936_v47 = vsel %vm1474_vm3, %v3181_v5, %v3182_v31  ;;  %v1256_v6 = vor.u32 %v1255_v11, %v1252_v32  ;;  %v1269_v0 = vrot.slane %v1267_v49, 3  ;;  %v1272_v23 = vrot.slane %v1270_v27, 4  ;;  %v7974_v32 = vld [vmem:[#allocation8 + $0xa8] sm:$0xff]  }
 0x1e6   : > { %v1240_v43 = vsel %vm944_vm4, %v1231_v53, %v1239_v15  ;;  %v1265_v56 = vor.u32 %v1264_v51, %v8929_v60  ;;  %v3187_v8 = vrot.slane %v8926_v34, 4  ;;  %v1276_v4 = vshrl.u32 %v1108_v38, 16  ;;  %v7966_v53 = vld [vmem:[#allocation8 + $0x158] sm:$0xff]   ;;  %7176 = vmatpush3.bf16.msra.mxu0 %v7971_v39  ;;  %v1112_v60 = vld [vmem:[#allocation2 + $0xb0] sm:$0xf8] }
 0x1e7   : > { %v8942_v46 = vsel %vm1474_vm3, %v3184_v54, %v3185_v42  ;;  %v3188_v5 = vrot.slane %v8785_v1, 4  ;;  %v1279_v10 = vshll.u32 %v1108_v38, 16  ;;  %v1284_v31 = vshrl.u32 %v8778_v41, 16  ;;  %v8952_v1 = vld [vmem:[#allocation2 + $0xb0] sm:$0xf0]  ;;  %7177 = vmatprep.subr.bf16.mxu0 %v7973_v16 }
 0x1e8   : > { %7316 = vmatpush3.bf16.msra.mxu1 %v7964_v17  ;;  %v8947_v59 = vsel %vm944_vm4, %v1248_v52, %v1256_v6  ;;  %v1278_v36 = vrot.slane %v1276_v4, 3  ;;  %v1287_v48 = vshll.u32 %v8778_v41, 16  ;;  %v1293_v18 = vshrl.u32 %v1110_v26, 16  ;;  %v1114_v54 = vld [vmem:[#allocation2 + $0xc0] sm:$0xf8] }
 0x1e9   : > { %7317 = vmatprep.subr.bf16.mxu1 %v7965_v61  ;;  %v1273_v19 = vor.u32 %v1272_v23, %v1269_v0  ;;  %v1281_v25 = vrot.slane %v1279_v10, 4  ;;  %v1286_v15 = vrot.slane %v1284_v31, 3  ;;  %v1296_v30 = vshll.u32 %v1110_v26, 16  ;;  %7146 = vmatmul.mubr.bf16.gmra.mrb[40].mxu0 %v1223_v57  ;;  %v7969_v6 = vld [vmem:[#allocation8 + $0x160] sm:$0xff]  }
 0x1ea   : > { %v1289_v17 = vrot.slane %v1287_v48, 4  ;;  %v8954_v44 = vrot.slane %v1293_v18, 3  ;;  %v1301_v11 = vshrl.u32 %v8774_v35, 16  ;;  %v1304_v41 = vshll.u32 %v8774_v35, 16  ;;  %7149 = vmatprep.mubr.bf16.mxu0 %v1240_v43  ;;  %7178 = vmatpush3.bf16.msra.mxu0 %v7973_v16  ;;  %v7976_v43 = vld [vmem:[#allocation8 + $0xb0] sm:$0xff]  }
 0x1eb   : > { %7286 = vmatmul.mubr.bf16.gmra.mrb[20].mxu1 %v8900_v63  ;;  %v1282_v49 = vor.u32 %v1281_v25, %v1278_v36  ;;  %v1298_v27 = vrot.slane %v1296_v30, 4  ;;  %v3190_v38 = vrot.slane %v8950_v14, 4  ;;  %v3191_v39 = vrot.slane %v8796_v40, 4  ;;  %7179 = vmatprep.subr.bf16.mxu0 %v7974_v32  ;;  %v8977_v10 = vld [vmem:[#allocation2 + $0xc0] sm:$0xf0] }
 0x1ec   : > { %7289 = vmatprep.mubr.bf16.mxu1 %v8912_v28  ;;  %7318 = vmatpush3.bf16.msra.mxu1 %v7965_v61  ;;  %v8963_v57 = vsel %vm1474_vm3, %v3187_v8, %v3188_v5  ;;  %v1290_v52 = vor.u32 %v1289_v17, %v1286_v15  ;;  %v1303_v51 = vrot.slane %v1301_v11, 3  ;;  %v1306_v35 = vrot.slane %v1304_v41, 4  ;;  %v8979_v18 = vld [vmem:[#allocation2 + $0xd0] sm:$0xf0]  ;;  %v7977_v41 = vld [vmem:[#allocation8 + $0xb8] sm:$0xff]  }
 0x1ed   : > { %v1274_v42 = vsel %vm944_vm4, %v1265_v56, %v1273_v19  ;;  %7319 = vmatprep.subr.bf16.mxu1 %v7966_v53  ;;  %v1299_v63 = vor.u32 %v1298_v27, %v8954_v44  ;;  %v3193_v0 = vrot.slane %v8952_v1, 4  ;;  %v1310_v23 = vshrl.u32 %v1112_v60, 16 }
 0x1ee   : > { %v8969_v40 = vsel %vm1474_vm3, %v3190_v38, %v3191_v39  ;;  %v3194_v28 = vrot.slane %v8810_v29, 4  ;;  %v1313_v61 = vshll.u32 %v1112_v60, 16  ;;  %v1318_v26 = vshrl.u32 %v8805_v9, 16  ;;  %v7972_v29 = vld [vmem:[#allocation8 + $0x168] sm:$0xff]   ;;  %7180 = vmatpush3.bf16.msra.mxu0 %v7974_v32  ;;  %v1118_v32 = vld [vmem:[#allocation2 + $0xe0] sm:$0xf8] }
 0x1ef   : > { %v8974_v56 = vsel %vm944_vm4, %v1282_v49, %v1290_v52  ;;  %v1312_v8 = vrot.slane %v1310_v23, 3  ;;  %v1321_v4 = vshll.u32 %v8805_v9, 16  ;;  %v1327_v5 = vshrl.u32 %v1114_v54, 16  ;;  %v1116_v9 = vld [vmem:[#allocation2 + $0xd0] sm:$0xf8]  ;;  %7181 = vmatprep.subr.bf16.mxu0 %v7976_v43 }
 0x1f0   : > { %7320 = vmatpush3.bf16.msra.mxu1 %v7966_v53  ;;  %v1307_v16 = vor.u32 %v1306_v35, %v1303_v51  ;;  %v1315_v31 = vrot.slane %v1313_v61, 4  ;;  %v1320_v36 = vrot.slane %v1318_v26, 3  ;;  %v1330_v48 = vshll.u32 %v1114_v54, 16  ;;  %v7975_v54 = vld [vmem:[#allocation8 + $0x170] sm:$0xff]  }
 0x1f1   : > { %7321 = vmatprep.subr.bf16.mxu1 %v7969_v6  ;;  %v1323_v19 = vrot.slane %v1321_v4, 4  ;;  %v8981_v25 = vrot.slane %v1327_v5, 3  ;;  %v1335_v15 = vshrl.u32 %v8801_v2, 16  ;;  %v1338_v30 = vshll.u32 %v8801_v2, 16  ;;  %7150 = vmatmul.mubr.bf16.gmra.mrb[44].mxu0 %v8947_v59 }
 0x1f2   : > { %v1316_v53 = vor.u32 %v1315_v31, %v1312_v8  ;;  %v1332_v17 = vrot.slane %v1330_v48, 4  ;;  %v3196_v44 = vrot.slane %v8977_v10, 4  ;;  %v3197_v11 = vrot.slane %v8814_v58, 4  ;;  %7153 = vmatprep.mubr.bf16.mxu0 %v1274_v42  ;;  %7182 = vmatpush3.bf16.msra.mxu0 %v7976_v43 }
 0x1f3   : > { %7290 = vmatmul.mubr.bf16.gmra.mrb[24].mxu1 %v8918_v62  ;;  %v8990_v60 = vsel %vm1474_vm3, %v3193_v0, %v3194_v28  ;;  %v1324_v49 = vor.u32 %v1323_v19, %v1320_v36  ;;  %v1337_v2 = vrot.slane %v1335_v15, 3  ;;  %v1340_v27 = vrot.slane %v1338_v30, 4  ;;  %v9005_v0 = vld [vmem:[#allocation2 + $0xe0] sm:$0xf0]  ;;  %7183 = vmatprep.subr.bf16.mxu0 %v7977_v41  ;;  %v7978_v19 = vld [vmem:[#allocation8 + $0x178] sm:$0xff]  }
 0x1f4   : > { %7293 = vmatprep.mubr.bf16.mxu1 %v8936_v47  ;;  %v1308_v59 = vsel %vm944_vm4, %v1299_v63, %v1307_v16  ;;  %7322 = vmatpush3.bf16.msra.mxu1 %v7969_v6  ;;  %v1333_v38 = vor.u32 %v1332_v17, %v8981_v25  ;;  %v3199_v58 = vrot.slane %v8979_v18, 4  ;;  %v1344_v39 = vshrl.u32 %v1116_v9, 16  ;;  %v1120_v16 = vld [vmem:[#allocation2 + $0xf0] sm:$0xf8]  ;;  %v3130_v17 = vld [vmem:[#allocation2 + $0x100] sm:$0xf0] }
 0x1f5   : > { %7323 = vmatprep.subr.bf16.mxu1 %v7972_v29  ;;  %v8997_v62 = vsel %vm1474_vm3, %v3196_v44, %v3197_v11  ;;  %v3200_v52 = vrot.slane %v8829_v55, 4  ;;  %v1347_v51 = vshll.u32 %v1116_v9, 16  ;;  %v1352_v35 = vshrl.u32 %v8822_v20, 16  ;;  %v9007_v55 = vld [vmem:[#allocation2 + $0xf0] sm:$0xf0]  ;;  %v9015_v9 = vld [vmem:[#allocation8 + $0xc0] sm:$0xff]  }
 0x1f6   : > { %v9002_v47 = vsel %vm944_vm4, %v1316_v53, %v1324_v49  ;;  %v1346_v42 = vrot.slane %v1344_v39, 3  ;;  %v1355_v63 = vshll.u32 %v8822_v20, 16  ;;  %v1361_v6 = vshrl.u32 %v1118_v32, 16  ;;  %7184 = vmatpush3.bf16.msra.mxu0 %v7977_v41 }
 0x1f7   : > { %v1341_v23 = vor.u32 %v1340_v27, %v1337_v2  ;;  %v1349_v28 = vrot.slane %v1347_v51, 4  ;;  %v1354_v61 = vrot.slane %v1352_v35, 3  ;;  %v1364_v26 = vshll.u32 %v1118_v32, 16  ;;  %7217 = vmatprep.subr.bf16.mxu0 %v9015_v9  ;;  %v8012_v51 = vld [vmem:[#allocation2 + $0x10] sm:$0xf0] }
 0x1f8   : > { %7324 = vmatpush3.bf16.msra.mxu1 %v7972_v29  ;;  %v1357_v8 = vrot.slane %v1355_v63, 4  ;;  %v1363_v4 = vrot.slane %v1361_v6, 3  ;;  %v1369_v43 = vshrl.u32 %v8818_v7, 16  ;;  %v1372_v5 = vshll.u32 %v8818_v7, 16  ;;  %v1974_v63 = vld [vmem:[#allocation2 + $0x8] sm:$0x1f] }
 0x1f9   : > { %v1350_v31 = vor.u32 %v1349_v28, %v1346_v42  ;;  %v1366_v20 = vrot.slane %v1364_v26, 4  ;;  %7325 = vmatprep.subr.bf16.mxu1 %v7975_v54  ;;  %v3202_v36 = vrot.slane %v9005_v0, 4  ;;  %v3203_v48 = vrot.slane %v8832_v21, 4  ;;  %7154 = vmatmul.mubr.bf16.gmra.mrb[48].mxu0 %v8974_v56  ;;  %v8013_v28 = vld [vmem:[#allocation2] sm:$0xf0] }
 0x1fa   : > { %v1358_v25 = vor.u32 %v1357_v8, %v1354_v61  ;;  %v1371_v29 = vrot.slane %v1369_v43, 3  ;;  %v1374_v15 = vrot.slane %v1372_v5, 4  ;;  %v3205_v30 = vrot.slane %v9007_v55, 4  ;;  %7157 = vmatprep.mubr.bf16.mxu0 %v1308_v59  ;;  %v9033_v59 = vld [vmem:[#allocation8 + $0x180] sm:$0xff]  }
 0x1fb   : > { %7294 = vmatmul.mubr.bf16.gmra.mrb[28].mxu1 %v8942_v46  ;;  %v1342_v7 = vsel %vm944_vm4, %v1333_v38, %v1341_v23  ;;  %v9021_v21 = vsel %vm1474_vm3, %v3199_v58, %v3200_v52  ;;  %v3206_v53 = vrot.slane %v8844_v12, 4  ;;  %v1378_v56 = vshrl.u32 %v1120_v16, 16  ;;  %v3485_v46 = vld [vmem:[#allocation2 + $0x18] sm:$0x1f] }
 0x1fc   : > { %7297 = vmatprep.mubr.bf16.mxu1 %v8963_v57  ;;  %v1367_v44 = vor.u32 %v1366_v20, %v1363_v4  ;;  %v1375_v11 = vor.u32 %v1374_v15, %v1371_v29  ;;  %7326 = vmatpush3.bf16.msra.mxu1 %v7975_v54  ;;  %v1381_v41 = vshll.u32 %v1120_v16, 16  ;;  %v1386_v49 = vshrl.u32 %v8841_v37, 16 }
 0x1fd   : > { %v9027_v2 = vsel %vm944_vm4, %v1350_v31, %v1358_v25  ;;  %v9030_v27 = vsel %vm1474_vm3, %v3202_v36, %v3203_v48  ;;  %v1380_v32 = vrot.slane %v1378_v56, 3  ;;  %v1389_v12 = vshll.u32 %v8841_v37, 16  ;;  %7327 = vmatprep.subr.bf16.mxu1 %v7978_v19  ;;  %v1975_v36 = vld [vmem:[#allocation2 + $0x18] sm:$0x1f]  ;;  %v8014_v25 = vld [vmem:[#allocation2 + $0x10] sm:$0xf0] }
 0x1fe   : > { %v9036_v57 = vsel %vm1474_vm3, %v3205_v30, %v3206_v53  ;;  %v1383_v38 = vrot.slane %v1381_v41, 4  ;;  %v1388_v58 = vrot.slane %v1386_v49, 3  ;;  %v3208_v39 = vrot.slane %v3130_v17, 4  ;;  %v1976_v41 = vld [vmem:[#allocation2 + $0x28] sm:$0x1f] }
 0x1ff   : > { %v1391_v52 = vrot.slane %v1389_v12, 4  ;;  %v3502_v35 = vshrl.u32 %v8012_v51, 16  ;;  %v3505_v54 = vshll.u32 %v8012_v51, 16  ;;  %v3510_v42 = vshrl.u32 %v3485_v46, 16 }
 0x200   : > { %v1376_v6 = vsel %vm944_vm4, %v1367_v44, %v1375_v11  ;;  %v3209_v23 = vrot.slane %v8850_v33, 4  ;;  %7328 = vmatpush3.bf16.msra.mxu1 %v7978_v19  ;;  %v3513_v37 = vshll.u32 %v3485_v46, 16  ;;  %v1992_v61 = vshrl.u32 %v8013_v28, 16  ;;  %v8015_v46 = vld [vmem:[#allocation2 + $0x20] sm:$0xf0] }
 0x201   : > { %v1384_v26 = vor.u32 %v1383_v38, %v1380_v32  ;;  %v3504_v8 = vrot.slane %v3502_v35, 4  ;;  %v3507_v4 = vrot.slane %v3505_v54, 5  ;;  %v3512_v43 = vrot.slane %v3510_v42, 4  ;;  %7361 = vmatprep.subr.bf16.mxu1 %v9033_v59  ;;  %7158 = vmatmul.mubr.bf16.gmra.mrb[52].mxu0 %v9002_v47 }
 0x202   : > { %v1392_v5 = vor.u32 %v1391_v52, %v1388_v58  ;;  %v3515_v16 = vrot.slane %v3513_v37, 5  ;;  %v1995_v31 = vshll.u32 %v8013_v28, 16  ;;  %v2000_v20 = vshrl.u32 %v1974_v63, 16  ;;  %7161 = vmatprep.mubr.bf16.mxu0 %v1342_v7  ;;  %v3486_v52 = vld [vmem:[#allocation2 + $0x28] sm:$0x1f] }
 0x203   : > { %7298 = vmatmul.mubr.bf16.gmra.mrb[0].mxu1 %v8969_v40  ;;  %v3508_v33 = vor.u32 %v3507_v4, %v3504_v8  ;;  %v1994_v48 = vrot.slane %v1992_v61, 4  ;;  %v2003_v19 = vshll.u32 %v1974_v63, 16  ;;  %v2009_v29 = vshrl.u32 %v8014_v25, 16  ;;  %v8016_v61 = vld [vmem:[#allocation2 + $0x20] sm:$0xf0] }
 0x204   : > { %7301 = vmatprep.mubr.bf16.mxu1 %v8990_v60  ;;  %v3516_v15 = vor.u32 %v3515_v16, %v3512_v43  ;;  %v1997_v30 = vrot.slane %v1995_v31, 5  ;;  %v2002_v53 = vrot.slane %v2000_v20, 4  ;;  %v2012_v56 = vshll.u32 %v8014_v25, 16  ;;  %v3487_v43 = vld [vmem:[#allocation2 + $0x38] sm:$0x1f] }
 0x205   : > { %v2005_v47 = vrot.slane %v2003_v19, 5  ;;  %v2011_v17 = vrot.slane %v2009_v29, 4  ;;  %v2017_v44 = vshrl.u32 %v1975_v36, 16  ;;  %v2020_v11 = vshll.u32 %v1975_v36, 16  ;;  %v8017_v19 = vld [vmem:[#allocation2 + $0x30] sm:$0xf0] }
 0x206   : > { %v1393_v49 = vsel %vm944_vm4, %v1384_v26, %v1392_v5  ;;  %v9046_v40 = vsel %vm1474_vm3, %v3208_v39, %v3209_v23  ;;  %v2014_v7 = vrot.slane %v2012_v56, 5  ;;  %v2026_v32 = vshrl.u32 %v8015_v46, 16 }
 0x207   : > { %v9049_v12 = vsel %vm1990_vm7, %v3508_v33, %v3516_v15  ;;  %v2019_v60 = vrot.slane %v2017_v44, 4  ;;  %v2022_v38 = vrot.slane %v2020_v11, 5  ;;  %v2029_v58 = vshll.u32 %v8015_v46, 16 }
 0x208   : > { %v1998_v51 = vor.u32 %v1997_v30, %v1994_v48  ;;  %v2028_v35 = vrot.slane %v2026_v32, 4  ;;  %v2034_v54 = vshrl.u32 %v1976_v41, 16  ;;  %v2037_v42 = vshll.u32 %v1976_v41, 16 }
 0x209   : > { %v2006_v63 = vor.u32 %v2005_v47, %v2002_v53  ;;  %v2015_v37 = vor.u32 %v2014_v7, %v2011_v17  ;;  %v2031_v28 = vrot.slane %v2029_v58, 5  ;;  %v3519_v39 = vshrl.u32 %v8016_v61, 16  ;;  %7162 = vmatmul.mubr.bf16.gmra.mrb[56].mxu0 %v9027_v2  ;;  %v1977_v53 = vld [vmem:[#allocation2 + $0x38] sm:$0x1f]  ;;  %v8018_v47 = vld [vmem:[#allocation2 + $0x30] sm:$0xf0] }
 0x20a   : > { %v2036_v23 = vrot.slane %v2034_v54, 4  ;;  %v2039_v26 = vrot.slane %v2037_v42, 5  ;;  %v3522_v8 = vshll.u32 %v8016_v61, 16  ;;  %v3527_v4 = vshrl.u32 %v3486_v52, 16  ;;  %7165 = vmatprep.mubr.bf16.mxu0 %v1376_v6 }
 0x20b   : > { %7302 = vmatmul.mubr.bf16.gmra.mrb[4].mxu1 %v8997_v62  ;;  %v2023_v5 = vor.u32 %v2022_v38, %v2019_v60  ;;  %v2032_v16 = vor.u32 %v2031_v28, %v2028_v35  ;;  %v3521_v31 = vrot.slane %v3519_v39, 4  ;;  %v3530_v20 = vshll.u32 %v3486_v52, 16  ;;  %v1978_v38 = vld [vmem:[#allocation2 + $0x48] sm:$0x1f]  ;;  %v8019_v35 = vld [vmem:[#allocation2 + $0x40] sm:$0xf0] }
 0x20c   : > { %7305 = vmatprep.mubr.bf16.mxu1 %v9021_v21  ;;  %v2040_v36 = vor.u32 %v2039_v26, %v2036_v23  ;;  %v3524_v33 = vrot.slane %v3522_v8, 5  ;;  %v3529_v48 = vrot.slane %v3527_v4, 4  ;;  %v3536_v25 = vshrl.u32 %v8017_v19, 16  ;;  %v3488_v39 = vld [vmem:[#allocation2 + $0x48] sm:$0x1f] }
 0x20d   : > { %v3532_v2 = vrot.slane %v3530_v20, 5  ;;  %v3539_v29 = vshll.u32 %v8017_v19, 16  ;;  %v3544_v15 = vshrl.u32 %v3487_v43, 16  ;;  %v3547_v30 = vshll.u32 %v3487_v43, 16 }
 0x20e   : > { %v2007_v56 = vsel %vm1990_vm7, %v1998_v51, %v2006_v63  ;;  %v3525_v62 = vor.u32 %v3524_v33, %v3521_v31  ;;  %v3538_v6 = vrot.slane %v3536_v25, 4  ;;  %v2043_v17 = vshrl.u32 %v8018_v47, 16 }
 0x20f   : > { %v3533_v44 = vor.u32 %v3532_v2, %v3529_v48  ;;  %v3541_v11 = vrot.slane %v3539_v29, 5  ;;  %v3546_v41 = vrot.slane %v3544_v15, 4  ;;  %v3549_v21 = vrot.slane %v3547_v30, 5  ;;  %v961_v2 = vld [vmem:[#allocation2 + $0x68] sm:$0x10] }
 0x210   : > { %v9055_v7 = vrot.slane %v2043_v17, 4  ;;  %v2046_v46 = vshll.u32 %v8018_v47, 16  ;;  %v2051_v32 = vshrl.u32 %v1977_v53, 16  ;;  %v2054_v60 = vshll.u32 %v1977_v53, 16 }
 0x211   : > { %v2024_v58 = vsel %vm1990_vm7, %v2015_v37, %v2023_v5  ;;  %v2041_v52 = vsel %vm1990_vm7, %v2032_v16, %v2040_v36  ;;  %v9060_v51 = vsel %vm1990_vm7, %v3525_v62, %v3533_v44  ;;  %v2060_v54 = vshrl.u32 %v8019_v35, 16  ;;  %7166 = vmatmul.mubr.bf16.gmra.mrb[60].mxu0 %v1393_v49  ;;  %v958_v16 = vld [vmem:[#allocation2 + $0x58] sm:$0x10] }
 0x212   : > { %v2048_v42 = vrot.slane %v2046_v46, 5  ;;  %v2053_v63 = vrot.slane %v2051_v32, 4  ;;  %v2056_v28 = vrot.slane %v2054_v60, 5  ;;  %v2063_v61 = vshll.u32 %v8019_v35, 16  ;;  %7185 = vmatprep.mubr.bf16.mxu0 %v2007_v56  ;;  %v8021_v60 = vld [vmem:[#allocation2 + $0x60] sm:$0xf0] }
 0x213   : > { %7306 = vmatmul.mubr.bf16.gmra.mrb[8].mxu1 %v9030_v27  ;;  %v3542_v23 = vor.u32 %v3541_v11, %v3538_v6  ;;  %v2062_v26 = vrot.slane %v2060_v54, 4  ;;  %v2068_v8 = vshrl.u32 %v1978_v38, 16  ;;  %v2071_v37 = vshll.u32 %v1978_v38, 16  ;;  %v8020_v6 = vld [vmem:[#allocation2 + $0x50] sm:$0xf0] }
 0x214   : > { %7309 = vmatprep.mubr.bf16.mxu1 %v9036_v57  ;;  %v3550_v4 = vor.u32 %v3549_v21, %v3546_v41  ;;  %v2049_v43 = vor.u32 %v2048_v42, %v9055_v7  ;;  %v2065_v5 = vrot.slane %v2063_v61, 5  ;;  %v3553_v49 = vshrl.u32 %v8862_v50, 16  ;;  %v964_v41 = vld [vmem:[#allocation2 + $0x78] sm:$0x10] }
 0x215   : > { %v2070_v31 = vrot.slane %v2068_v8, 4  ;;  %v2073_v20 = vrot.slane %v2071_v37, 5  ;;  %v3556_v36 = vshll.u32 %v8862_v50, 16  ;;  %v3561_v33 = vshrl.u32 %v3488_v39, 16  ;;  %v8023_v37 = vld [vmem:[#allocation2 + $0x70] sm:$0xf0] }
 0x216   : > { %v2057_v27 = vor.u32 %v2056_v28, %v2053_v63  ;;  %v2066_v48 = vor.u32 %v2065_v5, %v2062_v26  ;;  %v3555_v19 = vrot.slane %v3553_v49, 4  ;;  %v3564_v25 = vshll.u32 %v3488_v39, 16 }
 0x217   : > { %v2074_v29 = vor.u32 %v2073_v20, %v2070_v31  ;;  %v3558_v15 = vrot.slane %v3556_v36, 5  ;;  %v3563_v57 = vrot.slane %v3561_v33, 4  ;;  %v959_v30 = vsel %vm8576_vm6, 0, %v958_v16  ;;  %v7980_v20 = vld [vmem:[#allocation8 + $0x188] sm:$0xff]  }
 0x218   : > { %v3566_v53 = vrot.slane %v3564_v25, 5  ;;  %960 = vst [vmem:[#allocation2 + $0x58] sm:$0x10] %v959_v30  ;;  %v3570_v56 = vshrl.u32 %v8868_v45, 16  ;;  %v3573_v62 = vshll.u32 %v8868_v45, 16  ;;  %v2077_v50 = vshrl.u32 %v8020_v6, 16 }
 0x219   : > { %v9072_v47 = vsel %vm1990_vm7, %v3542_v23, %v3550_v4  ;;  %v3559_v17 = vor.u32 %v3558_v15, %v3555_v19  ;;  %v2080_v44 = vshll.u32 %v8020_v6, 16  ;;  %v962_v11 = vsel %vm8576_vm6, 0, %v961_v2  ;;  %7186 = vmatmul.mubr.bf16.vlgmr.msra.gmra.mrb[32].mxu0 %v2024_v58  ;;  %v8022_v23 = vld [vmem:[#allocation8 + $0xc8] sm:$0xff]  }
 0x21a   : > { %v3567_v21 = vor.u32 %v3566_v53, %v3563_v57  ;;  %v9076_v7 = vrot.slane %v3570_v56, 4  ;;  %v9078_v46 = vrot.slane %v3573_v62, 5  ;;  %v9080_v32 = vrot.slane %v2077_v50, 4  ;;  %963 = vst [vmem:[#allocation2 + $0x68] sm:$0x10] %v962_v11  ;;  %7189 = vmatprep.mubr.bf16.mxu0 %v2041_v52  ;;  %7218 = vmatpush3.bf16.msra.mxu0 %v9015_v9  ;;  %v8024_v57 = vld [vmem:[#allocation8 + $0xd0] sm:$0xff]  }
 0x21b   : > { %7310 = vmatmul.mubr.bf16.gmra.mrb[12].mxu1 %v9046_v40  ;;  %v9083_v45 = vrot.slane %v2080_v44, 5  ;;  %v2094_v38 = vshrl.u32 %v8021_v60, 16  ;;  %v2097_v35 = vshll.u32 %v8021_v60, 16  ;;  %v3587_v54 = vshrl.u32 %v8897_v24, 16  ;;  %v967_v40 = vld [vmem:[#allocation2 + $0x88] sm:$0x10]  ;;  %7219 = vmatprep.subr.bf16.mxu0 %v8022_v23 }
 0x21c   : > { %7329 = vmatprep.mubr.bf16.mxu1 %v9049_v12  ;;  %v2058_v58 = vsel %vm1990_vm7, %v2049_v43, %v2057_v27  ;;  %v2075_v42 = vsel %vm1990_vm7, %v2066_v48, %v2074_v29  ;;  %v3590_v63 = vshll.u32 %v8897_v24, 16  ;;  %v965_v28 = vsel %vm8576_vm6, 0, %v964_v41 }
 0x21d   : > { %v9094_v52 = vsel %vm1990_vm7, %v3559_v17, %v3567_v21  ;;  %v9096_v61 = vrot.slane %v2094_v38, 4  ;;  %v9098_v39 = vrot.slane %v2097_v35, 5  ;;  %v9100_v12 = vrot.slane %v3587_v54, 4  ;;  %966 = vst [vmem:[#allocation2 + $0x78] sm:$0x10] %v965_v28 }
 0x21e   : > { %v9102_v26 = vrot.slane %v3590_v63, 5  ;;  %v3604_v24 = vshrl.u32 %v8902_v13, 16  ;;  %v3607_v8 = vshll.u32 %v8902_v13, 16  ;;  %v2111_v9 = vshrl.u32 %v8023_v37, 16  ;;  %7220 = vmatpush3.bf16.msra.mxu0 %v8022_v23 }
 0x21f   : > { %v3489_v4 = vld [vmem:[#allocation2 + $0x58] sm:$0x1f]  ;;  %v3576_v43 = vor.u32 %v9078_v46, %v9076_v7  ;;  %v2083_v49 = vor.u32 %v9083_v45, %v9080_v32  ;;  %v2114_v16 = vshll.u32 %v8023_v37, 16  ;;  %v968_v31 = vsel %vm8576_vm6, 0, %v967_v40  ;;  %7221 = vmatprep.subr.bf16.mxu0 %v8024_v57 }
 0x220   : > { %v1979_v5 = vld [vmem:[#allocation2 + $0x58] sm:$0x1f]  ;;  %v3578_v36 = vshrl.u32 %v3489_v4, 16  ;;  %v3581_v33 = vshll.u32 %v3489_v4, 16  ;;  %969 = vst [vmem:[#allocation2 + $0x88] sm:$0x10] %v968_v31  ;;  %v2100_v19 = vor.u32 %v9098_v39, %v9096_v61  ;;  %v3593_v2 = vor.u32 %v9102_v26, %v9100_v12 }
 0x221   : > { %v2085_v27 = vshrl.u32 %v1979_v5, 16  ;;  %v2088_v48 = vshll.u32 %v1979_v5, 16  ;;  %v1980_v13 = vld [vmem:[#allocation2 + $0x68] sm:$0x1f]  ;;  %v9116_v29 = vrot.slane %v3604_v24, 4  ;;  %v9118_v15 = vrot.slane %v3607_v8, 5  ;;  %7190 = vmatmul.mubr.bf16.gmra.mrb[36].mxu0 %v2058_v58 }
 0x222   : > { %v3490_v25 = vld [vmem:[#allocation2 + $0x68] sm:$0x1f]  ;;  %v3580_v30 = vrot.slane %v3578_v36, 4  ;;  %v3583_v53 = vrot.slane %v3581_v33, 5  ;;  %7193 = vmatprep.mubr.bf16.mxu0 %v2075_v42  ;;  %v2102_v6 = vshrl.u32 %v1980_v13, 16  ;;  %v2105_v50 = vshll.u32 %v1980_v13, 16  ;;  %7222 = vmatpush3.bf16.msra.mxu0 %v8024_v57 }
 0x223   : > { %v2087_v56 = vrot.slane %v2085_v27, 4  ;;  %v2090_v62 = vrot.slane %v2088_v48, 5  ;;  %7330 = vmatmul.mubr.bf16.vlgmr.msra.gmra.mrb[16].mxu1 %v9060_v51  ;;  %v3595_v17 = vshrl.u32 %v3490_v25, 16  ;;  %v3598_v44 = vshll.u32 %v3490_v25, 16  ;;  %v7981_v51 = vld [vmem:[#allocation8 + $0x190] sm:$0xff]   ;;  %v8027_v33 = vld [vmem:[#allocation8 + $0xe0] sm:$0xff]  }
 0x224   : > { %7362 = vmatpush3.bf16.msra.mxu1 %v9033_v59  ;;  %7333 = vmatprep.mubr.bf16.mxu1 %v9072_v47  ;;  %v3584_v11 = vor.u32 %v3583_v53, %v3580_v30  ;;  %v3491_v21 = vld [vmem:[#allocation2 + $0x78] sm:$0x1f]  ;;  %v3610_v7 = vor.u32 %v9118_v15, %v9116_v29  ;;  %v2104_v32 = vrot.slane %v2102_v6, 4  ;;  %v2107_v45 = vrot.slane %v2105_v50, 5  ;;  %v8026_v26 = vld [vmem:[#allocation2 + $0x80] sm:$0xf0] }
 0x225   : > { %v2091_v41 = vor.u32 %v2090_v62, %v2087_v56  ;;  %v1981_v46 = vld [vmem:[#allocation2 + $0x78] sm:$0x1f]  ;;  %7363 = vmatprep.subr.bf16.mxu1 %v7980_v20  ;;  %v3597_v60 = vrot.slane %v3595_v17, 4  ;;  %v3600_v38 = vrot.slane %v3598_v44, 5  ;;  %v3612_v54 = vshrl.u32 %v3491_v21, 16  ;;  %v7983_v56 = vld [vmem:[#allocation8 + $0x1a0] sm:$0xff]  }
 0x226   : > { %v3585_v35 = vsel %vm1990_vm7, %v3576_v43, %v3584_v11  ;;  %v3615_v59 = vshll.u32 %v3491_v21, 16  ;;  %v9126_v58 = vrot.slane %v2111_v9, 4  ;;  %v8025_v47 = vld [vmem:[#allocation8 + $0xd8] sm:$0xff]   ;;  %v2108_v42 = vor.u32 %v2107_v45, %v2104_v32  ;;  %v973_v17 = vld [vmem:[#allocation2 + $0xa8] sm:$0x10] }
 0x227   : > { %7223 = vmatprep.subr.bf16.mxu0 %v8025_v47  ;;  %v3601_v63 = vor.u32 %v3600_v38, %v3597_v60  ;;  %v9128_v28 = vrot.slane %v2114_v16, 5  ;;  %v2119_v40 = vshrl.u32 %v1981_v46, 16  ;;  %v3614_v61 = vrot.slane %v3612_v54, 4  ;;  %v1982_v23 = vld [vmem:[#allocation2 + $0x88] sm:$0x1f]  ;;  %v7982_v43 = vld [vmem:[#allocation8 + $0x198] sm:$0xff]  }
 0x228   : > { %7364 = vmatpush3.bf16.msra.mxu1 %v7980_v20  ;;  %v3617_v39 = vrot.slane %v3615_v59, 5  ;;  %v2122_v12 = vshll.u32 %v1981_v46, 16  ;;  %v2128_v24 = vshrl.u32 %v8026_v26, 16  ;;  %v2092_v8 = vsel %vm1990_vm7, %v2083_v49, %v2091_v41  ;;  %v3492_v5 = vld [vmem:[#allocation2 + $0x88] sm:$0x1f]  ;;  %7224 = vmatpush3.bf16.msra.mxu0 %v8025_v47 }
 0x229   : > { %v2109_v37 = vsel %vm1990_vm7, %v2100_v19, %v2108_v42  ;;  %7365 = vmatprep.subr.bf16.mxu1 %v7981_v51  ;;  %v9133_v9 = vsel %vm1990_vm7, %v3593_v2, %v3601_v63  ;;  %v2121_v4 = vrot.slane %v2119_v40, 4  ;;  %7194 = vmatmul.mubr.bf16.gmra.mrb[40].mxu0 %v2092_v8  ;;  %v2131_v36 = vshll.u32 %v8026_v26, 16  ;;  %v970_v15 = vld [vmem:[#allocation2 + $0x98] sm:$0x10]  ;;  %v8028_v44 = vld [vmem:[#allocation8 + $0xe8] sm:$0xff]  }
 0x22a   : > { %v3618_v16 = vor.u32 %v3617_v39, %v3614_v61  ;;  %v2124_v31 = vrot.slane %v2122_v12, 5  ;;  %v2130_v20 = vrot.slane %v2128_v24, 4  ;;  %7225 = vmatprep.subr.bf16.mxu0 %v8027_v33  ;;  %7197 = vmatprep.mubr.bf16.mxu0 %v2109_v37  ;;  %v2136_v49 = vshrl.u32 %v1982_v23, 16  ;;  %v8030_v59 = vld [vmem:[#allocation2 + $0xa0] sm:$0xf0]  ;;  %v7984_v42 = vld [vmem:[#allocation8 + $0x1a8] sm:$0xff]  }
 0x22b   : > { %7334 = vmatmul.mubr.bf16.gmra.mrb[20].mxu1 %v9094_v52  ;;  %v2139_v27 = vshll.u32 %v1982_v23, 16  ;;  %v3621_v48 = vshrl.u32 %v8923_v22, 16  ;;  %v3624_v13 = vshll.u32 %v8923_v22, 16  ;;  %v2117_v19 = vor.u32 %v9128_v28, %v9126_v58  ;;  %v976_v47 = vld [vmem:[#allocation2 + $0xb8] sm:$0x10]  ;;  %v8031_v61 = vld [vmem:[#allocation8 + $0xf0] sm:$0xff]  }
 0x22c   : > { %7337 = vmatprep.mubr.bf16.mxu1 %v3585_v35  ;;  %7366 = vmatpush3.bf16.msra.mxu1 %v7981_v51  ;;  %v2125_v25 = vor.u32 %v2124_v31, %v2121_v4  ;;  %v2133_v2 = vrot.slane %v2131_v36, 5  ;;  %v3629_v29 = vshrl.u32 %v3492_v5, 16  ;;  %v2138_v57 = vrot.slane %v2136_v49, 4  ;;  %v8029_v51 = vld [vmem:[#allocation2 + $0x90] sm:$0xf0] }
 0x22d   : > { %v2141_v30 = vrot.slane %v2139_v27, 5  ;;  %7367 = vmatprep.subr.bf16.mxu1 %v7982_v43  ;;  %v3623_v52 = vrot.slane %v3621_v48, 4  ;;  %v3626_v53 = vrot.slane %v3624_v13, 5  ;;  %7226 = vmatpush3.bf16.msra.mxu0 %v8027_v33  ;;  %v3619_v62 = vsel %vm1990_vm7, %v3610_v7, %v3618_v16  ;;  %v979_v24 = vld [vmem:[#allocation2 + $0xc8] sm:$0x10]  ;;  %v8033_v27 = vld [vmem:[#allocation8 + $0xf8] sm:$0xff]  }
 0x22e   : > { %v2134_v6 = vor.u32 %v2133_v2, %v2130_v20  ;;  %v3631_v22 = vrot.slane %v3629_v29, 4  ;;  %v3632_v50 = vshll.u32 %v3492_v5, 16  ;;  %7227 = vmatprep.subr.bf16.mxu0 %v8028_v44  ;;  %v971_v21 = vsel %vm8576_vm6, 0, %v970_v15  ;;  %v8032_v20 = vld [vmem:[#allocation2 + $0xb0] sm:$0xf0] }
 0x22f   : > { %v2142_v11 = vor.u32 %v2141_v30, %v2138_v57  ;;  %v3627_v41 = vor.u32 %v3626_v53, %v3623_v52  ;;  %v3638_v46 = vshrl.u32 %v8926_v34, 16  ;;  %972 = vst [vmem:[#allocation2 + $0x98] sm:$0x10] %v971_v21  ;;  %v3641_v45 = vshll.u32 %v8926_v34, 16  ;;  %v7986_v53 = vld [vmem:[#allocation8 + $0x1b8] sm:$0xff]  }
 0x230   : > { %v3634_v32 = vrot.slane %v3632_v50, 5  ;;  %7368 = vmatpush3.bf16.msra.mxu1 %v7982_v43  ;;  %v2145_v7 = vshrl.u32 %v8029_v51, 16  ;;  %v2148_v60 = vshll.u32 %v8029_v51, 16  ;;  %v2126_v38 = vsel %vm1990_vm7, %v2117_v19, %v2125_v25 }
 0x231   : > { %v2143_v35 = vsel %vm1990_vm7, %v2134_v6, %v2142_v11  ;;  %v974_v54 = vsel %vm8576_vm6, 0, %v973_v17  ;;  %v2162_v58 = vshrl.u32 %v8030_v59, 16  ;;  %7369 = vmatprep.subr.bf16.mxu1 %v7983_v56  ;;  %7228 = vmatpush3.bf16.msra.mxu0 %v8028_v44  ;;  %v9149_v28 = vrot.slane %v3638_v46, 4 }
 0x232   : > { %7198 = vmatmul.mubr.bf16.gmra.mrb[44].mxu0 %v2126_v38  ;;  %v3635_v63 = vor.u32 %v3634_v32, %v3631_v22  ;;  %v9151_v34 = vrot.slane %v3641_v45, 5  ;;  %v9153_v40 = vrot.slane %v2145_v7, 4  ;;  %975 = vst [vmem:[#allocation2 + $0xa8] sm:$0x10] %v974_v54  ;;  %7229 = vmatprep.subr.bf16.mxu0 %v8031_v61  ;;  %v9156_v39 = vrot.slane %v2148_v60, 5 }
 0x233   : > { %7338 = vmatmul.mubr.bf16.gmra.mrb[24].mxu1 %v9133_v9  ;;  %7201 = vmatprep.mubr.bf16.mxu0 %v2143_v35  ;;  %v2165_v12 = vshll.u32 %v8030_v59, 16  ;;  %v3655_v23 = vshrl.u32 %v8950_v14, 16  ;;  %v3658_v26 = vshll.u32 %v8950_v14, 16  ;;  %v9161_v37 = vrot.slane %v2162_v58, 4  ;;  %v7985_v14 = vld [vmem:[#allocation8 + $0x1b0] sm:$0xff]  }
 0x234   : > { %7341 = vmatprep.mubr.bf16.mxu1 %v3619_v62  ;;  %v3636_v8 = vsel %vm1990_vm7, %v3627_v41, %v3635_v63  ;;  %7370 = vmatpush3.bf16.msra.mxu1 %v7983_v56  ;;  %v977_v4 = vsel %vm8576_vm6, 0, %v976_v47  ;;  %v3672_v16 = vshrl.u32 %v8952_v1, 16  ;;  %v3675_v31 = vshll.u32 %v8952_v1, 16  ;;  %v9181_v1 = vld [vmem:[#allocation2 + $0xc0] sm:$0xf0] }
 0x235   : > { %v9165_v43 = vrot.slane %v2165_v12, 5  ;;  %v9167_v9 = vrot.slane %v3655_v23, 4  ;;  %v9169_v5 = vrot.slane %v3658_v26, 5  ;;  %978 = vst [vmem:[#allocation2 + $0xb8] sm:$0x10] %v977_v4  ;;  %7371 = vmatprep.subr.bf16.mxu1 %v7984_v42  ;;  %7230 = vmatpush3.bf16.msra.mxu0 %v8031_v61  ;;  %v2179_v36 = vshrl.u32 %v8032_v20, 16 }
 0x236   : > { %v2182_v33 = vshll.u32 %v8032_v20, 16  ;;  %v980_v49 = vsel %vm8576_vm6, 0, %v979_v24  ;;  %7231 = vmatprep.subr.bf16.mxu0 %v8033_v27  ;;  %v3493_v48 = vld [vmem:[#allocation2 + $0x98] sm:$0x1f]  ;;  %v3644_v13 = vor.u32 %v9151_v34, %v9149_v28  ;;  %v2151_v25 = vor.u32 %v9156_v39, %v9153_v40  ;;  %v9191_v28 = vld [vmem:[#allocation8 + $0x1c0] sm:$0xff]  }
 0x237   : > { %v1983_v19 = vld [vmem:[#allocation2 + $0x98] sm:$0x1f]  ;;  %v9179_v2 = vrot.slane %v3672_v16, 4  ;;  %981 = vst [vmem:[#allocation2 + $0xc8] sm:$0x10] %v980_v49  ;;  %v2196_v29 = vshrl.u32 %v9181_v1, 16  ;;  %v2168_v62 = vor.u32 %v9165_v43, %v9161_v37  ;;  %v3661_v22 = vor.u32 %v9169_v5, %v9167_v9 }
 0x238   : > { %v3646_v15 = vshrl.u32 %v3493_v48, 16  ;;  %v3649_v57 = vshll.u32 %v3493_v48, 16  ;;  %v2153_v30 = vshrl.u32 %v1983_v19, 16  ;;  %v2156_v52 = vshll.u32 %v1983_v19, 16  ;;  %7372 = vmatpush3.bf16.msra.mxu1 %v7984_v42 }
 0x239   : > { %v1984_v56 = vld [vmem:[#allocation2 + $0xa8] sm:$0x1f]  ;;  %v3677_v50 = vrot.slane %v3675_v31, 5  ;;  %v9188_v17 = vrot.slane %v2179_v36, 4  ;;  %7373 = vmatprep.subr.bf16.mxu1 %v7985_v14  ;;  %7232 = vmatpush3.bf16.msra.mxu0 %v8033_v27  ;;  %v2184_v59 = vrot.slane %v2182_v33, 5  ;;  %v2198_v9 = vrot.slane %v2196_v29, 4 }
 0x23a   : > { %v3494_v6 = vld [vmem:[#allocation2 + $0xa8] sm:$0x1f]  ;;  %v3648_v44 = vrot.slane %v3646_v15, 4  ;;  %v3651_v11 = vrot.slane %v3649_v57, 5  ;;  %v2155_v41 = vrot.slane %v2153_v30, 4  ;;  %v2158_v21 = vrot.slane %v2156_v52, 5 }
 0x23b   : > { %7342 = vmatmul.mubr.bf16.gmra.mrb[28].mxu1 %v3636_v8  ;;  %v2170_v46 = vshrl.u32 %v1984_v56, 16  ;;  %v2173_v32 = vshll.u32 %v1984_v56, 16  ;;  %v3663_v45 = vshrl.u32 %v3494_v6, 16  ;;  %v3666_v51 = vshll.u32 %v3494_v6, 16 }
 0x23c   : > { %v3652_v7 = vor.u32 %v3651_v11, %v3648_v44  ;;  %v2159_v60 = vor.u32 %v2158_v21, %v2155_v41  ;;  %v3495_v38 = vld [vmem:[#allocation2 + $0xb8] sm:$0x1f]  ;;  %v3678_v35 = vor.u32 %v3677_v50, %v9179_v2  ;;  %7374 = vmatpush3.bf16.msra.mxu1 %v7985_v14  ;;  %v2185_v26 = vor.u32 %v2184_v59, %v9188_v17  ;;  %v8035_v41 = vld [vmem:[#allocation2 + $0xd0] sm:$0xf0] }
 0x23d   : > { %v1985_v54 = vld [vmem:[#allocation2 + $0xb8] sm:$0x1f]  ;;  %v2172_v58 = vrot.slane %v2170_v46, 4  ;;  %v2175_v47 = vrot.slane %v2173_v32, 5  ;;  %v3665_v42 = vrot.slane %v3663_v45, 4  ;;  %v3668_v63 = vrot.slane %v3666_v51, 5  ;;  %7375 = vmatprep.subr.bf16.mxu1 %v7986_v53 }
 0x23e   : > { %v3653_v34 = vsel %vm1990_vm7, %v3644_v13, %v3652_v7  ;;  %v2160_v40 = vsel %vm1990_vm7, %v2151_v25, %v2159_v60  ;;  %v3680_v61 = vshrl.u32 %v3495_v38, 16  ;;  %v3683_v39 = vshll.u32 %v3495_v38, 16  ;;  %v1986_v8 = vld [vmem:[#allocation2 + $0xc8] sm:$0x1f]  ;;  %v982_v2 = vld [vmem:[#allocation2 + $0xd8] sm:$0x10] }
 0x23f   : > { %7345 = vmatprep.mubr.bf16.mxu1 %v3653_v34  ;;  %7202 = vmatmul.mubr.bf16.gmra.mrb[48].mxu0 %v2160_v40  ;;  %v2176_v12 = vor.u32 %v2175_v47, %v2172_v58  ;;  %v3669_v23 = vor.u32 %v3668_v63, %v3665_v42  ;;  %v2187_v24 = vshrl.u32 %v1985_v54, 16  ;;  %v2190_v43 = vshll.u32 %v1985_v54, 16  ;;  %v3496_v5 = vld [vmem:[#allocation2 + $0xc8] sm:$0x1f]  ;;  %v988_v7 = vld [vmem:[#allocation2 + $0xf8] sm:$0x10] }
 0x240   : > { %v3682_v37 = vrot.slane %v3680_v61, 4  ;;  %v3685_v4 = vrot.slane %v3683_v39, 5  ;;  %7376 = vmatpush3.bf16.msra.mxu1 %v7986_v53  ;;  %v2199_v20 = vshll.u32 %v9181_v1, 16  ;;  %v2204_v49 = vshrl.u32 %v1986_v8, 16  ;;  %v8036_v54 = vld [vmem:[#allocation2 + $0xe0] sm:$0xf0] }
 0x241   : > { %v2177_v16 = vsel %vm1990_vm7, %v2168_v62, %v2176_v12  ;;  %v3670_v14 = vsel %vm1990_vm7, %v3661_v22, %v3669_v23  ;;  %v2189_v31 = vrot.slane %v2187_v24, 4  ;;  %7409 = vmatprep.subr.bf16.mxu1 %v9191_v28  ;;  %v2192_v33 = vrot.slane %v2190_v43, 5  ;;  %v985_v62 = vld [vmem:[#allocation2 + $0xe8] sm:$0x10]  ;;  %v9215_v40 = vld [vmem:[#allocation2 + $0x10] sm:$0xf8] }
 0x242   : > { %7205 = vmatprep.mubr.bf16.mxu0 %v2177_v16  ;;  %v3686_v36 = vor.u32 %v3685_v4, %v3682_v37  ;;  %v2207_v27 = vshll.u32 %v1986_v8, 16  ;;  %v2201_v48 = vrot.slane %v2199_v20, 5  ;;  %v3689_v13 = vshrl.u32 %v8977_v10, 16  ;;  %v8037_v37 = vld [vmem:[#allocation2 + $0xf0] sm:$0xf0] }
 0x243   : > { %7346 = vmatmul.mubr.bf16.gmra.mrb[0].mxu1 %v3670_v14  ;;  %v3692_v19 = vshll.u32 %v8977_v10, 16  ;;  %v3697_v25 = vshrl.u32 %v3496_v5, 16  ;;  %v2193_v15 = vor.u32 %v2192_v33, %v2189_v31  ;;  %v2206_v57 = vrot.slane %v2204_v49, 4 }
 0x244   : > { %v3687_v29 = vsel %vm1990_vm7, %v3678_v35, %v3686_v36  ;;  %v2209_v1 = vrot.slane %v2207_v27, 5  ;;  %v2202_v30 = vor.u32 %v2201_v48, %v2198_v9  ;;  %v3691_v52 = vrot.slane %v3689_v13, 4 }
 0x245   : > { %7349 = vmatprep.mubr.bf16.mxu1 %v3687_v29  ;;  %v3694_v53 = vrot.slane %v3692_v19, 5  ;;  %v3699_v56 = vrot.slane %v3697_v25, 4  ;;  %v2194_v6 = vsel %vm1990_vm7, %v2185_v26, %v2193_v15  ;;  %v3700_v50 = vshll.u32 %v3496_v5, 16 }
 0x246   : > { %v2210_v22 = vor.u32 %v2209_v1, %v2206_v57  ;;  %v983_v10 = vsel %vm8576_vm6, 0, %v982_v2  ;;  %v3706_v44 = vshrl.u32 %v8979_v18, 16  ;;  %v3709_v11 = vshll.u32 %v8979_v18, 16 }
 0x247   : > { %7206 = vmatmul.mubr.bf16.gmra.mrb[52].mxu0 %v2194_v6  ;;  %v3695_v17 = vor.u32 %v3694_v53, %v3691_v52  ;;  %984 = vst [vmem:[#allocation2 + $0xd8] sm:$0x10] %v983_v10  ;;  %v2213_v21 = vshrl.u32 %v8035_v41, 16  ;;  %v3702_v32 = vrot.slane %v3700_v50, 5  ;;  %v2216_v45 = vshll.u32 %v8035_v41, 16 }
 0x248   : > { %v2211_v46 = vsel %vm1990_vm7, %v2202_v30, %v2210_v22  ;;  %v986_v51 = vsel %vm8576_vm6, 0, %v985_v62  ;;  %v3708_v60 = vrot.slane %v3706_v44, 4  ;;  %v3711_v38 = vrot.slane %v3709_v11, 5 }
 0x249   : > { %7209 = vmatprep.mubr.bf16.mxu0 %v2211_v46  ;;  %v2215_v35 = vrot.slane %v2213_v21, 4  ;;  %987 = vst [vmem:[#allocation2 + $0xe8] sm:$0x10] %v986_v51  ;;  %v2230_v59 = vshrl.u32 %v8036_v54, 16  ;;  %v3703_v58 = vor.u32 %v3702_v32, %v3699_v56  ;;  %v2218_v47 = vrot.slane %v2216_v45, 5 }
 0x24a   : > { %v2233_v18 = vshll.u32 %v8036_v54, 16  ;;  %v3723_v42 = vshrl.u32 %v9005_v0, 16  ;;  %v3726_v63 = vshll.u32 %v9005_v0, 16  ;;  %v989_v34 = vsel %vm8576_vm6, 0, %v988_v7 }
 0x24b   : > { %v3704_v61 = vsel %vm1990_vm7, %v3695_v17, %v3703_v58  ;;  %v2232_v39 = vrot.slane %v2230_v59, 4  ;;  %990 = vst [vmem:[#allocation2 + $0xf8] sm:$0x10] %v989_v34  ;;  %v3740_v24 = vshrl.u32 %v9007_v55, 16  ;;  %v3743_v8 = vshll.u32 %v9007_v55, 16 }
 0x24c   : > { %v2235_v12 = vrot.slane %v2233_v18, 5  ;;  %v3725_v23 = vrot.slane %v3723_v42, 4  ;;  %7350 = vmatmul.mubr.bf16.gmra.mrb[4].mxu1 %v3704_v61  ;;  %v3728_v26 = vrot.slane %v3726_v63, 5  ;;  %v2247_v4 = vshrl.u32 %v8037_v37, 16  ;;  %v991_v58 = vld [vmem:[#allocation2 + $0x108] sm:$0x10] }
 0x24d   : > { %v3712_v43 = vor.u32 %v3711_v38, %v3708_v60  ;;  %v2219_v5 = vor.u32 %v2218_v47, %v2215_v35  ;;  %v2250_v16 = vshll.u32 %v8037_v37, 16  ;;  %v2570_v14 = vshrl.u32 %v9215_v40, 16  ;;  %v8039_v37 = vld [vmem:[#allocation2 + $0x100] sm:$0xf0] }
 0x24e   : > { %v3497_v0 = vld [vmem:[#allocation2 + $0xd8] sm:$0x1f]  ;;  %v2236_v27 = vor.u32 %v2235_v12, %v2232_v39  ;;  %v3729_v13 = vor.u32 %v3728_v26, %v3725_v23  ;;  %v3742_v19 = vrot.slane %v3740_v24, 4  ;;  %v3745_v25 = vrot.slane %v3743_v8, 5  ;;  %v4048_v26 = vld [vmem:[#allocation2 + $0x20] sm:$0xf8] }
 0x24f   : > { %v1987_v9 = vld [vmem:[#allocation2 + $0xd8] sm:$0x1f]  ;;  %v3714_v31 = vshrl.u32 %v3497_v0, 16  ;;  %v3717_v20 = vshll.u32 %v3497_v0, 16  ;;  %v2249_v50 = vrot.slane %v2247_v4, 4  ;;  %v2252_v7 = vrot.slane %v2250_v16, 5 }
 0x250   : > { %v2221_v36 = vshrl.u32 %v1987_v9, 16  ;;  %v2224_v33 = vshll.u32 %v1987_v9, 16  ;;  %v1988_v49 = vld [vmem:[#allocation2 + $0xe8] sm:$0x1f]  ;;  %v3746_v6 = vor.u32 %v3745_v25, %v3742_v19  ;;  %v2572_v59 = vrot.slane %v2570_v14, 3 }
 0x251   : > { %v3498_v48 = vld [vmem:[#allocation2 + $0xe8] sm:$0x1f]  ;;  %v3716_v55 = vrot.slane %v3714_v31, 4  ;;  %v3719_v2 = vrot.slane %v3717_v20, 5  ;;  %v2238_v57 = vshrl.u32 %v1988_v49, 16  ;;  %v2241_v1 = vshll.u32 %v1988_v49, 16 }
 0x252   : > { %v2223_v29 = vrot.slane %v2221_v36, 4  ;;  %v2226_v15 = vrot.slane %v2224_v33, 5  ;;  %v3731_v30 = vshrl.u32 %v3498_v48, 16  ;;  %v3734_v52 = vshll.u32 %v3498_v48, 16  ;;  %v3499_v62 = vld [vmem:[#allocation2 + $0xf8] sm:$0x1f] }
 0x253   : > { %v3720_v53 = vor.u32 %v3719_v2, %v3716_v55  ;;  %v1989_v22 = vld [vmem:[#allocation2 + $0xf8] sm:$0x1f]  ;;  %v2240_v10 = vrot.slane %v2238_v57, 4  ;;  %v2243_v17 = vrot.slane %v2241_v1, 5  ;;  %v3748_v46 = vshrl.u32 %v3499_v62, 16 }
 0x254   : > { %v2227_v56 = vor.u32 %v2226_v15, %v2223_v29  ;;  %v3733_v44 = vrot.slane %v3731_v30, 4  ;;  %v3736_v11 = vrot.slane %v3734_v52, 5  ;;  %v3751_v32 = vshll.u32 %v3499_v62, 16  ;;  %v8038_v12 = vld [vmem:[#allocation2 + $0x18] sm:$0xf] }
 0x255   : > { %v3721_v41 = vsel %vm1990_vm7, %v3712_v43, %v3720_v53  ;;  %v2244_v45 = vor.u32 %v2243_v17, %v2240_v10  ;;  %v2255_v60 = vshrl.u32 %v1989_v22, 16  ;;  %v3750_v38 = vrot.slane %v3748_v46, 4  ;;  %v9228_v43 = vld [vmem:[#allocation2 + $0x28] sm:$0xf]  ;;  %v2541_v2 = vld [vmem:[#allocation2 + $0x30] sm:$0xf8] }
 0x256   : > { %v2228_v21 = vsel %vm1990_vm7, %v2219_v5, %v2227_v56  ;;  %7353 = vmatprep.mubr.bf16.mxu1 %v3721_v41  ;;  %v3737_v51 = vor.u32 %v3736_v11, %v3733_v44  ;;  %v3753_v35 = vrot.slane %v3751_v32, 5  ;;  %v2258_v54 = vshll.u32 %v1989_v22, 16  ;;  %v8040_v53 = vld [vmem:[#allocation2 + $0x28] sm:$0xf]  ;;  %v4050_v17 = vld [vmem:[#allocation2 + $0x30] sm:$0xf8] }
 0x257   : > { %7210 = vmatmul.mubr.bf16.gmra.mrb[56].mxu0 %v2228_v21  ;;  %v2245_v47 = vsel %vm1990_vm7, %v2236_v27, %v2244_v45  ;;  %v2253_v42 = vor.u32 %v2252_v7, %v2249_v50  ;;  %v2257_v63 = vrot.slane %v2255_v60, 4  ;;  %v2573_v39 = vshll.u32 %v9215_v40, 16 }
 0x258   : > { %v3738_v18 = vsel %vm1990_vm7, %v3729_v13, %v3737_v51  ;;  %7213 = vmatprep.mubr.bf16.mxu0 %v2245_v47  ;;  %v3754_v34 = vor.u32 %v3753_v35, %v3750_v38  ;;  %v2260_v61 = vrot.slane %v2258_v54, 5  ;;  %v2578_v23 = vshrl.u32 %v8038_v12, 16  ;;  %v8041_v54 = vld [vmem:[#allocation2 + $0x38] sm:$0xf] }
 0x259   : > { %7354 = vmatmul.mubr.bf16.gmra.mrb[8].mxu1 %v3738_v18  ;;  %v2581_v24 = vshll.u32 %v8038_v12, 16  ;;  %v992_v8 = vsel %vm8576_vm6, 0, %v991_v58  ;;  %v3757_v4 = vshrl.u32 %v8039_v37, 16  ;;  %v3760_v0 = vshll.u32 %v8039_v37, 16  ;;  %v9242_v58 = vld [vmem:[#allocation2 + $0x38] sm:$0xf] }
 0x25a   : > { %v3755_v9 = vsel %vm1990_vm7, %v3746_v6, %v3754_v34  ;;  %v2261_v5 = vor.u32 %v2260_v61, %v2257_v63  ;;  %v2575_v16 = vrot.slane %v2573_v39, 4  ;;  %v2580_v14 = vrot.slane %v2578_v23, 3  ;;  %993 = vst [vmem:[#allocation2 + $0x108] sm:$0x10] %v992_v8  ;;  %v4052_v34 = vld [vmem:[#allocation2 + $0x40] sm:$0xf8] }
 0x25b   : > { %7357 = vmatprep.mubr.bf16.mxu1 %v3755_v9  ;;  %v2583_v40 = vrot.slane %v2581_v24, 4  ;;  %v9231_v31 = vrot.slane %v3757_v4, 4  ;;  %v9233_v20 = vrot.slane %v3760_v0, 5  ;;  %v4081_v36 = vshrl.u32 %v4048_v26, 16 }
 0x25c   : > { %v2262_v33 = vsel %vm1990_vm7, %v2253_v42, %v2261_v5  ;;  %v2576_v49 = vor.u32 %v2575_v16, %v2572_v59  ;;  %v4084_v27 = vshll.u32 %v4048_v26, 16  ;;  %v4089_v48 = vshrl.u32 %v9228_v43, 16  ;;  %v9245_v26 = vld [vmem:[#allocation2 + $0x48] sm:$0xf] }
 0x25d   : > { %v2584_v13 = vor.u32 %v2583_v40, %v2580_v14  ;;  %v3763_v19 = vor.u32 %v9233_v20, %v9231_v31  ;;  %v4083_v25 = vrot.slane %v4081_v36, 3  ;;  %v4092_v55 = vshll.u32 %v9228_v43, 16  ;;  %v2543_v14 = vld [vmem:[#allocation2 + $0x40] sm:$0xf8] }
 0x25e   : > { %v4086_v29 = vrot.slane %v4084_v27, 4  ;;  %v4091_v15 = vrot.slane %v4089_v48, 3  ;;  %v2587_v57 = vshrl.u32 %v2539_v3, 16  ;;  %v2590_v1 = vshll.u32 %v2539_v3, 16  ;;  %v2545_v48 = vld [vmem:[#allocation2 + $0x50] sm:$0xf8] }
 0x25f   : > { %7214 = vmatmul.mubr.bf16.gmra.mrb[60].mxu0 %v2262_v33  ;;  %v2585_v30 = vsel %vm944_vm4, %v2576_v49, %v2584_v13  ;;  %v4094_v52 = vrot.slane %v4092_v55, 4  ;;  %v2595_v56 = vshrl.u32 %v8040_v53, 16  ;;  %v2598_v62 = vshll.u32 %v8040_v53, 16 }
 0x260   : > { %7233 = vmatprep.mubr.bf16.mxu0 %v2585_v30  ;;  %v4087_v6 = vor.u32 %v4086_v29, %v4083_v25  ;;  %v2589_v22 = vrot.slane %v2587_v57, 3  ;;  %v2592_v50 = vrot.slane %v2590_v1, 4  ;;  %v2604_v10 = vshrl.u32 %v2541_v2, 16  ;;  %v8042_v57 = vld [vmem:[#allocation2 + $0x48] sm:$0xf] }
 0x261   : > { %v3500_v44 = vld [vmem:[#allocation2 + $0x108] sm:$0x1f]  ;;  %v4095_v11 = vor.u32 %v4094_v52, %v4091_v15  ;;  %v2597_v41 = vrot.slane %v2595_v56, 3  ;;  %v2600_v21 = vrot.slane %v2598_v62, 4  ;;  %v2607_v46 = vshll.u32 %v2541_v2, 16 }
 0x262   : > { %v3765_v32 = vshrl.u32 %v3500_v44, 16  ;;  %v3768_v45 = vshll.u32 %v3500_v44, 16  ;;  %v2593_v51 = vor.u32 %v2592_v50, %v2589_v22  ;;  %v2606_v7 = vrot.slane %v2604_v10, 3  ;;  %v4054_v62 = vld [vmem:[#allocation2 + $0x50] sm:$0xf8] }
 0x263   : > { %v4096_v60 = vsel %vm944_vm4, %v4087_v6, %v4095_v11  ;;  %v2601_v38 = vor.u32 %v2600_v21, %v2597_v41  ;;  %v2609_v35 = vrot.slane %v2607_v46, 4  ;;  %v2612_v59 = vshrl.u32 %v8041_v54, 16  ;;  %v8043_v41 = vld [vmem:[#allocation2 + $0x58] sm:$0xf] }
 0x264   : > { %v3767_v47 = vrot.slane %v3765_v32, 4  ;;  %v3770_v18 = vrot.slane %v3768_v45, 5  ;;  %v2615_v42 = vshll.u32 %v8041_v54, 16  ;;  %v4098_v63 = vshrl.u32 %v4050_v17, 16  ;;  %v9254_v46 = vld [vmem:[#allocation2 + $0x58] sm:$0xf] }
 0x265   : > { %v2602_v61 = vsel %vm944_vm4, %v2593_v51, %v2601_v38  ;;  %v2610_v39 = vor.u32 %v2609_v35, %v2606_v7  ;;  %v2614_v12 = vrot.slane %v2612_v59, 3  ;;  %v4101_v23 = vshll.u32 %v4050_v17, 16  ;;  %v7988_v7 = vld [vmem:[#allocation8 + $0x1c8] sm:$0xff]   ;;  %v4056_v38 = vld [vmem:[#allocation2 + $0x60] sm:$0xf8] }
 0x266   : > { %v3771_v24 = vor.u32 %v3770_v18, %v3767_v47  ;;  %v2617_v8 = vrot.slane %v2615_v42, 4  ;;  %v4100_v37 = vrot.slane %v4098_v63, 3  ;;  %v4106_v4 = vshrl.u32 %v9242_v58, 16  ;;  %v9257_v18 = vld [vmem:[#allocation2 + $0x68] sm:$0xf] }
 0x267   : > { %7234 = vmatmul.mubr.bf16.vlgmr.msra.gmra.mrb[32].mxu0 %v2602_v61  ;;  %v4103_v0 = vrot.slane %v4101_v23, 4  ;;  %v4109_v9 = vshll.u32 %v9242_v58, 16  ;;  %v4115_v5 = vshrl.u32 %v4052_v34, 16  ;;  %v4118_v16 = vshll.u32 %v4052_v34, 16 }
 0x268   : > { %v3772_v40 = vsel %vm1990_vm7, %v3763_v19, %v3771_v24  ;;  %v2618_v31 = vor.u32 %v2617_v8, %v2614_v12  ;;  %v4108_v20 = vrot.slane %v4106_v4, 3  ;;  %v4123_v36 = vshrl.u32 %v9245_v26, 16  ;;  %v2547_v8 = vld [vmem:[#allocation2 + $0x60] sm:$0xf8] }
 0x269   : > { %7358 = vmatmul.mubr.bf16.gmra.mrb[12].mxu1 %v3772_v40  ;;  %v4104_v3 = vor.u32 %v4103_v0, %v4100_v37  ;;  %v4111_v33 = vrot.slane %v4109_v9, 4  ;;  %v4117_v49 = vrot.slane %v4115_v5, 3  ;;  %v4120_v27 = vrot.slane %v4118_v16, 4  ;;  %v7989_v5 = vld [vmem:[#allocation8 + $0x1d0] sm:$0xff]  }
 0x26a   : > { %7377 = vmatprep.mubr.bf16.mxu1 %v4096_v60  ;;  %v2619_v13 = vsel %vm944_vm4, %v2610_v39, %v2618_v31  ;;  %v4125_v25 = vrot.slane %v4123_v36, 3  ;;  %v4126_v55 = vshll.u32 %v9245_v26, 16  ;;  %v2621_v2 = vshrl.u32 %v2543_v14, 16  ;;  %v2549_v31 = vld [vmem:[#allocation2 + $0x70] sm:$0xf8] }
 0x26b   : > { %7237 = vmatprep.mubr.bf16.mxu0 %v2619_v13  ;;  %v4112_v29 = vor.u32 %v4111_v33, %v4108_v20  ;;  %v4121_v19 = vor.u32 %v4120_v27, %v4117_v49  ;;  %v2624_v15 = vshll.u32 %v2543_v14, 16  ;;  %v2629_v1 = vshrl.u32 %v8042_v57, 16  ;;  %v8044_v13 = vld [vmem:[#allocation2 + $0x68] sm:$0xf] }
 0x26c   : > { %v4128_v30 = vrot.slane %v4126_v55, 4  ;;  %v2623_v52 = vrot.slane %v2621_v2, 3  ;;  %v2632_v53 = vshll.u32 %v8042_v57, 16  ;;  %v2638_v56 = vshrl.u32 %v2545_v48, 16  ;;  %v7990_v57 = vld [vmem:[#allocation8 + $0x1d8] sm:$0xff]  }
 0x26d   : > { %v4113_v6 = vsel %vm944_vm4, %v4104_v3, %v4112_v29  ;;  %v2626_v22 = vrot.slane %v2624_v15, 4  ;;  %v2631_v50 = vrot.slane %v2629_v1, 3  ;;  %v2641_v10 = vshll.u32 %v2545_v48, 16  ;;  %v4058_v15 = vld [vmem:[#allocation2 + $0x70] sm:$0xf8] }
 0x26e   : > { %v4129_v17 = vor.u32 %v4128_v30, %v4125_v25  ;;  %v2634_v44 = vrot.slane %v2632_v53, 4  ;;  %v2640_v11 = vrot.slane %v2638_v56, 3  ;;  %v2646_v21 = vshrl.u32 %v8043_v41, 16 }
 0x26f   : > { %v2627_v32 = vor.u32 %v2626_v22, %v2623_v52  ;;  %v2643_v45 = vrot.slane %v2641_v10, 4  ;;  %v2649_v51 = vshll.u32 %v8043_v41, 16  ;;  %v4132_v60 = vshrl.u32 %v4054_v62, 16  ;;  %v8045_v22 = vld [vmem:[#allocation2 + $0x78] sm:$0xf] }
 0x270   : > { %v4130_v35 = vsel %vm944_vm4, %v4121_v19, %v4129_v17  ;;  %v2635_v54 = vor.u32 %v2634_v44, %v2631_v50  ;;  %v2648_v59 = vrot.slane %v2646_v21, 3  ;;  %v4135_v47 = vshll.u32 %v4054_v62, 16  ;;  %v9267_v10 = vld [vmem:[#allocation2 + $0x78] sm:$0xf]  ;;  %v4060_v21 = vld [vmem:[#allocation2 + $0x80] sm:$0xf8] }
 0x271   : > { %7378 = vmatmul.mubr.bf16.vlgmr.msra.gmra.mrb[16].mxu1 %v4113_v6  ;;  %v2644_v42 = vor.u32 %v2643_v45, %v2640_v11  ;;  %v2651_v63 = vrot.slane %v2649_v51, 4  ;;  %v4134_v34 = vrot.slane %v4132_v60, 3  ;;  %v4140_v61 = vshrl.u32 %v9254_v46, 16  ;;  %v7991_v60 = vld [vmem:[#allocation8 + $0x1e0] sm:$0xff]  }
 0x272   : > { %7410 = vmatpush3.bf16.msra.mxu1 %v9191_v28  ;;  %7381 = vmatprep.mubr.bf16.mxu1 %v4130_v35  ;;  %v2636_v39 = vsel %vm944_vm4, %v2627_v32, %v2635_v54  ;;  %v4137_v12 = vrot.slane %v4135_v47, 4  ;;  %v4143_v23 = vshll.u32 %v9254_v46, 16  ;;  %v4149_v24 = vshrl.u32 %v4056_v38, 16  ;;  %v9272_v47 = vld [vmem:[#allocation2 + $0x88] sm:$0xf] }
 0x273   : > { %7238 = vmatmul.mubr.bf16.gmra.mrb[36].mxu0 %v2636_v39  ;;  %v2652_v37 = vor.u32 %v2651_v63, %v2648_v59  ;;  %7411 = vmatprep.subr.bf16.mxu1 %v7988_v7  ;;  %v4142_v4 = vrot.slane %v4140_v61, 3  ;;  %v4152_v0 = vshll.u32 %v4056_v38, 16  ;;  %v4157_v9 = vshrl.u32 %v9257_v18, 16  ;;  %v2551_v39 = vld [vmem:[#allocation2 + $0x80] sm:$0xf8] }
 0x274   : > { %v4138_v16 = vor.u32 %v4137_v12, %v4134_v34  ;;  %v4145_v14 = vrot.slane %v4143_v23, 4  ;;  %v4151_v40 = vrot.slane %v4149_v24, 3  ;;  %v4160_v28 = vshll.u32 %v9257_v18, 16 }
 0x275   : > { %v2653_v20 = vsel %vm944_vm4, %v2644_v42, %v2652_v37  ;;  %v4154_v36 = vrot.slane %v4152_v0, 4  ;;  %v4159_v3 = vrot.slane %v4157_v9, 3  ;;  %v2655_v33 = vshrl.u32 %v2547_v8, 16 }
 0x276   : > { %7241 = vmatprep.mubr.bf16.mxu0 %v2653_v20  ;;  %v4146_v49 = vor.u32 %v4145_v14, %v4142_v4  ;;  %7412 = vmatpush3.bf16.msra.mxu1 %v7988_v7  ;;  %v4162_v27 = vrot.slane %v4160_v28, 4  ;;  %v2658_v48 = vshll.u32 %v2547_v8, 16  ;;  %v2663_v25 = vshrl.u32 %v8044_v13, 16 }
 0x277   : > { %v4155_v55 = vor.u32 %v4154_v36, %v4151_v40  ;;  %v2657_v2 = vrot.slane %v2655_v33, 3  ;;  %v2666_v29 = vshll.u32 %v8044_v13, 16  ;;  %v2672_v19 = vshrl.u32 %v2549_v31, 16  ;;  %7413 = vmatprep.subr.bf16.mxu1 %v7989_v5  ;;  %v8046_v33 = vld [vmem:[#allocation2 + $0x88] sm:$0xf] }
 0x278   : > { %v4147_v1 = vsel %vm944_vm4, %v4138_v16, %v4146_v49  ;;  %v4163_v30 = vor.u32 %v4162_v27, %v4159_v3  ;;  %v2660_v52 = vrot.slane %v2658_v48, 4  ;;  %v2665_v53 = vrot.slane %v2663_v25, 3  ;;  %v9278_v27 = vld [vmem:[#allocation2 + $0x98] sm:$0xf] }
 0x279   : > { %7382 = vmatmul.mubr.bf16.gmra.mrb[20].mxu1 %v4147_v1  ;;  %v2668_v56 = vrot.slane %v2666_v29, 4  ;;  %v2674_v62 = vrot.slane %v2672_v19, 3  ;;  %v2675_v6 = vshll.u32 %v2549_v31, 16  ;;  %v2680_v50 = vshrl.u32 %v8045_v22, 16  ;;  %v4062_v31 = vld [vmem:[#allocation2 + $0x90] sm:$0xf8] }
 0x27a   : > { %v4164_v17 = vsel %vm944_vm4, %v4155_v55, %v4163_v30  ;;  %v2661_v44 = vor.u32 %v2660_v52, %v2657_v2  ;;  %v2683_v11 = vshll.u32 %v8045_v22, 16  ;;  %v4166_v41 = vshrl.u32 %v4058_v15, 16  ;;  %7414 = vmatpush3.bf16.msra.mxu1 %v7989_v5  ;;  %v7992_v5 = vld [vmem:[#allocation8 + $0x1e8] sm:$0xff]   ;;  %v4064_v2 = vld [vmem:[#allocation2 + $0xa0] sm:$0xf8]  ;;  %v7993_v1 = vld [vmem:[#allocation8 + $0x1f0] sm:$0xff]  }
 0x27b   : > { %7385 = vmatprep.mubr.bf16.mxu1 %v4164_v17  ;;  %v2669_v32 = vor.u32 %v2668_v56, %v2665_v53  ;;  %v2677_v45 = vrot.slane %v2675_v6, 4  ;;  %v2682_v51 = vrot.slane %v2680_v50, 3  ;;  %v4169_v7 = vshll.u32 %v4058_v15, 16  ;;  %7415 = vmatprep.subr.bf16.mxu1 %v7990_v57 }
 0x27c   : > { %v2685_v38 = vrot.slane %v2683_v11, 4  ;;  %v4168_v35 = vrot.slane %v4166_v41, 3  ;;  %v4174_v54 = vshrl.u32 %v9267_v10, 16  ;;  %v4177_v59 = vshll.u32 %v9267_v10, 16 }
 0x27d   : > { %v2670_v42 = vsel %vm944_vm4, %v2661_v44, %v2669_v32  ;;  %v2678_v63 = vor.u32 %v2677_v45, %v2674_v62  ;;  %v4171_v34 = vrot.slane %v4169_v7, 4  ;;  %v4183_v61 = vshrl.u32 %v4060_v21, 16  ;;  %v9283_v62 = vld [vmem:[#allocation2 + $0xa8] sm:$0xf]  ;;  %v4066_v44 = vld [vmem:[#allocation2 + $0xb0] sm:$0xf8] }
 0x27e   : > { %7242 = vmatmul.mubr.bf16.gmra.mrb[40].mxu0 %v2670_v42  ;;  %v2686_v12 = vor.u32 %v2685_v38, %v2682_v51  ;;  %v4176_v23 = vrot.slane %v4174_v54, 3  ;;  %v4179_v24 = vrot.slane %v4177_v59, 4  ;;  %v4186_v8 = vshll.u32 %v4060_v21, 16  ;;  %7416 = vmatpush3.bf16.msra.mxu1 %v7990_v57  ;;  %v9286_v45 = vld [vmem:[#allocation2 + $0xb8] sm:$0xf] }
 0x27f   : > { %v4172_v37 = vor.u32 %v4171_v34, %v4168_v35  ;;  %v4185_v4 = vrot.slane %v4183_v61, 3  ;;  %v4191_v0 = vshrl.u32 %v9272_v47, 16  ;;  %v4194_v9 = vshll.u32 %v9272_v47, 16  ;;  %7417 = vmatprep.subr.bf16.mxu1 %v7991_v60  ;;  %v7994_v35 = vld [vmem:[#allocation8 + $0x1f8] sm:$0xff]   ;;  %v4068_v34 = vld [vmem:[#allocation2 + $0xc0] sm:$0xf8] }
 0x280   : > { %v2687_v16 = vsel %vm944_vm4, %v2678_v63, %v2686_v12  ;;  %v4180_v14 = vor.u32 %v4179_v24, %v4176_v23  ;;  %v4188_v40 = vrot.slane %v4186_v8, 4  ;;  %v2689_v28 = vshrl.u32 %v2551_v39, 16  ;;  %v9291_v24 = vld [vmem:[#allocation2 + $0xc8] sm:$0xf] }
 0x281   : > { %7245 = vmatprep.mubr.bf16.mxu0 %v2687_v16  ;;  %v4193_v20 = vrot.slane %v4191_v0, 3  ;;  %v4196_v36 = vrot.slane %v4194_v9, 4  ;;  %v2692_v3 = vshll.u32 %v2551_v39, 16  ;;  %v2697_v49 = vshrl.u32 %v8046_v33, 16 }
 0x282   : > { %v4181_v48 = vsel %vm944_vm4, %v4172_v37, %v4180_v14  ;;  %v4189_v13 = vor.u32 %v4188_v40, %v4185_v4  ;;  %v2691_v25 = vrot.slane %v2689_v28, 3  ;;  %v2700_v55 = vshll.u32 %v8046_v33, 16  ;;  %7418 = vmatpush3.bf16.msra.mxu1 %v7991_v60  ;;  %v4070_v40 = vld [vmem:[#allocation2 + $0xd0] sm:$0xf8]  ;;  %v9296_v28 = vld [vmem:[#allocation8 + $0x200] sm:$0xff]  }
 0x283   : > { %7386 = vmatmul.mubr.bf16.gmra.mrb[24].mxu1 %v4181_v48  ;;  %v4197_v29 = vor.u32 %v4196_v36, %v4193_v20  ;;  %v2694_v19 = vrot.slane %v2692_v3, 4  ;;  %v2699_v15 = vrot.slane %v2697_v49, 3  ;;  %v4200_v57 = vshrl.u32 %v4062_v31, 16  ;;  %7419 = vmatprep.subr.bf16.mxu1 %v7992_v5  ;;  %v9299_v33 = vld [vmem:[#allocation2 + $0xd8] sm:$0xf] }
 0x284   : > { %v2702_v30 = vrot.slane %v2700_v55, 4  ;;  %v4203_v52 = vshll.u32 %v4062_v31, 16  ;;  %v4208_v53 = vshrl.u32 %v9278_v27, 16  ;;  %v4211_v56 = vshll.u32 %v9278_v27, 16  ;;  %v4072_v55 = vld [vmem:[#allocation2 + $0xe0] sm:$0xf8] }
 0x285   : > { %v4198_v6 = vsel %vm944_vm4, %v4189_v13, %v4197_v29  ;;  %v2695_v22 = vor.u32 %v2694_v19, %v2691_v25  ;;  %v4202_v50 = vrot.slane %v4200_v57, 3  ;;  %v4217_v17 = vshrl.u32 %v4064_v2, 16 }
 0x286   : > { %7389 = vmatprep.mubr.bf16.mxu1 %v4198_v6  ;;  %v2703_v11 = vor.u32 %v2702_v30, %v2699_v15  ;;  %v4205_v41 = vrot.slane %v4203_v52, 4  ;;  %v4210_v21 = vrot.slane %v4208_v53, 3  ;;  %v4213_v32 = vrot.slane %v4211_v56, 4  ;;  %7420 = vmatpush3.bf16.msra.mxu1 %v7992_v5  ;;  %v9305_v53 = vld [vmem:[#allocation2 + $0xe8] sm:$0xf] }
 0x287   : > { %v4219_v51 = vrot.slane %v4217_v17, 3  ;;  %v4220_v7 = vshll.u32 %v4064_v2, 16  ;;  %v4225_v60 = vshrl.u32 %v9283_v62, 16  ;;  %v4228_v38 = vshll.u32 %v9283_v62, 16  ;;  %7421 = vmatprep.subr.bf16.mxu1 %v7993_v1 }
 0x288   : > { %v2704_v54 = vsel %vm944_vm4, %v2695_v22, %v2703_v11  ;;  %v4206_v59 = vor.u32 %v4205_v41, %v4202_v50  ;;  %v4214_v42 = vor.u32 %v4213_v32, %v4210_v21  ;;  %v4234_v63 = vshrl.u32 %v4066_v44, 16 }
 0x289   : > { %7246 = vmatmul.mubr.bf16.gmra.mrb[44].mxu0 %v2704_v54  ;;  %v4222_v61 = vrot.slane %v4220_v7, 4  ;;  %v4227_v39 = vrot.slane %v4225_v60, 3  ;;  %v4230_v12 = vrot.slane %v4228_v38, 4  ;;  %v4237_v23 = vshll.u32 %v4066_v44, 16  ;;  %v4074_v60 = vld [vmem:[#allocation2 + $0xf0] sm:$0xf8] }
 0x28a   : > { %v4215_v8 = vsel %vm944_vm4, %v4206_v59, %v4214_v42  ;;  %v4236_v37 = vrot.slane %v4234_v63, 3  ;;  %v4242_v4 = vshrl.u32 %v9286_v45, 16  ;;  %v4245_v0 = vshll.u32 %v9286_v45, 16  ;;  %7422 = vmatpush3.bf16.msra.mxu1 %v7993_v1  ;;  %v4076_v54 = vld [vmem:[#allocation2 + $0x100] sm:$0xf8] }
 0x28b   : > { %7390 = vmatmul.mubr.bf16.gmra.mrb[28].mxu1 %v4215_v8  ;;  %v4223_v9 = vor.u32 %v4222_v61, %v4219_v51  ;;  %v4231_v5 = vor.u32 %v4230_v12, %v4227_v39  ;;  %v4239_v16 = vrot.slane %v4237_v23, 4  ;;  %v4251_v14 = vshrl.u32 %v4068_v34, 16  ;;  %7423 = vmatprep.subr.bf16.mxu1 %v7994_v35 }
 0x28c   : > { %v4244_v31 = vrot.slane %v4242_v4, 3  ;;  %v4247_v20 = vrot.slane %v4245_v0, 4  ;;  %v4254_v36 = vshll.u32 %v4068_v34, 16  ;;  %v4259_v3 = vshrl.u32 %v9291_v24, 16  ;;  %v9314_v34 = vld [vmem:[#allocation2 + $0x108] sm:$0xf] }
 0x28d   : > { %v4232_v49 = vsel %vm944_vm4, %v4223_v9, %v4231_v5  ;;  %v4240_v48 = vor.u32 %v4239_v16, %v4236_v37  ;;  %v4253_v13 = vrot.slane %v4251_v14, 3  ;;  %v4262_v25 = vshll.u32 %v9291_v24, 16 }
 0x28e   : > { %7393 = vmatprep.mubr.bf16.mxu1 %v4232_v49  ;;  %v4248_v2 = vor.u32 %v4247_v20, %v4244_v31  ;;  %v4256_v29 = vrot.slane %v4254_v36, 4  ;;  %v4261_v19 = vrot.slane %v4259_v3, 3  ;;  %v4268_v15 = vshrl.u32 %v4070_v40, 16  ;;  %7424 = vmatpush3.bf16.msra.mxu1 %v7994_v35  ;;  %v9312_v35 = vld [vmem:[#allocation2 + $0xf8] sm:$0xf] }
 0x28f   : > { %v4264_v57 = vrot.slane %v4262_v25, 4  ;;  %v4271_v1 = vshll.u32 %v4070_v40, 16  ;;  %v4276_v30 = vshrl.u32 %v9299_v33, 16  ;;  %v4279_v52 = vshll.u32 %v9299_v33, 16  ;;  %7457 = vmatprep.subr.bf16.mxu1 %v9296_v28  ;;  %v4078_v20 = vld [vmem:[#allocation2 + $0x110] sm:$0xf8] }
 0x290   : > { %v4249_v56 = vsel %vm944_vm4, %v4240_v48, %v4248_v2  ;;  %v4257_v6 = vor.u32 %v4256_v29, %v4253_v13  ;;  %v4270_v22 = vrot.slane %v4268_v15, 3  ;;  %v4285_v50 = vshrl.u32 %v4072_v55, 16  ;;  %v9321_v36 = vld [vmem:[#allocation2 + $0x118] sm:$0xf] }
 0x291   : > { %v4265_v17 = vor.u32 %v4264_v57, %v4261_v19  ;;  %v4273_v44 = vrot.slane %v4271_v1, 4  ;;  %v4278_v11 = vrot.slane %v4276_v30, 3  ;;  %v4281_v41 = vrot.slane %v4279_v52, 4 }
 0x292   : > { %v4287_v21 = vrot.slane %v4285_v50, 3  ;;  %v4288_v32 = vshll.u32 %v4072_v55, 16  ;;  %v4293_v51 = vshrl.u32 %v9305_v53, 16  ;;  %v4296_v7 = vshll.u32 %v9305_v53, 16 }
 0x293   : > { %7394 = vmatmul.mubr.bf16.gmra.mrb[0].mxu1 %v4249_v56  ;;  %v4266_v38 = vsel %vm944_vm4, %v4257_v6, %v4265_v17  ;;  %v4274_v61 = vor.u32 %v4273_v44, %v4270_v22  ;;  %v4282_v39 = vor.u32 %v4281_v41, %v4278_v11  ;;  %v4302_v12 = vshrl.u32 %v4074_v60, 16 }
 0x294   : > { %7397 = vmatprep.mubr.bf16.mxu1 %v4266_v38  ;;  %v4290_v59 = vrot.slane %v4288_v32, 4  ;;  %v4295_v42 = vrot.slane %v4293_v51, 3  ;;  %v4298_v63 = vrot.slane %v4296_v7, 4  ;;  %v4305_v23 = vshll.u32 %v4074_v60, 16  ;;  %v9328_v51 = vld [vmem:[#allocation2 + $0x20] sm:$0xf0] }
 0x295   : > { %v4310_v4 = vshrl.u32 %v9312_v35, 16  ;;  %v4313_v0 = vshll.u32 %v9312_v35, 16  ;;  %v4319_v9 = vshrl.u32 %v4076_v54, 16  ;;  %v4322_v5 = vshll.u32 %v4076_v54, 16 }
 0x296   : > { %v4291_v8 = vor.u32 %v4290_v59, %v4287_v21  ;;  %v4299_v37 = vor.u32 %v4298_v63, %v4295_v42  ;;  %v4327_v16 = vshrl.u32 %v9314_v34, 16  ;;  %v4330_v14 = vshll.u32 %v9314_v34, 16  ;;  %v9334_v59 = vld [vmem:[#allocation2 + $0x30] sm:$0xf0]  ;;  %v9336_v42 = vld [vmem:[#allocation2 + $0x40] sm:$0xf0] }
 0x297   : > { %v4283_v40 = vsel %vm944_vm4, %v4274_v61, %v4282_v39  ;;  %v4304_v31 = vrot.slane %v4302_v12, 3  ;;  %v4307_v49 = vrot.slane %v4305_v23, 4  ;;  %v4312_v48 = vrot.slane %v4310_v4, 3  ;;  %v7996_v23 = vld [vmem:[#allocation8 + $0x208] sm:$0xff]   ;;  %v9347_v4 = vld [vmem:[#allocation2 + $0x60] sm:$0xf0] }
 0x298   : > { %v4300_v3 = vsel %vm944_vm4, %v4291_v8, %v4299_v37  ;;  %v4315_v13 = vrot.slane %v4313_v0, 4  ;;  %v4321_v25 = vrot.slane %v4319_v9, 3  ;;  %v4324_v55 = vrot.slane %v4322_v5, 4  ;;  %v9344_v37 = vld [vmem:[#allocation2 + $0x50] sm:$0xf0] }
 0x299   : > { %v4329_v2 = vrot.slane %v4327_v16, 3  ;;  %v4332_v29 = vrot.slane %v4330_v14, 4  ;;  %v4336_v19 = vshrl.u32 %v4078_v20, 16  ;;  %v4339_v15 = vshll.u32 %v4078_v20, 16  ;;  %v7997_v0 = vld [vmem:[#allocation8 + $0x210] sm:$0xff]   ;;  %v7998_v16 = vld [vmem:[#allocation8 + $0x218] sm:$0xff]  }
 0x29a   : > { %v4344_v57 = vshrl.u32 %v9321_v36, 16  ;;  %v4347_v1 = vshll.u32 %v9321_v36, 16  ;;  %v4308_v30 = vor.u32 %v4307_v49, %v4304_v31  ;;  %v4316_v52 = vor.u32 %v4315_v13, %v4312_v48  ;;  %v9357_v31 = vld [vmem:[#allocation2 + $0x80] sm:$0xf0]  ;;  %v8000_v48 = vld [vmem:[#allocation8 + $0x228] sm:$0xff]  }
 0x29b   : > { %7398 = vmatmul.mubr.bf16.gmra.mrb[4].mxu1 %v4283_v40  ;;  %v4325_v56 = vor.u32 %v4324_v55, %v4321_v25  ;;  %v4333_v6 = vor.u32 %v4332_v29, %v4329_v2  ;;  %v4338_v22 = vrot.slane %v4336_v19, 3  ;;  %v4341_v50 = vrot.slane %v4339_v15, 4  ;;  %v9355_v40 = vld [vmem:[#allocation2 + $0x70] sm:$0xf0]  ;;  %v9367_v2 = vld [vmem:[#allocation2 + $0xa0] sm:$0xf0] }
 0x29c   : > { %7401 = vmatprep.mubr.bf16.mxu1 %v4300_v3  ;;  %v4346_v17 = vrot.slane %v4344_v57, 3  ;;  %v4349_v44 = vrot.slane %v4347_v1, 4  ;;  %v4317_v11 = vsel %vm944_vm4, %v4308_v30, %v4316_v52  ;;  %v4674_v7 = vrot.slane %v9328_v51, 4  ;;  %v9365_v55 = vld [vmem:[#allocation2 + $0x90] sm:$0xf0]  ;;  %v8002_v57 = vld [vmem:[#allocation8 + $0x238] sm:$0xff]  }
 0x29d   : > { %v4334_v41 = vsel %vm944_vm4, %v4325_v56, %v4333_v6  ;;  %v4342_v21 = vor.u32 %v4341_v50, %v4338_v22  ;;  %v4675_v60 = vrot.slane %v9228_v43, 4  ;;  %v4677_v63 = vrot.slane %v9334_v59, 4  ;;  %v9375_v52 = vld [vmem:[#allocation2 + $0xb0] sm:$0xf0]  ;;  %v9377_v56 = vld [vmem:[#allocation2 + $0xc0] sm:$0xf0] }
 0x29e   : > { %v4350_v32 = vor.u32 %v4349_v44, %v4346_v17  ;;  %v4678_v61 = vrot.slane %v9242_v58, 4  ;;  %v4680_v39 = vrot.slane %v9336_v42, 4  ;;  %v4681_v12 = vrot.slane %v9245_v26, 4  ;;  %v9385_v44 = vld [vmem:[#allocation2 + $0xd0] sm:$0xf0] }
 0x29f   : > { %v4676_v54 = vsel %vm1474_vm3, %v4674_v7, %v4675_v60  ;;  %v4683_v58 = vrot.slane %v9344_v37, 4  ;;  %v4684_v9 = vrot.slane %v9254_v46, 4  ;;  %v4686_v26 = vrot.slane %v9347_v4, 4  ;;  %v7999_v46 = vld [vmem:[#allocation8 + $0x220] sm:$0xff]   ;;  %v9395_v60 = vld [vmem:[#allocation2 + $0xf0] sm:$0xf0] }
 0x2a0   : > { %v4351_v38 = vsel %vm944_vm4, %v4342_v21, %v4350_v32  ;;  %v4679_v43 = vsel %vm1474_vm3, %v4677_v63, %v4678_v61  ;;  %v4682_v8 = vsel %vm1474_vm3, %v4680_v39, %v4681_v12  ;;  %v4687_v5 = vrot.slane %v9257_v18, 4 }
 0x2a1   : > { %v4685_v14 = vsel %vm1474_vm3, %v4683_v58, %v4684_v9  ;;  %v4689_v20 = vrot.slane %v9355_v40, 4  ;;  %v4690_v18 = vrot.slane %v9267_v10, 4  ;;  %v4692_v3 = vrot.slane %v9357_v31, 4  ;;  %v8001_v10 = vld [vmem:[#allocation8 + $0x230] sm:$0xff]   ;;  %v8004_v58 = vld [vmem:[#allocation9 + $0x8] sm:$0xff]  }
 0x2a2   : > { %v4693_v49 = vrot.slane %v9272_v47, 4  ;;  %v4695_v29 = vrot.slane %v9365_v55, 4  ;;  %v4696_v47 = vrot.slane %v9278_v27, 4  ;;  %v4698_v19 = vrot.slane %v9367_v2, 4 }
 0x2a3   : > { %7402 = vmatmul.mubr.bf16.gmra.mrb[8].mxu1 %v4317_v11  ;;  %v4691_v13 = vsel %vm1474_vm3, %v4689_v20, %v4690_v18  ;;  %v4699_v15 = vrot.slane %v9283_v62, 4  ;;  %v4701_v27 = vrot.slane %v9375_v52, 4  ;;  %v4702_v6 = vrot.slane %v9286_v45, 4  ;;  %v9387_v11 = vld [vmem:[#allocation2 + $0xe0] sm:$0xf0] }
 0x2a4   : > { %7405 = vmatprep.mubr.bf16.mxu1 %v4334_v41  ;;  %v4694_v25 = vsel %vm1474_vm3, %v4692_v3, %v4693_v49  ;;  %v4697_v1 = vsel %vm1474_vm3, %v4695_v29, %v4696_v47  ;;  %v4704_v62 = vrot.slane %v9377_v56, 4  ;;  %v4705_v22 = vrot.slane %v9291_v24, 4 }
 0x2a5   : > { %v4700_v30 = vsel %vm1474_vm3, %v4698_v19, %v4699_v15  ;;  %v4703_v50 = vsel %vm1474_vm3, %v4701_v27, %v4702_v6  ;;  %v4707_v41 = vrot.slane %v9385_v44, 4  ;;  %v4708_v21 = vrot.slane %v9299_v33, 4  ;;  %v9401_v33 = vld [vmem:[#allocation2 + $0x110] sm:$0xf0]  ;;  %v8006_v15 = vld [vmem:[#allocation9 + $0x18] sm:$0xff]  }
 0x2a6   : > { %v4706_v17 = vsel %vm1474_vm3, %v4704_v62, %v4705_v22  ;;  %v4710_v45 = vrot.slane %v9387_v11, 4  ;;  %v4711_v32 = vrot.slane %v9305_v53, 4  ;;  %v4713_v63 = vrot.slane %v9395_v60, 4  ;;  %v4999_v6 = vld [vmem:[#allocation2 + $0x58] sm:$0x1f] }
 0x2a7   : > { %v4709_v24 = vsel %vm1474_vm3, %v4707_v41, %v4708_v21  ;;  %v4714_v61 = vrot.slane %v9312_v35, 4  ;;  %v5013_v39 = vshrl.u32 %v9328_v51, 16  ;;  %v5016_v53 = vshll.u32 %v9328_v51, 16  ;;  %v5000_v41 = vld [vmem:[#allocation2 + $0x68] sm:$0x1f] }
 0x2a8   : > { %v4712_v7 = vsel %vm1474_vm3, %v4710_v45, %v4711_v32  ;;  %v4719_v9 = vrot.slane %v9401_v33, 4  ;;  %v5030_v20 = vshrl.u32 %v9334_v59, 16  ;;  %v5033_v18 = vshll.u32 %v9334_v59, 16 }
 0x2a9   : > { %v4715_v35 = vsel %vm1474_vm3, %v4713_v63, %v4714_v61  ;;  %v5050_v29 = vshll.u32 %v9336_v42, 16  ;;  %v5064_v32 = vshrl.u32 %v9344_v37, 16  ;;  %v5081_v63 = vshrl.u32 %v9347_v4, 16 }
 0x2aa   : > { %v5084_v61 = vshll.u32 %v9347_v4, 16 }
 0x2ab   : > { %7406 = vmatmul.mubr.bf16.gmra.mrb[12].mxu1 %v4351_v38  ;;  %v9397_v38 = vld [vmem:[#allocation2 + $0x100] sm:$0xf0]  ;;  %v5052_v22 = vrot.slane %v5050_v29, 5 }
 0x2ac   : > { %7425 = vmatprep.mubr.bf16.mxu1 %v4676_v54  ;;  %v4996_v54 = vld [vmem:[#allocation2 + $0x28] sm:$0x1f]  ;;  %v4716_v12 = vrot.slane %v9397_v38, 4 }
 0x2b3   : > { %7426 = vmatmul.mubr.bf16.vlgmr.msra.gmra.mrb[16].mxu1 %v4679_v43  ;;  %v5021_v43 = vshrl.u32 %v4996_v54, 16 }
 0x2b4   : > { %7458 = vmatpush3.bf16.msra.mxu1 %v9296_v28  ;;  %7429 = vmatprep.mubr.bf16.mxu1 %v4682_v8  ;;  %v4688_v28 = vsel %vm1474_vm3, %v4686_v26, %v4687_v5  ;;  %v5024_v8 = vshll.u32 %v4996_v54, 16  ;;  %v4997_v26 = vld [vmem:[#allocation2 + $0x38] sm:$0x1f]  ;;  %v4720_v5 = vrot.slane %v9321_v36, 4  ;;  %v5075_v54 = vshll.u32 %v4999_v6, 16 }
 0x2b5   : > { %7459 = vmatprep.subr.bf16.mxu1 %v7996_v23  ;;  %v5038_v3 = vshrl.u32 %v4997_v26, 16  ;;  %v5041_v49 = vshll.u32 %v4997_v26, 16  ;;  %v5001_v26 = vld [vmem:[#allocation2 + $0x78] sm:$0x1f] }
 0x2b6   : > { %v4721_v36 = vsel %vm1474_vm3, %v4719_v9, %v4720_v5  ;;  %v5077_v9 = vrot.slane %v5075_v54, 5 }
 0x2b7   : > { %v5043_v59 = vrot.slane %v5041_v49, 5 }
 0x2b8   : > { %7460 = vmatpush3.bf16.msra.mxu1 %v7996_v23  ;;  %v4717_v23 = vrot.slane %v9314_v34, 4  ;;  %v5026_v34 = vrot.slane %v5024_v8, 5  ;;  %v5066_v8 = vrot.slane %v5064_v32, 4 }
 0x2b9   : > { %7461 = vmatprep.subr.bf16.mxu1 %v7997_v0 }
 0x2ba   : > { %v4718_v51 = vsel %vm1474_vm3, %v4716_v12, %v4717_v23 }
 0x2bb   : > { %7430 = vmatmul.mubr.bf16.gmra.mrb[20].mxu1 %v4685_v14  ;;  %v5018_v14 = vrot.slane %v5016_v53, 5  ;;  %v5092_v53 = vshll.u32 %v5000_v41, 16 }
 0x2bc   : > { %7433 = vmatprep.mubr.bf16.mxu1 %v4688_v28  ;;  %7462 = vmatpush3.bf16.msra.mxu1 %v7997_v0  ;;  %v8003_v0 = vld [vmem:[#allocation9] sm:$0xff]   ;;  %v5023_v28 = vrot.slane %v5021_v43, 4 }
 0x2bd   : > { %7463 = vmatprep.subr.bf16.mxu1 %v7998_v16  ;;  %7505 = vmatprep.subr.bf16.mxu0 %v8003_v0 }
 0x2be   : > { %7506 = vmatpush3.bf16.msra.mxu0 %v8003_v0 }
 0x2bf   : > { %7507 = vmatprep.subr.bf16.mxu0 %v8004_v58 }
 0x2c0   : > { %7464 = vmatpush3.bf16.msra.mxu1 %v7998_v16  ;;  %v5015_v16 = vrot.slane %v5013_v39, 4  ;;  %v5089_v39 = vshrl.u32 %v5000_v41, 16 }
 0x2c1   : > { %7465 = vmatprep.subr.bf16.mxu1 %v7999_v46 }
 0x2c2   : > { %7508 = vmatpush3.bf16.msra.mxu0 %v8004_v58  ;;  %v5091_v5 = vrot.slane %v5089_v39, 4 }
 0x2c3   : > { %7434 = vmatmul.mubr.bf16.gmra.mrb[24].mxu1 %v4691_v13  ;;  %v5019_v13 = vor.u32 %v5018_v14, %v5015_v16  ;;  %v5094_v16 = vrot.slane %v5092_v53, 5  ;;  %v5098_v14 = vshrl.u32 %v9355_v40, 16 }
 0x2c4   : > { %7437 = vmatprep.mubr.bf16.mxu1 %v4694_v25  ;;  %7466 = vmatpush3.bf16.msra.mxu1 %v7999_v46  ;;  %v8005_v46 = vld [vmem:[#allocation9 + $0x10] sm:$0xff]   ;;  %v5047_v25 = vshrl.u32 %v9336_v42, 16  ;;  %v8007_v42 = vld [vmem:[#allocation9 + $0x20] sm:$0xff]  }
 0x2c5   : > { %7467 = vmatprep.subr.bf16.mxu1 %v8000_v48  ;;  %7509 = vmatprep.subr.bf16.mxu0 %v8005_v46  ;;  %v5095_v49 = vor.u32 %v5094_v16, %v5091_v5 }
 0x2c6   : > { %v5049_v27 = vrot.slane %v5047_v25, 4  ;;  %7510 = vmatpush3.bf16.msra.mxu0 %v8005_v46  ;;  %v5002_v46 = vld [vmem:[#allocation2 + $0x88] sm:$0x1f] }
 0x2c7   : > { %7511 = vmatprep.subr.bf16.mxu0 %v8006_v15  ;;  %v5126_v25 = vshll.u32 %v5002_v46, 16 }
 0x2c8   : > { %7468 = vmatpush3.bf16.msra.mxu1 %v8000_v48  ;;  %v4998_v48 = vld [vmem:[#allocation2 + $0x48] sm:$0x1f]  ;;  %v5053_v12 = vor.u32 %v5052_v22, %v5049_v27  ;;  %v5132_v22 = vshrl.u32 %v9365_v55, 16 }
 0x2c9   : > { %7469 = vmatprep.subr.bf16.mxu1 %v8001_v10  ;;  %v5055_v47 = vshrl.u32 %v4998_v48, 16  ;;  %v5058_v19 = vshll.u32 %v4998_v48, 16  ;;  %v5115_v48 = vshrl.u32 %v9357_v31, 16  ;;  %v5128_v27 = vrot.slane %v5126_v25, 5 }
 0x2ca   : > { %7512 = vmatpush3.bf16.msra.mxu0 %v8006_v15 }
 0x2cb   : > { %7438 = vmatmul.mubr.bf16.gmra.mrb[28].mxu1 %v4697_v1  ;;  %v5035_v1 = vrot.slane %v5033_v18, 5  ;;  %7513 = vmatprep.subr.bf16.mxu0 %v8007_v42 }
 0x2cc   : > { %7441 = vmatprep.mubr.bf16.mxu1 %v4700_v30  ;;  %7470 = vmatpush3.bf16.msra.mxu1 %v8001_v10  ;;  %v5027_v10 = vor.u32 %v5026_v34, %v5023_v28  ;;  %v5040_v30 = vrot.slane %v5038_v3, 4  ;;  %v5106_v28 = vshrl.u32 %v5001_v26, 16  ;;  %v5109_v34 = vshll.u32 %v5001_v26, 16 }
 0x2cd   : > { %7471 = vmatprep.subr.bf16.mxu1 %v8002_v57 }
 0x2ce   : > { %v5028_v62 = vsel %vm1990_vm7, %v5019_v13, %v5027_v10  ;;  %v5044_v45 = vor.u32 %v5043_v59, %v5040_v30  ;;  %7514 = vmatpush3.bf16.msra.mxu0 %v8007_v42  ;;  %v5123_v13 = vshrl.u32 %v5002_v46, 16  ;;  %v5100_v10 = vrot.slane %v5098_v14, 4 }
 0x2cf   : > { %v5149_v42 = vshrl.u32 %v9367_v2, 16  ;;  %v5183_v14 = vshrl.u32 %v9377_v56, 16 }
 0x2d0   : > { %7472 = vmatpush3.bf16.msra.mxu1 %v8002_v57  ;;  %v5032_v57 = vrot.slane %v5030_v20, 4  ;;  %v5125_v59 = vrot.slane %v5123_v13, 4 }
 0x2d2   : > { %v5036_v21 = vor.u32 %v5035_v1, %v5032_v57  ;;  %v5003_v57 = vld [vmem:[#allocation2 + $0x98] sm:$0x1f]  ;;  %v5117_v1 = vrot.slane %v5115_v48, 4 }
 0x2d3   : > { %7442 = vmatmul.mubr.bf16.gmra.mrb[0].mxu1 %v4703_v50  ;;  %v5057_v50 = vrot.slane %v5055_v47, 4  ;;  %v5108_v47 = vrot.slane %v5106_v28, 4  ;;  %v5143_v41 = vshll.u32 %v5003_v57, 16  ;;  %v5007_v48 = vld [vmem:[#allocation2 + $0xd8] sm:$0x1f] }
 0x2d4   : > { %7445 = vmatprep.mubr.bf16.mxu1 %v4706_v17  ;;  %v5060_v17 = vrot.slane %v5058_v19, 5  ;;  %v5045_v43 = vsel %vm1990_vm7, %v5036_v21, %v5044_v45  ;;  %v5111_v19 = vrot.slane %v5109_v34, 5  ;;  %v5152_v21 = vshll.u32 %v9367_v2, 16 }
 0x2d5   : > { %v5145_v53 = vrot.slane %v5143_v41, 5  ;;  %v5166_v2 = vshrl.u32 %v9375_v52, 16 }
 0x2d6   : > { %v5061_v23 = vor.u32 %v5060_v17, %v5057_v50  ;;  %v5135_v50 = vshll.u32 %v9365_v55, 16  ;;  %v5140_v17 = vshrl.u32 %v5003_v57, 16  ;;  %v5211_v57 = vshll.u32 %v5007_v48, 16 }
 0x2d7   : > { %v5168_v46 = vrot.slane %v5166_v2, 4  ;;  %v5251_v2 = vshrl.u32 %v9397_v38, 16 }
 0x2d8   : > { %v5062_v4 = vsel %vm1990_vm7, %v5053_v12, %v5061_v23  ;;  %v5142_v39 = vrot.slane %v5140_v17, 4  ;;  %v5005_v12 = vld [vmem:[#allocation2 + $0xb8] sm:$0x1f]  ;;  %v5151_v23 = vrot.slane %v5149_v42, 4  ;;  %v5213_v41 = vrot.slane %v5211_v57, 5 }
 0x2d9   : > { %v5177_v26 = vshll.u32 %v5005_v12, 16 }
 0x2da   : > { %v5146_v5 = vor.u32 %v5145_v53, %v5142_v39 }
 0x2db   : > { %7446 = vmatmul.mubr.bf16.gmra.mrb[4].mxu1 %v4709_v24  ;;  %v5067_v24 = vshll.u32 %v9344_v37, 16  ;;  %v5083_v37 = vrot.slane %v5081_v63, 4  ;;  %v5134_v63 = vrot.slane %v5132_v22, 4 }
 0x2dc   : > { %7449 = vmatprep.mubr.bf16.mxu1 %v4712_v7  ;;  %v5072_v7 = vshrl.u32 %v4999_v6, 16  ;;  %v5004_v6 = vld [vmem:[#allocation2 + $0xa8] sm:$0x1f] }
 0x2dd   : > { %v5069_v0 = vrot.slane %v5067_v24, 5  ;;  %v5157_v45 = vshrl.u32 %v5004_v6, 16  ;;  %v5160_v32 = vshll.u32 %v5004_v6, 16 }
 0x2de   : > { %v5074_v58 = vrot.slane %v5072_v7, 4  ;;  %v5129_v7 = vor.u32 %v5128_v27, %v5125_v59 }
 0x2df   : > { %v5070_v20 = vor.u32 %v5069_v0, %v5066_v8  ;;  %v5159_v55 = vrot.slane %v5157_v45, 4  ;;  %v5162_v8 = vrot.slane %v5160_v32, 5 }
 0x2e0   : > { %v5078_v18 = vor.u32 %v5077_v9, %v5074_v58  ;;  %v5169_v58 = vshll.u32 %v9375_v52, 16  ;;  %v5174_v9 = vshrl.u32 %v5005_v12, 16  ;;  %v5234_v12 = vshrl.u32 %v9395_v60, 16 }
 0x2e2   : > { %v5079_v15 = vsel %vm1990_vm7, %v5070_v20, %v5078_v18  ;;  %v5171_v20 = vrot.slane %v5169_v58, 5  ;;  %v5176_v18 = vrot.slane %v5174_v9, 4  ;;  %v5254_v58 = vshll.u32 %v9397_v38, 16 }
 0x2e3   : > { %7450 = vmatmul.mubr.bf16.gmra.mrb[8].mxu1 %v4715_v35  ;;  %v5086_v35 = vrot.slane %v5084_v61, 5  ;;  %v5137_v61 = vrot.slane %v5135_v50, 5 }
 0x2e4   : > { %7453 = vmatprep.mubr.bf16.mxu1 %v4718_v51  ;;  %v5101_v51 = vshll.u32 %v9355_v40, 16 }
 0x2e5   : > { %v5087_v3 = vor.u32 %v5086_v35, %v5083_v37  ;;  %v5006_v37 = vld [vmem:[#allocation2 + $0xc8] sm:$0x1f]  ;;  %v5138_v35 = vor.u32 %v5137_v61, %v5134_v63 }
 0x2e6   : > { %v5103_v29 = vrot.slane %v5101_v51, 5  ;;  %v5186_v51 = vshll.u32 %v9377_v56, 16  ;;  %v5191_v28 = vshrl.u32 %v5006_v37, 16  ;;  %v5194_v34 = vshll.u32 %v5006_v37, 16  ;;  %v5010_v61 = vld [vmem:[#allocation2 + $0x108] sm:$0x1f] }
 0x2e7   : > { %v5096_v40 = vsel %vm1990_vm7, %v5087_v3, %v5095_v49  ;;  %v5179_v3 = vrot.slane %v5177_v26, 5  ;;  %v5147_v49 = vsel %vm1990_vm7, %v5138_v35, %v5146_v5  ;;  %v5259_v9 = vshrl.u32 %v5010_v61, 16 }
 0x2e8   : > { %v5188_v13 = vrot.slane %v5186_v51, 5  ;;  %v5193_v25 = vrot.slane %v5191_v28, 4  ;;  %v5262_v26 = vshll.u32 %v5010_v61, 16  ;;  %v5236_v35 = vrot.slane %v5234_v12, 4  ;;  %v8009_v12 = vld [vmem:[#allocation9 + $0x30] sm:$0xff]  }
 0x2e9   : > { %v5180_v56 = vor.u32 %v5179_v3, %v5176_v18  ;;  %v5268_v3 = vshrl.u32 %v9401_v33, 16 }
 0x2ea   : > { %v5264_v38 = vrot.slane %v5262_v26, 5 }
 0x2eb   : > { %7454 = vmatmul.mubr.bf16.gmra.mrb[12].mxu1 %v4721_v36  ;;  %v5118_v36 = vshll.u32 %v9357_v31, 16  ;;  %v5112_v31 = vor.u32 %v5111_v19, %v5108_v47  ;;  %v5172_v47 = vor.u32 %v5171_v20, %v5168_v46  ;;  %v5200_v19 = vshrl.u32 %v9385_v44, 16 }
 0x2ec   : > { %7473 = vmatprep.mubr.bf16.mxu1 %v5028_v62  ;;  %v5104_v62 = vor.u32 %v5103_v29, %v5100_v10  ;;  %v5196_v10 = vrot.slane %v5194_v34, 5  ;;  %v5008_v29 = vld [vmem:[#allocation2 + $0xe8] sm:$0x1f]  ;;  %v5253_v34 = vrot.slane %v5251_v2, 4  ;;  %v5256_v46 = vrot.slane %v5254_v58, 5 }
 0x2ed   : > { %v5120_v30 = vrot.slane %v5118_v36, 5  ;;  %v5185_v36 = vrot.slane %v5183_v14, 4  ;;  %v5225_v59 = vshrl.u32 %v5008_v29, 16  ;;  %v5228_v27 = vshll.u32 %v5008_v29, 16 }
 0x2ee   : > { %v5113_v54 = vsel %vm1990_vm7, %v5104_v62, %v5112_v31  ;;  %v5197_v62 = vor.u32 %v5196_v10, %v5193_v25  ;;  %v5181_v31 = vsel %vm1990_vm7, %v5172_v47, %v5180_v56  ;;  %v5202_v22 = vrot.slane %v5200_v19, 4 }
 0x2ef   : > { %v5121_v24 = vor.u32 %v5120_v30, %v5117_v1  ;;  %v5217_v1 = vshrl.u32 %v9387_v11, 16  ;;  %v5220_v30 = vshll.u32 %v9387_v11, 16  ;;  %v5189_v6 = vor.u32 %v5188_v13, %v5185_v36 }
 0x2f0   : > { %v5227_v45 = vrot.slane %v5225_v59, 4  ;;  %v5230_v32 = vrot.slane %v5228_v27, 5  ;;  %v5261_v20 = vrot.slane %v5259_v9, 4  ;;  %v5257_v10 = vor.u32 %v5256_v46, %v5253_v34 }
 0x2f1   : > { %v5130_v0 = vsel %vm1990_vm7, %v5121_v24, %v5129_v7  ;;  %v5198_v11 = vsel %vm1990_vm7, %v5189_v6, %v5197_v62  ;;  %v5270_v47 = vrot.slane %v5268_v3, 4 }
 0x2f2   : > { %v5265_v29 = vor.u32 %v5264_v38, %v5261_v20 }
 0x2f3   : > { %7474 = vmatmul.mubr.bf16.vlgmr.msra.gmra.mrb[16].mxu1 %v5045_v43  ;;  %v5154_v43 = vrot.slane %v5152_v21, 5  ;;  %v5219_v21 = vrot.slane %v5217_v1, 4 }
 0x2f4   : > { %7477 = vmatprep.mubr.bf16.mxu1 %v5062_v4  ;;  %v5163_v4 = vor.u32 %v5162_v8, %v5159_v55  ;;  %v5231_v55 = vor.u32 %v5230_v32, %v5227_v45  ;;  %v5266_v57 = vsel %vm1990_vm7, %v5257_v10, %v5265_v29 }
 0x2f5   : > { %v5155_v16 = vor.u32 %v5154_v43, %v5151_v23  ;;  %v5237_v23 = vshll.u32 %v9395_v60, 16 }
 0x2f7   : > { %v5164_v52 = vsel %vm1990_vm7, %v5155_v16, %v5163_v4  ;;  %v5011_v16 = vld [vmem:[#allocation2 + $0x118] sm:$0x1f]  ;;  %v5239_v14 = vrot.slane %v5237_v23, 5 }
 0x2f9   : > { %v5240_v13 = vor.u32 %v5239_v14, %v5236_v35 }
 0x2fb   : > { %7478 = vmatmul.mubr.bf16.gmra.mrb[20].mxu1 %v5079_v15  ;;  %v5203_v15 = vshll.u32 %v9385_v44, 16  ;;  %v5222_v44 = vrot.slane %v5220_v30, 5 }
 0x2fc   : > { %7481 = vmatprep.mubr.bf16.mxu1 %v5096_v40  ;;  %v5208_v40 = vshrl.u32 %v5007_v48, 16  ;;  %v5279_v48 = vshll.u32 %v5011_v16, 16 }
 0x2fd   : > { %v5205_v50 = vrot.slane %v5203_v15, 5  ;;  %v5223_v43 = vor.u32 %v5222_v44, %v5219_v21 }
 0x2fe   : > { %v5210_v17 = vrot.slane %v5208_v40, 4  ;;  %v5281_v15 = vrot.slane %v5279_v48, 5 }
 0x2ff   : > { %v5206_v39 = vor.u32 %v5205_v50, %v5202_v22  ;;  %v5232_v4 = vsel %vm1990_vm7, %v5223_v43, %v5231_v55 }
 0x300   : > { %v5214_v53 = vor.u32 %v5213_v41, %v5210_v17 }
 0x302   : > { %v5215_v37 = vsel %vm1990_vm7, %v5206_v39, %v5214_v53  ;;  %v8008_v53 = vld [vmem:[#allocation9 + $0x28] sm:$0xff]  }
 0x303   : > { %7482 = vmatmul.mubr.bf16.gmra.mrb[24].mxu1 %v5113_v54  ;;  %v5009_v54 = vld [vmem:[#allocation2 + $0xf8] sm:$0x1f]  ;;  %7515 = vmatprep.subr.bf16.mxu0 %v8008_v53 }
 0x304   : > { %7485 = vmatprep.mubr.bf16.mxu1 %v5130_v0  ;;  %v5242_v8 = vshrl.u32 %v5009_v54, 16  ;;  %v5245_v0 = vshll.u32 %v5009_v54, 16  ;;  %7516 = vmatpush3.bf16.msra.mxu0 %v8008_v53 }
 0x305   : > { %7517 = vmatprep.subr.bf16.mxu0 %v8009_v12 }
 0x306   : > { %v5244_v60 = vrot.slane %v5242_v8, 4  ;;  %v5247_v51 = vrot.slane %v5245_v0, 5  ;;  %v8010_v8 = vld [vmem:[#allocation9 + $0x38] sm:$0xff]  }
 0x308   : > { %v5248_v25 = vor.u32 %v5247_v51, %v5244_v60  ;;  %7518 = vmatpush3.bf16.msra.mxu0 %v8009_v12 }
 0x309   : > { %7519 = vmatprep.subr.bf16.mxu0 %v8010_v8 }
 0x30a   : > { %v5249_v40 = vsel %vm1990_vm7, %v5240_v13, %v5248_v25 }
 0x30b   : > { %7486 = vmatmul.mubr.bf16.gmra.mrb[28].mxu1 %v5147_v49  ;;  %v5271_v49 = vshll.u32 %v9401_v33, 16 }
 0x30c   : > { %7489 = vmatprep.mubr.bf16.mxu1 %v5164_v52  ;;  %v5276_v52 = vshrl.u32 %v5011_v16, 16  ;;  %7520 = vmatpush3.bf16.msra.mxu0 %v8010_v8 }
 0x30d   : > { %v5273_v56 = vrot.slane %v5271_v49, 5 }
 0x30e   : > { %v5278_v19 = vrot.slane %v5276_v52, 4 }
 0x30f   : > { %v5274_v1 = vor.u32 %v5273_v56, %v5270_v47 }
 0x310   : > { %v5282_v33 = vor.u32 %v5281_v15, %v5278_v19 }
 0x312   : > { %v9446_v42 = vpop.f32.mrb[48].mxu0  ;;  %v5283_v30 = vsel %vm1990_vm7, %v5274_v1, %v5282_v33 }
 0x313   : > { %v9448_v24 = vpop.f32.mrb[49].mxu0  ;;  %7490 = vmatmul.mubr.bf16.gmra.mrb[0].mxu1 %v5181_v31 }
 0x314   : > { %v9451_v7 = vpop.f32.mrb[50].mxu0  ;;  %7493 = vmatprep.mubr.bf16.mxu1 %v5198_v11 }
 0x315   : > { %v9453_v63 = vpop.f32.mrb[51].mxu0 }
 0x31a   : > { %v9460_v5 = vpop.f32.mrb[52].mxu0 }
 0x31b   : > { %v9463_v28 = vpop.f32.mrb[53].mxu0  ;;  %7494 = vmatmul.mubr.bf16.gmra.mrb[4].mxu1 %v5215_v37  ;;  %v9507_v37 = vld [vmem:[%s9767_s5] ss:$0 sm:$0xff] }
 0x31c   : > { %v9465_v18 = vpop.f32.mrb[54].mxu0  ;;  %7497 = vmatprep.mubr.bf16.mxu1 %v5232_v4  ;;  %v9512_v4 = vld [vmem:[%s9768_s6] ss:$0 sm:$0xff] }
 0x31d   : > { %v9469_v36 = vpop.f32.mrb[55].mxu0 }
 0x323   : > { %7498 = vmatmul.mubr.bf16.gmra.mrb[8].mxu1 %v5249_v40 }
 0x324   : > { %7501 = vmatprep.mubr.bf16.mxu1 %v5266_v57 }
 0x32a   : > { %v9474_v59 = vpop.f32.mrb[56].mxu0 }
 0x32b   : > { %v9476_v27 = vpop.f32.mrb[57].mxu0  ;;  %7502 = vmatmul.mubr.bf16.gmra.mrb[12].mxu1 %v5283_v30 }
 0x32c   : > { %v9478_v6 = vpop.f32.mrb[58].mxu0 }
 0x32d   : > { %v9480_v62 = vpop.f32.mrb[59].mxu0 }
 0x332   : > { %v9482_v31 = vpop.f32.mrb[60].mxu0 }
 0x333   : > { %v9484_v22 = vpop.f32.mrb[61].mxu0 }
 0x334   : > { %v9486_v50 = vpop.f32.mrb[62].mxu0 }
 0x335   : > { %v9488_v17 = vpop.f32.mrb[63].mxu0 }
 0x33a   : > { %v7235_v41 = vpop.f32.mrb[32].mxu0 }
 0x33b   : > { %v2956_v21 = vpop.f32.mrb[33].mxu0 }
 0x33c   : > { %v7236_v44 = vpop.f32.mrb[34].mxu0 }
 0x33d   : > { %v2959_v45 = vpop.f32.mrb[35].mxu0 }
 0x346   : > { %v7239_v32 = vpop.f32.mrb[36].mxu0 }
 0x347   : > { %v2972_v11 = vpop.f32.mrb[37].mxu0 }
 0x348   : > { %v7240_v54 = vpop.f32.mrb[38].mxu0 }
 0x349   : > { %v2975_v61 = vpop.f32.mrb[39].mxu0 }
 0x351   : > { %v7243_v39 = vpop.f32.mrb[40].mxu0 }
 0x352   : > { %v9490_v23 = vpop.f32.mrb[41].mxu0 }
 0x353   : > { %v9492_v43 = vpop.f32.mrb[42].mxu0 }
 0x354   : > { %v9494_v55 = vpop.f32.mrb[43].mxu0 }
 0x35c   : > { %v9496_v0 = vpop.f32.mrb[44].mxu0 }
 0x35d   : > { %v9498_v2 = vpop.f32.mrb[45].mxu0 }
 0x35e   : > { %v9500_v58 = vpop.f32.mrb[46].mxu0 }
 0x35f   : > { %v9502_v9 = vpop.f32.mrb[47].mxu0 }
 0x3c6   : > { %v7475_v26 = vpop.f32.mrb[16].mxu1 }
 0x3c7   : > { %v7569_v35 = vadd.f32 %v7475_v26, %v7235_v41  ;;  %v5399_v16 = vpop.f32.mrb[17].mxu1 }
 0x3c8   : > { %v7570_v14 = vadd.f32 %v5399_v16, %v2956_v21  ;;  %v7476_v60 = vpop.f32.mrb[18].mxu1 }
 0x3c9   : > { %v5567_v51 = vmul.f32 %v7569_v35, %v9507_v37  ;;  %v7571_v34 = vadd.f32 %v7476_v60, %v7236_v44  ;;  %v5402_v46 = vpop.f32.mrb[19].mxu1 }
 0x3ca   : > { %v5565_v20 = vmul.f32 %v7570_v14, %v9507_v37  ;;  %v7572_v38 = vadd.f32 %v5402_v46, %v2959_v45 }
 0x3cb   : > { %v5606_v3 = vadd.f32 %v9512_v4, %v5567_v51  ;;  %v5568_v49 = vmul.f32 %v7571_v34, %v9507_v37 }
 0x3cc   : > { %v5604_v52 = vadd.f32 %v9512_v4, %v5565_v20  ;;  %v5566_v48 = vmul.f32 %v7572_v38, %v9507_v37 }
 0x3cd   : > { %v5607_v13 = vadd.f32 %v9512_v4, %v5568_v49  ;;  %v5638_v29 = vmax.f32 %v5606_v3, 0.0 }
 0x3ce   : > { %v5605_v25 = vadd.f32 %v9512_v4, %v5566_v48  ;;  %v7479_v10 = vpop.f32.mrb[20].mxu1  ;;  %v5636_v15 = vmax.f32 %v5604_v52, 0.0 }
 0x3cf   : > { %v5639_v47 = vmax.f32 %v5607_v13, 0.0  ;;  %v7573_v56 = vadd.f32 %v7479_v10, %v7239_v32  ;;  %v5415_v19 = vpop.f32.mrb[21].mxu1 }
 0x3d0   : > { %v5637_v40 = vmax.f32 %v5605_v25, 0.0  ;;  %v7574_v57 = vadd.f32 %v5415_v19, %v2972_v11  ;;  %v7480_v1 = vpop.f32.mrb[22].mxu1 }
 0x3d1   : > { %v5669_v33 = vpack.c.bf16 %v5639_v47, %v5638_v29  ;;  %v5571_v30 = vmul.f32 %v7573_v56, %v9507_v37  ;;  %v7575_v41 = vadd.f32 %v7480_v1, %v7240_v54  ;;  %v5418_v21 = vpop.f32.mrb[23].mxu1 }
 0x3d2   : > { %v5569_v44 = vmul.f32 %v7574_v57, %v9507_v37  ;;  %v7576_v45 = vadd.f32 %v5418_v21, %v2975_v61  ;;  %v5668_v53 = vpack.c.bf16 %v5637_v40, %v5636_v15 }
 0x3d3   : > { %v5610_v12 = vadd.f32 %v9512_v4, %v5571_v30  ;;  %v5572_v8 = vmul.f32 %v7575_v41, %v9507_v37 }
 0x3d4   : > { %v5608_v32 = vadd.f32 %v9512_v4, %v5569_v44  ;;  %v5570_v26 = vmul.f32 %v7576_v45, %v9507_v37  ;;  %7521 = vmatprep.mubr.bf16.mxu0 %v5668_v53 }
 0x3d5   : > { %v5611_v11 = vadd.f32 %v9512_v4, %v5572_v8  ;;  %7522 = vmatmul.mubr.bf16.vlgmr.msra.gmra.mrb[64].mxu0 %v5669_v33  ;;  %v5642_v16 = vmax.f32 %v5610_v12, 0.0 }
 0x3d6   : > { %v5609_v35 = vadd.f32 %v9512_v4, %v5570_v26  ;;  %v7483_v54 = vpop.f32.mrb[24].mxu1  ;;  %v5640_v51 = vmax.f32 %v5608_v32, 0.0 }
 0x3d7   : > { %v5643_v14 = vmax.f32 %v5611_v11, 0.0  ;;  %v7577_v60 = vadd.f32 %v7483_v54, %v7243_v39  ;;  %v5431_v61 = vpop.f32.mrb[25].mxu1 }
 0x3d8   : > { %v5641_v34 = vmax.f32 %v5609_v35, 0.0  ;;  %v7578_v46 = vadd.f32 %v5431_v61, %v9490_v23  ;;  %v7484_v20 = vpop.f32.mrb[26].mxu1 }
 0x3d9   : > { %v5575_v38 = vmul.f32 %v7577_v60, %v9507_v37  ;;  %v7579_v3 = vadd.f32 %v7484_v20, %v9492_v43  ;;  %v5434_v49 = vpop.f32.mrb[27].mxu1  ;;  %v5671_v52 = vpack.c.bf16 %v5643_v14, %v5642_v16 }
 0x3da   : > { %v5573_v48 = vmul.f32 %v7578_v46, %v9507_v37  ;;  %v7580_v13 = vadd.f32 %v5434_v49, %v9494_v55  ;;  %v5670_v25 = vpack.c.bf16 %v5641_v34, %v5640_v51 }
 0x3db   : > { %v5614_v10 = vadd.f32 %v9512_v4, %v5575_v38  ;;  %v5576_v39 = vmul.f32 %v7579_v3, %v9507_v37 }
 0x3dc   : > { %v5612_v29 = vadd.f32 %v9512_v4, %v5573_v48  ;;  %v5574_v23 = vmul.f32 %v7580_v13, %v9507_v37  ;;  %7525 = vmatprep.mubr.bf16.mxu0 %v5670_v25 }
 0x3dd   : > { %v5615_v47 = vadd.f32 %v9512_v4, %v5576_v39  ;;  %7526 = vmatmul.mubr.bf16.gmra.mrb[68].mxu0 %v5671_v52  ;;  %v5646_v19 = vmax.f32 %v5614_v10, 0.0 }
 0x3de   : > { %v5613_v43 = vadd.f32 %v9512_v4, %v5574_v23  ;;  %v7487_v56 = vpop.f32.mrb[28].mxu1  ;;  %v5644_v57 = vmax.f32 %v5612_v29, 0.0 }
 0x3df   : > { %v5647_v15 = vmax.f32 %v5615_v47, 0.0  ;;  %v7581_v55 = vadd.f32 %v7487_v56, %v9496_v0  ;;  %v5447_v40 = vpop.f32.mrb[29].mxu1 }
 0x3e0   : > { %v5645_v1 = vmax.f32 %v5613_v43, 0.0  ;;  %v7582_v33 = vadd.f32 %v5447_v40, %v9498_v2  ;;  %v7488_v30 = vpop.f32.mrb[30].mxu1 }
 0x3e1   : > { %v5579_v41 = vmul.f32 %v7581_v55, %v9507_v37  ;;  %v7583_v21 = vadd.f32 %v7488_v30, %v9500_v58  ;;  %v5450_v44 = vpop.f32.mrb[31].mxu1  ;;  %v5673_v45 = vpack.c.bf16 %v5647_v15, %v5646_v19 }
 0x3e2   : > { %v5577_v53 = vmul.f32 %v7582_v33, %v9507_v37  ;;  %v7584_v12 = vadd.f32 %v5450_v44, %v9502_v9  ;;  %v5672_v8 = vpack.c.bf16 %v5645_v1, %v5644_v57 }
 0x3e3   : > { %v5618_v32 = vadd.f32 %v9512_v4, %v5579_v41  ;;  %v5580_v0 = vmul.f32 %v7583_v21, %v9507_v37 }
 0x3e4   : > { %v5616_v26 = vadd.f32 %v9512_v4, %v5577_v53  ;;  %v5578_v2 = vmul.f32 %v7584_v12, %v9507_v37  ;;  %7529 = vmatprep.mubr.bf16.mxu0 %v5672_v8 }
 0x3e5   : > { %v5619_v11 = vadd.f32 %v9512_v4, %v5580_v0  ;;  %7530 = vmatmul.mubr.bf16.gmra.mrb[72].mxu0 %v5673_v45  ;;  %v5650_v54 = vmax.f32 %v5618_v32, 0.0 }
 0x3e6   : > { %v5617_v58 = vadd.f32 %v9512_v4, %v5578_v2  ;;  %v7491_v35 = vpop.f32.mrb[0].mxu1  ;;  %v5648_v60 = vmax.f32 %v5616_v26, 0.0 }
 0x3e7   : > { %v5651_v16 = vmax.f32 %v5619_v11, 0.0  ;;  %v7585_v9 = vadd.f32 %v7491_v35, %v9446_v42  ;;  %v5463_v14 = vpop.f32.mrb[1].mxu1 }
 0x3e8   : > { %v5649_v61 = vmax.f32 %v5617_v58, 0.0  ;;  %v7586_v51 = vadd.f32 %v5463_v14, %v9448_v24  ;;  %v7492_v34 = vpop.f32.mrb[2].mxu1 }
 0x3e9   : > { %v5583_v46 = vmul.f32 %v7585_v9, %v9507_v37  ;;  %v7587_v20 = vadd.f32 %v7492_v34, %v9451_v7  ;;  %v5466_v38 = vpop.f32.mrb[3].mxu1  ;;  %v5675_v3 = vpack.c.bf16 %v5651_v16, %v5650_v54 }
 0x3ea   : > { %v5581_v49 = vmul.f32 %v7586_v51, %v9507_v37  ;;  %v7588_v52 = vadd.f32 %v5466_v38, %v9453_v63  ;;  %v5674_v48 = vpack.c.bf16 %v5649_v61, %v5648_v60 }
 0x3eb   : > { %v5622_v13 = vadd.f32 %v9512_v4, %v5583_v46  ;;  %v5584_v42 = vmul.f32 %v7587_v20, %v9507_v37 }
 0x3ec   : > { %v5620_v25 = vadd.f32 %v9512_v4, %v5581_v49  ;;  %v5582_v24 = vmul.f32 %v7588_v52, %v9507_v37  ;;  %7533 = vmatprep.mubr.bf16.mxu0 %v5674_v48 }
 0x3ed   : > { %v5623_v10 = vadd.f32 %v9512_v4, %v5584_v42  ;;  %7534 = vmatmul.mubr.bf16.gmra.mrb[76].mxu0 %v5675_v3  ;;  %v5654_v29 = vmax.f32 %v5622_v13, 0.0 }
 0x3ee   : > { %v5621_v7 = vadd.f32 %v9512_v4, %v5582_v24  ;;  %v7495_v39 = vpop.f32.mrb[4].mxu1  ;;  %v5652_v43 = vmax.f32 %v5620_v25, 0.0 }
 0x3ef   : > { %v5655_v23 = vmax.f32 %v5623_v10, 0.0  ;;  %v7589_v63 = vadd.f32 %v7495_v39, %v9460_v5  ;;  %v5479_v47 = vpop.f32.mrb[5].mxu1 }
 0x3f0   : > { %v5653_v56 = vmax.f32 %v5621_v7, 0.0  ;;  %v7590_v19 = vadd.f32 %v5479_v47, %v9463_v28  ;;  %v7496_v15 = vpop.f32.mrb[6].mxu1 }
 0x3f1   : > { %v5587_v55 = vmul.f32 %v7589_v63, %v9507_v37  ;;  %v7591_v40 = vadd.f32 %v7496_v15, %v9465_v18  ;;  %v5482_v57 = vpop.f32.mrb[7].mxu1  ;;  %v5677_v1 = vpack.c.bf16 %v5655_v23, %v5654_v29 }
 0x3f2   : > { %v5585_v33 = vmul.f32 %v7590_v19, %v9507_v37  ;;  %v7592_v30 = vadd.f32 %v5482_v57, %v9469_v36  ;;  %v5676_v41 = vpack.c.bf16 %v5653_v56, %v5652_v43  ;;  %v6588_v57 = vld [vmem:[%s8513_s9] sm:$0xff]  }
 0x3f3   : > { %v5626_v21 = vadd.f32 %v9512_v4, %v5587_v55  ;;  %v5588_v5 = vmul.f32 %v7591_v40, %v9507_v37  ;;  %v9604_v40 = vld [vmem:[%s9770_s8] ss:$0 sm:$0xff] }
 0x3f4   : > { %v5624_v44 = vadd.f32 %v9512_v4, %v5585_v33  ;;  %v5586_v28 = vmul.f32 %v7592_v30, %v9507_v37  ;;  %7537 = vmatprep.mubr.bf16.mxu0 %v5676_v41 }
 0x3f5   : > { %v5627_v45 = vadd.f32 %v9512_v4, %v5588_v5  ;;  %7538 = vmatmul.mubr.bf16.gmra.mrb[80].mxu0 %v5677_v1  ;;  %v5658_v12 = vmax.f32 %v5626_v21, 0.0  ;;  %v6589_v5 = vunpack.c.l.bf16 %v6588_v57 }
 0x3f6   : > { %v5625_v18 = vadd.f32 %v9512_v4, %v5586_v28  ;;  %v7499_v53 = vpop.f32.mrb[8].mxu1  ;;  %v5656_v0 = vmax.f32 %v5624_v44, 0.0 }
 0x3f7   : > { %v5659_v8 = vmax.f32 %v5627_v45, 0.0  ;;  %v7593_v36 = vadd.f32 %v7499_v53, %v9474_v59  ;;  %v5495_v32 = vpop.f32.mrb[9].mxu1 }
 0x3f8   : > { %v5657_v26 = vmax.f32 %v5625_v18, 0.0  ;;  %v7594_v2 = vadd.f32 %v5495_v32, %v9476_v27  ;;  %v7500_v11 = vpop.f32.mrb[10].mxu1 }
 0x3f9   : > { %v5591_v58 = vmul.f32 %v7593_v36, %v9507_v37  ;;  %v7595_v35 = vadd.f32 %v7500_v11, %v9478_v6  ;;  %v5498_v54 = vpop.f32.mrb[11].mxu1  ;;  %v5679_v16 = vpack.c.bf16 %v5659_v8, %v5658_v12  ;;  %v6590_v36 = vunpack.c.h.bf16 %v6588_v57  ;;  %v6733_v11 = vld [vmem:[%s8513_s9 + $0x18] sm:$0xff]  }
 0x3fa   : > { %v5589_v9 = vmul.f32 %v7594_v2, %v9507_v37  ;;  %v7596_v14 = vadd.f32 %v5498_v54, %v9480_v62  ;;  %v5678_v60 = vpack.c.bf16 %v5657_v26, %v5656_v0 }
 0x3fb   : > { %v5630_v61 = vadd.f32 %v9512_v4, %v5591_v58  ;;  %v5592_v59 = vmul.f32 %v7595_v35, %v9507_v37  ;;  %v6732_v35 = vld [vmem:[%s8513_s9 + $0x10] sm:$0xff]  }
 0x3fc   : > { %v5628_v51 = vadd.f32 %v9512_v4, %v5589_v9  ;;  %v5590_v27 = vmul.f32 %v7596_v14, %v9507_v37  ;;  %7541 = vmatprep.mubr.bf16.mxu0 %v5678_v60 }
 0x3fd   : > { %v5631_v34 = vadd.f32 %v9512_v4, %v5592_v59  ;;  %7542 = vmatmul.mubr.bf16.gmra.mrb[84].mxu0 %v5679_v16  ;;  %v5662_v20 = vmax.f32 %v5630_v61, 0.0  ;;  %v6601_v61 = vunpack.c.l.bf16 %v6733_v11 }
 0x3fe   : > { %v5629_v6 = vadd.f32 %v9512_v4, %v5590_v27  ;;  %v7503_v46 = vpop.f32.mrb[12].mxu1  ;;  %v5660_v49 = vmax.f32 %v5628_v51, 0.0 }
 0x3ff   : > { %v5663_v38 = vmax.f32 %v5631_v34, 0.0  ;;  %v7597_v62 = vadd.f32 %v7503_v46, %v9482_v31  ;;  %v5511_v3 = vpop.f32.mrb[13].mxu1 }
 0x400   : > { %v5661_v52 = vmax.f32 %v5629_v6, 0.0  ;;  %v7598_v48 = vadd.f32 %v5511_v3, %v9484_v22  ;;  %v7504_v13 = vpop.f32.mrb[14].mxu1  ;;  %v6597_v6 = vunpack.c.l.bf16 %v6732_v35  ;;  %v6602_v3 = vunpack.c.h.bf16 %v6733_v11 }
 0x401   : > { %v5595_v42 = vmul.f32 %v7597_v62, %v9507_v37  ;;  %v7599_v25 = vadd.f32 %v7504_v13, %v9486_v50  ;;  %v5514_v24 = vpop.f32.mrb[15].mxu1  ;;  %v5681_v10 = vpack.c.bf16 %v5663_v38, %v5662_v20 }
 0x402   : > { %v5593_v7 = vmul.f32 %v7598_v48, %v9507_v37  ;;  %v7600_v39 = vadd.f32 %v5514_v24, %v9488_v17  ;;  %v5680_v29 = vpack.c.bf16 %v5661_v52, %v5660_v49 }
 0x403   : > { %v5634_v23 = vadd.f32 %v9512_v4, %v5595_v42  ;;  %v5596_v31 = vmul.f32 %v7599_v25, %v9507_v37  ;;  %v6598_v42 = vunpack.c.h.bf16 %v6732_v35 }
 0x404   : > { %v5632_v63 = vadd.f32 %v9512_v4, %v5593_v7  ;;  %v5594_v22 = vmul.f32 %v7600_v39, %v9507_v37  ;;  %7545 = vmatprep.mubr.bf16.mxu0 %v5680_v29  ;;  %v6731_v37 = vld [vmem:[%s8513_s9 + $0x8] sm:$0xff]  }
 0x405   : > { %v5635_v50 = vadd.f32 %v9512_v4, %v5596_v31  ;;  %7546 = vmatmul.mubr.bf16.gmra.mrb[88].mxu0 %v5681_v10  ;;  %v5666_v43 = vmax.f32 %v5634_v23, 0.0  ;;  %v6593_v30 = vunpack.c.l.bf16 %v6731_v37  ;;  %v6594_v18 = vunpack.c.h.bf16 %v6731_v37  ;;  %v6735_v39 = vld [vmem:[%s8513_s9 + $0x28] sm:$0xff]   ;;  %v6734_v23 = vld [vmem:[%s8513_s9 + $0x20] sm:$0xff]  }
 0x406   : > { %v5633_v47 = vadd.f32 %v9512_v4, %v5594_v22  ;;  %v5664_v17 = vmax.f32 %v5632_v63, 0.0  ;;  %v9611_v4 = vld [vmem:[%s9802_s19] ss:$0 sm:$0xff] }
 0x407   : > { %v5667_v56 = vmax.f32 %v5635_v50, 0.0 }
 0x408   : > { %v5665_v19 = vmax.f32 %v5633_v47, 0.0 }
 0x409   : > { %v5683_v15 = vpack.c.bf16 %v5667_v56, %v5666_v43  ;;  %v6609_v43 = vunpack.c.l.bf16 %v6735_v39 }
 0x40a   : > { %v5682_v55 = vpack.c.bf16 %v5665_v19, %v5664_v17 }
 0x40c   : > { %7549 = vmatprep.mubr.bf16.mxu0 %v5682_v55  ;;  %v6605_v55 = vunpack.c.l.bf16 %v6734_v23 }
 0x40d   : > { %7550 = vmatmul.mubr.bf16.gmra.mrb[92].mxu0 %v5683_v15 }
 0x4a8   : > { %v7523_v1 = vpop.f32.mrb[64].mxu0 }
 0x4a9   : > { %v5918_v33 = vmul.f32 %v7523_v1, %v9604_v40  ;;  %v5782_v41 = vpop.f32.mrb[65].mxu0 }
 0x4aa   : > { %v5916_v21 = vmul.f32 %v9604_v40, %v5782_v41  ;;  %v7524_v44 = vpop.f32.mrb[66].mxu0 }
 0x4ab   : > { %v5957_v28 = vadd.f32 %v9611_v4, %v5918_v33  ;;  %v5919_v45 = vmul.f32 %v7524_v44, %v9604_v40  ;;  %v5785_v53 = vpop.f32.mrb[67].mxu0 }
 0x4ac   : > { %v5955_v12 = vadd.f32 %v9611_v4, %v5916_v21  ;;  %v5917_v8 = vmul.f32 %v9604_v40, %v5785_v53 }
 0x4ad   : > { %v6053_v32 = vadd.f32 %v6593_v30, %v5957_v28  ;;  %v5958_v0 = vadd.f32 %v9611_v4, %v5919_v45  ;;  %v6610_v30 = vunpack.c.h.bf16 %v6735_v39  ;;  %v6606_v28 = vunpack.c.h.bf16 %v6734_v23 }
 0x4ae   : > { %v6051_v26 = vadd.f32 %v6589_v5, %v5955_v12  ;;  %v5956_v2 = vadd.f32 %v9611_v4, %v5917_v8  ;;  %v6737_v8 = vld [vmem:[%s8513_s9 + $0x38] sm:$0xff]  }
 0x4af   : > { %v6054_v58 = vadd.f32 %v6594_v18, %v5958_v0  ;;  %v6085_v9 = vmax.f32 %v6053_v32, 0.0  ;;  %v6736_v32 = vld [vmem:[%s8513_s9 + $0x30] sm:$0xff]   ;;  %v6617_v35 = vunpack.c.l.bf16 %v6737_v8 }
 0x4b0   : > { %v6052_v54 = vadd.f32 %v6590_v36, %v5956_v2  ;;  %v7527_v16 = vpop.f32.mrb[68].mxu0  ;;  %v6083_v51 = vmax.f32 %v6051_v26, 0.0 }
 0x4b1   : > { %v6086_v14 = vmax.f32 %v6054_v58, 0.0  ;;  %v5922_v60 = vmul.f32 %v7527_v16, %v9604_v40  ;;  %v5798_v59 = vpop.f32.mrb[69].mxu0 }
 0x4b2   : > { %v6084_v27 = vmax.f32 %v6052_v54, 0.0  ;;  %v5920_v34 = vmul.f32 %v9604_v40, %v5798_v59  ;;  %v7528_v46 = vpop.f32.mrb[70].mxu0 }
 0x4b3   : > { %v6659_v20 = vpack.c.bf16 %v6086_v14, %v6085_v9  ;;  %v5961_v38 = vadd.f32 %v9611_v4, %v5922_v60  ;;  %v5923_v62 = vmul.f32 %v7528_v46, %v9604_v40  ;;  %v5801_v49 = vpop.f32.mrb[71].mxu0  ;;  %v6613_v60 = vunpack.c.l.bf16 %v6736_v32 }
 0x4b4   : > { %v6654_v52 = vpack.c.bf16 %v6084_v27, %v6083_v51  ;;  %v5959_v48 = vadd.f32 %v9611_v4, %v5920_v34  ;;  %v5921_v13 = vmul.f32 %v9604_v40, %v5801_v49  ;;  %v6618_v34 = vunpack.c.h.bf16 %v6737_v8 }
 0x4b5   : > { %6746 = vst [vmem:[%s9631_s21 + $0x8] sm:$0xff] %v6659_v20   ;;  %v6057_v25 = vadd.f32 %v6601_v61, %v5961_v38  ;;  %v5962_v24 = vadd.f32 %v9611_v4, %v5923_v62  ;;  %v6614_v62 = vunpack.c.h.bf16 %v6736_v32 }
 0x4b6   : > { %6655 = vst [vmem:[%s9631_s21] sm:$0xff] %v6654_v52   ;;  %v6055_v10 = vadd.f32 %v6597_v6, %v5959_v48  ;;  %v5960_v7 = vadd.f32 %v9611_v4, %v5921_v13  ;;  %v6739_v13 = vld [vmem:[%s8513_s9 + $0x48] sm:$0xff]  }
 0x4b7   : > { %v6058_v29 = vadd.f32 %v6602_v3, %v5962_v24  ;;  %v6089_v22 = vmax.f32 %v6057_v25, 0.0  ;;  %v6738_v25 = vld [vmem:[%s8513_s9 + $0x40] sm:$0xff]   ;;  %v6625_v23 = vunpack.c.l.bf16 %v6739_v13 }
 0x4b8   : > { %v6056_v31 = vadd.f32 %v6598_v42, %v5960_v7  ;;  %v7531_v63 = vpop.f32.mrb[72].mxu0  ;;  %v6087_v17 = vmax.f32 %v6055_v10, 0.0 }
 0x4b9   : > { %v6090_v50 = vmax.f32 %v6058_v29, 0.0  ;;  %v5926_v47 = vmul.f32 %v7531_v63, %v9604_v40  ;;  %v5814_v56 = vpop.f32.mrb[73].mxu0 }
 0x4ba   : > { %v6088_v19 = vmax.f32 %v6056_v31, 0.0  ;;  %v5924_v15 = vmul.f32 %v9604_v40, %v5814_v56  ;;  %v7532_v37 = vpop.f32.mrb[74].mxu0 }
 0x4bb   : > { %v6669_v57 = vpack.c.bf16 %v6090_v50, %v6089_v22  ;;  %v5965_v1 = vadd.f32 %v9611_v4, %v5926_v47  ;;  %v5927_v33 = vmul.f32 %v7532_v37, %v9604_v40  ;;  %v5817_v41 = vpop.f32.mrb[75].mxu0  ;;  %v6621_v47 = vunpack.c.l.bf16 %v6738_v25 }
 0x4bc   : > { %v6664_v21 = vpack.c.bf16 %v6088_v19, %v6087_v17  ;;  %v5963_v5 = vadd.f32 %v9611_v4, %v5924_v15  ;;  %v5925_v44 = vmul.f32 %v9604_v40, %v5817_v41  ;;  %v6626_v15 = vunpack.c.h.bf16 %v6739_v13 }
 0x4bd   : > { %6748 = vst [vmem:[%s9631_s21 + $0x18] sm:$0xff] %v6669_v57   ;;  %v6061_v45 = vadd.f32 %v6609_v43, %v5965_v1  ;;  %v5966_v18 = vadd.f32 %v9611_v4, %v5927_v33  ;;  %v6622_v33 = vunpack.c.h.bf16 %v6738_v25 }
 0x4be   : > { %6747 = vst [vmem:[%s9631_s21 + $0x10] sm:$0xff] %v6664_v21   ;;  %v6059_v53 = vadd.f32 %v6605_v55, %v5963_v5  ;;  %v5964_v12 = vadd.f32 %v9611_v4, %v5925_v44  ;;  %v6741_v44 = vld [vmem:[%s8513_s9 + $0x58] sm:$0xff]  }
 0x4bf   : > { %v6062_v36 = vadd.f32 %v6610_v30, %v5966_v18  ;;  %v6093_v2 = vmax.f32 %v6061_v45, 0.0  ;;  %v6740_v45 = vld [vmem:[%s8513_s9 + $0x50] sm:$0xff]   ;;  %v6633_v32 = vunpack.c.l.bf16 %v6741_v44 }
 0x4c0   : > { %v6060_v0 = vadd.f32 %v6606_v28, %v5964_v12  ;;  %v7535_v26 = vpop.f32.mrb[76].mxu0  ;;  %v6091_v16 = vmax.f32 %v6059_v53, 0.0 }
 0x4c1   : > { %v6094_v11 = vmax.f32 %v6062_v36, 0.0  ;;  %v5930_v58 = vmul.f32 %v7535_v26, %v9604_v40  ;;  %v5830_v54 = vpop.f32.mrb[77].mxu0 }
 0x4c2   : > { %v6092_v9 = vmax.f32 %v6060_v0, 0.0  ;;  %v5928_v14 = vmul.f32 %v9604_v40, %v5830_v54  ;;  %v7536_v61 = vpop.f32.mrb[78].mxu0 }
 0x4c3   : > { %v6679_v59 = vpack.c.bf16 %v6094_v11, %v6093_v2  ;;  %v5969_v51 = vadd.f32 %v9611_v4, %v5930_v58  ;;  %v5931_v27 = vmul.f32 %v7536_v61, %v9604_v40  ;;  %v5833_v6 = vpop.f32.mrb[79].mxu0  ;;  %v6629_v58 = vunpack.c.l.bf16 %v6740_v45 }
 0x4c4   : > { %v6674_v46 = vpack.c.bf16 %v6092_v9, %v6091_v16  ;;  %v5967_v20 = vadd.f32 %v9611_v4, %v5928_v14  ;;  %v5929_v38 = vmul.f32 %v9604_v40, %v5833_v6  ;;  %v6634_v14 = vunpack.c.h.bf16 %v6741_v44 }
 0x4c5   : > { %6750 = vst [vmem:[%s9631_s21 + $0x28] sm:$0xff] %v6679_v59   ;;  %v6065_v3 = vadd.f32 %v6617_v35, %v5969_v51  ;;  %v5970_v49 = vadd.f32 %v9611_v4, %v5931_v27  ;;  %v6630_v27 = vunpack.c.h.bf16 %v6740_v45 }
 0x4c6   : > { %6749 = vst [vmem:[%s9631_s21 + $0x20] sm:$0xff] %v6674_v46   ;;  %v6063_v52 = vadd.f32 %v6613_v60, %v5967_v20  ;;  %v5968_v48 = vadd.f32 %v9611_v4, %v5929_v38  ;;  %v6743_v38 = vld [vmem:[%s8513_s9 + $0x68] sm:$0xff]  }
 0x4c7   : > { %v6066_v42 = vadd.f32 %v6618_v34, %v5970_v49  ;;  %v6097_v7 = vmax.f32 %v6065_v3, 0.0  ;;  %v6742_v3 = vld [vmem:[%s8513_s9 + $0x60] sm:$0xff]   ;;  %v6641_v25 = vunpack.c.l.bf16 %v6743_v38 }
 0x4c8   : > { %v6064_v24 = vadd.f32 %v6614_v62, %v5968_v48  ;;  %v7539_v10 = vpop.f32.mrb[80].mxu0  ;;  %v6095_v63 = vmax.f32 %v6063_v52, 0.0 }
 0x4c9   : > { %v6098_v39 = vmax.f32 %v6066_v42, 0.0  ;;  %v5934_v29 = vmul.f32 %v7539_v10, %v9604_v40  ;;  %v5846_v31 = vpop.f32.mrb[81].mxu0 }
 0x4ca   : > { %v6096_v22 = vmax.f32 %v6064_v24, 0.0  ;;  %v5932_v50 = vmul.f32 %v9604_v40, %v5846_v31  ;;  %v7540_v43 = vpop.f32.mrb[82].mxu0 }
 0x4cb   : > { %v6689_v56 = vpack.c.bf16 %v6098_v39, %v6097_v7  ;;  %v5973_v17 = vadd.f32 %v9611_v4, %v5934_v29  ;;  %v5935_v19 = vmul.f32 %v7540_v43, %v9604_v40  ;;  %v5849_v55 = vpop.f32.mrb[83].mxu0  ;;  %v6637_v29 = vunpack.c.l.bf16 %v6742_v3 }
 0x4cc   : > { %v6684_v37 = vpack.c.bf16 %v6096_v22, %v6095_v63  ;;  %v5971_v57 = vadd.f32 %v9611_v4, %v5932_v50  ;;  %v5933_v1 = vmul.f32 %v9604_v40, %v5849_v55  ;;  %v6642_v50 = vunpack.c.h.bf16 %v6743_v38 }
 0x4cd   : > { %6752 = vst [vmem:[%s9631_s21 + $0x38] sm:$0xff] %v6689_v56   ;;  %v6069_v30 = vadd.f32 %v6625_v23, %v5973_v17  ;;  %v5974_v41 = vadd.f32 %v9611_v4, %v5935_v19  ;;  %v6638_v19 = vunpack.c.h.bf16 %v6742_v3 }
 0x4ce   : > { %6751 = vst [vmem:[%s9631_s21 + $0x30] sm:$0xff] %v6684_v37   ;;  %v6067_v21 = vadd.f32 %v6621_v47, %v5971_v57  ;;  %v5972_v5 = vadd.f32 %v9611_v4, %v5933_v1  ;;  %v6745_v1 = vld [vmem:[%s8513_s9 + $0x78] sm:$0xff]  }
 0x4cf   : > { %v6070_v28 = vadd.f32 %v6626_v15, %v5974_v41  ;;  %v6101_v12 = vmax.f32 %v6069_v30, 0.0  ;;  %v6744_v30 = vld [vmem:[%s8513_s9 + $0x70] sm:$0xff]   ;;  %v6649_v45 = vunpack.c.l.bf16 %v6745_v1  ;;  %s6289_s9 = sshll.u32 %s9631_s21, 4  ;;  %s9716_s9 = int_to_ptr.vmem [resolvable:$true] %s6289_s9 }
 0x4d0   : > { %v6068_v18 = vadd.f32 %v6622_v33, %v5972_v5  ;;  %v7543_v53 = vpop.f32.mrb[84].mxu0  ;;  %v6099_v26 = vmax.f32 %v6067_v21, 0.0  ;;  %s8161_s24 = scalar_lea.vmem %s9716_s9, 2048  ;;  %p8168_p12 = scmp.lt.s32.totalorder %s9716_s9, %s8166_s18 }
 0x4d1   : > { %v6102_v8 = vmax.f32 %v6070_v28, 0.0  ;;  %v5938_v36 = vmul.f32 %v7543_v53, %v9604_v40  ;;  %v5862_v0 = vpop.f32.mrb[85].mxu0  ;;  %p8162_p10 = scmp.ne.s32.totalorder %s9716_s9, %s8161_s24  ;;  %p8169_p1 = scmp.lt.s32.totalorder %s8167_s28, %s8161_s24 }
 0x4d2   : > { %v6100_v2 = vmax.f32 %v6068_v18, 0.0  ;;  %v5936_v11 = vmul.f32 %v9604_v40, %v5862_v0  ;;  %v7544_v35 = vpop.f32.mrb[86].mxu0 }
 0x4d3   : > { %v6699_v54 = vpack.c.bf16 %v6102_v8, %v6101_v12  ;;  %v5977_v16 = vadd.f32 %v9611_v4, %v5938_v36  ;;  %v5939_v9 = vmul.f32 %v7544_v35, %v9604_v40  ;;  %v5865_v60 = vpop.f32.mrb[87].mxu0  ;;  %v6645_v36 = vunpack.c.l.bf16 %v6744_v30  ;;  %p8163_p3 = pnand %p8162_p10, %p8456_p5  ;;  %p8170_p2 = por %p8169_p1, %p8168_p12 }
 0x4d4   : > { %v6694_v61 = vpack.c.bf16 %v6100_v2, %v6099_v26  ;;  %v5975_v59 = vadd.f32 %v9611_v4, %v5936_v11  ;;  %v5937_v51 = vmul.f32 %v9604_v40, %v5865_v60  ;;  %v6650_v11 = vunpack.c.h.bf16 %v6745_v1 }
 0x4d5   : > { %6754 = vst [vmem:[%s9631_s21 + $0x48] sm:$0xff] %v6699_v54   ;;  %v6073_v34 = vadd.f32 %v6633_v32, %v5977_v16  ;;  %v5978_v6 = vadd.f32 %v9611_v4, %v5939_v9  ;;  %v6646_v9 = vunpack.c.h.bf16 %v6744_v30  ;;  %p8164_p7 = pneg %p8163_p3 }
 0x4d6   : > { %6753 = vst [vmem:[%s9631_s21 + $0x40] sm:$0xff] %v6694_v61   ;;  %v6071_v46 = vadd.f32 %v6629_v58, %v5975_v59  ;;  %v5976_v20 = vadd.f32 %v9611_v4, %v5937_v51 }
 0x4d7   : > { %v6074_v62 = vadd.f32 %v6634_v14, %v5978_v6  ;;  %v6105_v48 = vmax.f32 %v6073_v34, 0.0  ;;  %p8171_p4 = pnand %p8170_p2, %p8164_p7 }
 0x4d8   : > { %v6072_v49 = vadd.f32 %v6630_v27, %v5976_v20  ;;  %v7547_v52 = vpop.f32.mrb[88].mxu0  ;;  %v6103_v10 = vmax.f32 %v6071_v46, 0.0 }
 0x4d9   : > { %v6106_v13 = vmax.f32 %v6074_v62, 0.0  ;;  %v5942_v42 = vmul.f32 %v7547_v52, %v9604_v40  ;;  %v5878_v24 = vpop.f32.mrb[89].mxu0 }
 0x4da   : > { %v6104_v7 = vmax.f32 %v6072_v49, 0.0  ;;  %v5940_v39 = vmul.f32 %v9604_v40, %v5878_v24  ;;  %v7548_v23 = vpop.f32.mrb[90].mxu0 }
 0x4db   : > { %v6709_v31 = vpack.c.bf16 %v6106_v13, %v6105_v48  ;;  %v5981_v63 = vadd.f32 %v9611_v4, %v5942_v42  ;;  %v5943_v22 = vmul.f32 %v7548_v23, %v9604_v40  ;;  %v5881_v47 = vpop.f32.mrb[91].mxu0 }
 0x4dc   : > { %v6704_v43 = vpack.c.bf16 %v6104_v7, %v6103_v10  ;;  %v5979_v56 = vadd.f32 %v9611_v4, %v5940_v39  ;;  %v5941_v17 = vmul.f32 %v9604_v40, %v5881_v47 }
 0x4dd   : > { %6756 = vst [vmem:[%s9631_s21 + $0x58] sm:$0xff] %v6709_v31   ;;  %v6077_v15 = vadd.f32 %v6641_v25, %v5981_v63  ;;  %v5982_v55 = vadd.f32 %v9611_v4, %v5943_v22 }
 0x4de   : > { %6755 = vst [vmem:[%s9631_s21 + $0x50] sm:$0xff] %v6704_v43   ;;  %v6075_v37 = vadd.f32 %v6637_v29, %v5979_v56  ;;  %v5980_v57 = vadd.f32 %v9611_v4, %v5941_v17 }
 0x4df   : > { %v6078_v33 = vadd.f32 %v6642_v50, %v5982_v55  ;;  %v6109_v5 = vmax.f32 %v6077_v15, 0.0 }
 0x4e0   : > { %v6076_v41 = vadd.f32 %v6638_v19, %v5980_v57  ;;  %v7551_v21 = vpop.f32.mrb[92].mxu0  ;;  %v6107_v53 = vmax.f32 %v6075_v37, 0.0 }
 0x4e1   : > { %v6110_v44 = vmax.f32 %v6078_v33, 0.0  ;;  %v5946_v28 = vmul.f32 %v7551_v21, %v9604_v40  ;;  %v5894_v18 = vpop.f32.mrb[93].mxu0 }
 0x4e2   : > { %v6108_v12 = vmax.f32 %v6076_v41, 0.0  ;;  %v5944_v8 = vmul.f32 %v9604_v40, %v5894_v18  ;;  %v7552_v32 = vpop.f32.mrb[94].mxu0 }
 0x4e3   : > { %v6719_v0 = vpack.c.bf16 %v6110_v44, %v6109_v5  ;;  %v5985_v26 = vadd.f32 %v9611_v4, %v5946_v28  ;;  %v5947_v2 = vmul.f32 %v7552_v32, %v9604_v40  ;;  %v5897_v58 = vpop.f32.mrb[95].mxu0 }
 0x4e4   : > { %v6714_v35 = vpack.c.bf16 %v6108_v12, %v6107_v53  ;;  %v5983_v54 = vadd.f32 %v9611_v4, %v5944_v8  ;;  %v5945_v16 = vmul.f32 %v9604_v40, %v5897_v58 }
 0x4e5   : > { %6758 = vst [vmem:[%s9631_s21 + $0x68] sm:$0xff] %v6719_v0   ;;  %v6081_v14 = vadd.f32 %v6649_v45, %v5985_v26  ;;  %v5986_v60 = vadd.f32 %v9611_v4, %v5947_v2 }
 0x4e6   : > { %6757 = vst [vmem:[%s9631_s21 + $0x60] sm:$0xff] %v6714_v35   ;;  %v6079_v61 = vadd.f32 %v6645_v36, %v5983_v54  ;;  %v5984_v59 = vadd.f32 %v9611_v4, %v5945_v16 }
 0x4e7   : > { %v6082_v51 = vadd.f32 %v6650_v11, %v5986_v60  ;;  %v6113_v34 = vmax.f32 %v6081_v14, 0.0 }
 0x4e8   : > { %v6080_v27 = vadd.f32 %v6646_v9, %v5984_v59  ;;  %v6111_v40 = vmax.f32 %v6079_v61, 0.0 }
 0x4e9   : > { %v6114_v6 = vmax.f32 %v6082_v51, 0.0 }
 0x4ea   : > { %v6112_v46 = vmax.f32 %v6080_v27, 0.0 }
 0x4eb   : > { %v6729_v20 = vpack.c.bf16 %v6114_v6, %v6113_v34 }
 0x4ec   : > { %v6724_v4 = vpack.c.bf16 %v6112_v46, %v6111_v40 }
 0x4ed   : > { %6760 = vst [vmem:[%s9631_s21 + $0x78] sm:$0xff] %v6729_v20  }
 0x4ee   : > { %6759 = vst [vmem:[%s9631_s21 + $0x70] sm:$0xff] %v6724_v4  }
 0x4ef   : > { %8174 = shalt.err (!%p8171_p4)
}
 0x4f0   : > { %s8175_s27 = scalar_lea.hbm %s9714_s26, 2048  ;;  %s8179_s21 = scalar_lea.hbm %s9803_s29, 4096 }
 0x4f1   : > { %p8176_p9 = scmp.ne.s32.totalorder %s9714_s26, %s8175_s27  ;;  %p8180_p8 = scmp.lt.u32.totalorder %s9714_s26, %s9803_s29 }
 0x4f2   : > { %p8181_p13 = scmp.lt.u32.totalorder %s8179_s21, %s8175_s27  ;;  %p8183_p10 = scmp.lt.u32.totalorder %s8175_s27, %s9714_s26 }
 0x4f3   : > { %p8177_p0 = pnand %p8176_p9, %p8456_p5 }
 0x4f4   : > { %p8182_p6 = por %p8181_p13, %p8180_p8 }
 0x4f5   : > { %p8178_p11 = pneg %p8177_p0 }
 0x4f6   : > { %p8184_p3 = por %p8183_p10, %p8182_p6 }
 0x4f8   : > { %p8185_p7 = pnand %p8184_p3, %p8178_p11 }
 0x4fa   : > { %8188 = shalt.err (!%p8185_p7)
}
 0x4fb   : > { %s8245_s11 = smov 64   ;;  %s8246_s24 = smov 4  }
 0x4fc   : > { %7839 = dma.vmem_to_hbm [thread:$0]  (%p8456_p5), %s9716_s9, 2048, %s9714_s26, %s6276_s17, %s8245_s11, %s8245_s11, %s8246_s24  }
 0x4fd PF: > { %s9804_s12 = sld [smem:[#allocation16_spill]]  ;;  %s9805_s18 = sld [smem:[#allocation17_spill]] }
 0x4fe   : > { %p9807_p1 = scmp.ge.s32.totalorder %s8235_s16, 2 }
 0x503   : > { %s6304_s28 = sand.u32 1, %s9804_s12   ;;  %p9806_p12 = scmp.ne.s32.totalorder %s9805_s18, 0 }
 0x504   : > { %s6305_s27 = scalar_lea.sflag [#allocation5], %s6304_s28 }
 0x505   : > { %p7856_p2 = pnand %p9807_p1, %p9806_p12 }
 0x507   : > { %8218 = dma.done.wait (!%p7856_p2), %s6305_s27, 2048  }
 0x508   : > { %8220 = vsyncadd (!%p7856_p2), %s6305_s27, 4294965248  ;;  %s9808_s23 = smov %s8452_s13  ;;  %p25_p4 = scmp.ge.s32.totalorder %s8442_s22, 4  }
 0x509   : > { %s9809_s13 = smov %s8227_s14  ;;  %s9810_s14 = smov %s8231_s15 }
 0x50a   : > { %s9811_s15 = smov %s9808_s23  ;;  %s9812_s16 = smov %s8442_s22 }
 0x50b   :  { %27 = sbr.rel (!%p25_p4) target bundleno = 10 (0xa), region = 128 }
 0x512   :  { %6310 = vsyncpa [#allocation4], 1 }
 0x513   :  { %6312 = vsyncpa [#allocation4 + $0x1], 1 }
 0x514   :  { %6313 = vsyncpa [#allocation7], 1 }
 0x515   :  { %6314 = vsyncpa [#allocation10], 1 }
 0x516   :  { %6315 = vsyncpa [#allocation5], 1 }
 0x517   :  { %6317 = vsyncpa [#allocation5 + $0x1], 1 }

</bundles_post_ra>
